<compile_context>
chip_gen: v5e
topology: v5e:2x2
jax: 0.10.0
libtpu: 0.0.40
codegen_flags: <defaults>
</compile_context>

<pallas_src>
import functools
import math
import warnings

import jax
import jax.numpy as jnp
from jax.experimental import pallas as pl
from jax.experimental.pallas import tpu as pltpu


def mha_kernel(x_ref, w_ref, g_ref, beta_ref, o_ref, *,
               n_heads, d_k, d_model, off_k, off_v, eps, attn_dtype):
    bt, seq_len, _ = x_ref.shape
    rows = bt * seq_len

    x3 = x_ref[...]                           # (Bt, L, 3D) fused [Q|K|V] input
    residual = x3[:, :, :d_model]             # lanes 0:D -> no lane rotate

    # Single fused projection.  w is block-diagonal over the three D-wide
    # input groups; output columns are 128-lane aligned per group:
    #   [0     , hk   )      : W_Q per head (1/sqrt(d_k) folded in)
    #   [off_k , off_k+hk)   : W_K per head
    #   [off_v , off_v+H*D)  : V'_h = W_V_h @ W_fc_h  (fc folded in)
    qkv = jnp.dot(x3.reshape(rows, 3 * d_model), w_ref[...],
                  preferred_element_type=jnp.float32)         # (rows, n_pad)
    qkv = qkv.reshape(bt, seq_len, -1)        # layout-preserving (L % 8 == 0)

    ctx = None
    for h in range(n_heads):
        q_h = qkv[:, :, h * d_k:(h + 1) * d_k]                          # (Bt,L,dk)
        k_h = qkv[:, :, off_k + h * d_k:off_k + (h + 1) * d_k]          # (Bt,L,dk)
        v_h = qkv[:, :, off_v + h * d_model:off_v + (h + 1) * d_model]  # (Bt,L,D)

        if attn_dtype != jnp.float32:
            q_h = q_h.astype(attn_dtype)
            k_h = k_h.astype(attn_dtype)

        # scores[b, q, k]; 1/sqrt(d_k) already folded into W_Q.
        s = jnp.einsum('bqd,bkd->bqk', q_h, k_h,
                       preferred_element_type=jnp.float32)              # (Bt,Lq,Lk)

        # Softmax over the QUERY axis == torch F.softmax(scores, dim=3).
        m = jnp.max(s, axis=1, keepdims=True)
        e = jnp.exp(s - m)
        attn = e / jnp.sum(e, axis=1, keepdims=True)

        if attn_dtype != jnp.float32:
            attn = attn.astype(attn_dtype)
            v_h = v_h.astype(attn_dtype)

        # fc already folded into V' -> this accumulates fc(context) directly.
        c = jnp.einsum('bqk,bkd->bqd', attn, v_h,
                       preferred_element_type=jnp.float32)              # (Bt,L,D)
        ctx = c if ctx is None else ctx + c

    out = ctx + residual

    # LayerNorm(d_model): biased variance, eps=1e-5, fresh gamma/beta.
    mean = jnp.mean(out, axis=-1, keepdims=True)
    var = jnp.mean((out - mean) ** 2, axis=-1, keepdims=True)
    normed = (out - mean) * jax.lax.rsqrt(var + eps)
    o_ref[...] = normed * g_ref[...] + beta_ref[...]


def _round_up(x, m):
    return (x + m - 1) // m * m


def _fuse_weights(wq, wk, wv, wo, d_k, n_heads, lane=128):
    """Fused block-diagonal projection weight (one-time param transform).

    * 1/sqrt(d_k) folded into the W_Q block.
    * Output projection folded per head: V'_h = W_V_h @ W_fc_h (D x D).
    * Each output group padded to its own 128-lane boundary.
    """
    d_model = wq.shape[0]
    hk = wq.shape[1]                          # n_heads * d_k
    d_v = wv.shape[1] // n_heads

    wvo = jnp.concatenate(
        [wv[:, h * d_v:(h + 1) * d_v] @ wo[h * d_v:(h + 1) * d_v, :]
         for h in range(n_heads)], axis=1)    # (D, H*D)

    off_k = _round_up(hk, lane)
    off_v = 2 * off_k
    n_pad = off_v + _round_up(n_heads * d_model, lane)

    w = jnp.zeros((3 * d_model, n_pad), jnp.float32)
    w = w.at[:d_model, :hk].set(wq / math.sqrt(d_k))
    w = w.at[d_model:2 * d_model, off_k:off_k + hk].set(wk)
    w = w.at[2 * d_model:, off_v:off_v + n_heads * d_model].set(wvo)
    return w, off_k, off_v


def _vmem_bytes(block_b, L, D, n_pad, n_heads):
    """Conservative VMEM model: blocks (double-buffered) + live intermediates."""
    f32 = 4
    x_in = 2 * block_b * L * 3 * D * f32          # fused input block
    out = 2 * block_b * L * D * f32               # output block
    w = 2 * 3 * D * n_pad * f32                   # fused weight
    qkv = block_b * L * n_pad * f32               # projection slab
    scores = 2 * n_heads * block_b * L * L * f32  # scores + exp
    ctx = 2 * block_b * L * D * f32               # ctx accumulator + normed
    return x_in + out + w + qkv + scores + ctx + (1 << 20)


def _pick_block_b(batch, L, D, n_pad, n_heads, budget=28 << 20):
    """Largest batch block that fits the VMEM budget.  Defaults to the whole
    batch (grid of 1): v5e/v6e are single-TensorCore, so extra steps are pure
    serial overhead.  On v7x, benchmark block_b = batch // 2 explicitly."""
    for bb in range(batch, 0, -1):
        if batch % bb == 0 and _vmem_bytes(bb, L, D, n_pad, n_heads) <= budget:
            return bb
    return 1


def multi_head_attention(input_q, input_k, input_v, wq, wk, wv, wo, gamma,
                         beta, attn_mask=None, res_att=None, *, n_heads, d_k,
                         d_v, block_b=None, attn_dtype=jnp.float32):
    del res_att  # unused by the reference forward
    if attn_mask is not None:
        # Reference's masked_fill is non-in-place and discarded -> no effect.
        warnings.warn("attn_mask is ignored (matches reference semantics)")

    B, L, D = input_q.shape
    if L % 8 != 0:
        raise ValueError("seq_len must be a multiple of 8 for this kernel")
    assert wv.shape[1] == n_heads * d_v

    wqkv, off_k, off_v = _fuse_weights(wq, wk, wv, wo, d_k, n_heads)
    n_pad = wqkv.shape[1]

    if block_b is None:
        block_b = _pick_block_b(B, L, D, n_pad, n_heads)
    assert B % block_b == 0

    # Concatenate Q/K/V inputs once in XLA (cheap) -> one fused DMA stream.
    x = jnp.concatenate([input_q, input_k, input_v], axis=-1)     # (B, L, 3D)

    kernel = functools.partial(
        mha_kernel, n_heads=n_heads, d_k=d_k, d_model=D, off_k=off_k,
        off_v=off_v, eps=1e-5, attn_dtype=attn_dtype)

    vmem_limit = int(min(48 << 20,
                         max(16 << 20,
                             2 * _vmem_bytes(block_b, L, D, n_pad, n_heads))))

    grid_spec = pltpu.PrefetchScalarGridSpec(
        num_scalar_prefetch=0,
        grid=(B // block_b,),
        in_specs=[
            pl.BlockSpec((block_b, L, 3 * D), lambda b: (b, 0, 0)),  # fused QKV in
            pl.BlockSpec((3 * D, n_pad), lambda b: (0, 0)),          # fused weight
            pl.BlockSpec((1, D), lambda b: (0, 0)),                  # ln gamma
            pl.BlockSpec((1, D), lambda b: (0, 0)),                  # ln beta
        ],
        out_specs=pl.BlockSpec((block_b, L, D), lambda b: (b, 0, 0)),
    )

    return pl.pallas_call(
        kernel,
        grid_spec=grid_spec,
        out_shape=jax.ShapeDtypeStruct((B, L, D), jnp.float32),
        compiler_params=pltpu.CompilerParams(
            dimension_semantics=("parallel",),
            vmem_limit_bytes=vmem_limit),
    )(x, wqkv, gamma, beta)


def reference(xq, xk, xv, wq, wk, wv, wo, gamma, beta, *, n_heads, d_k, d_v):
    """Pure-JAX transcription of the PyTorch forward (num_of_d = 1)."""
    B, L, D = xq.shape
    Q = (xq @ wq).reshape(B, 1, L, n_heads, d_k).transpose(0, 1, 3, 2, 4)
    K = (xk @ wk).reshape(B, 1, L, n_heads, d_k).transpose(0, 1, 3, 2, 4)
    V = (xv @ wv).reshape(B, 1, L, n_heads, d_v).transpose(0, 1, 3, 2, 4)
    scores = jnp.einsum('bnhqd,bnhkd->bnhqk', Q, K) / math.sqrt(d_k)
    attn = jax.nn.softmax(scores, axis=3)           # dim=3 == query axis
    ctx = jnp.einsum('bnhqk,bnhkd->bnhqd', attn, V)
    ctx = ctx.transpose(0, 1, 3, 2, 4).reshape(B, 1, L, n_heads * d_v)[:, 0]
    out = ctx @ wo + xq
    mean = out.mean(-1, keepdims=True)
    var = ((out - mean) ** 2).mean(-1, keepdims=True)
    return (out - mean) / jnp.sqrt(var + 1e-5) * gamma[0] + beta[0]


if __name__ == "__main__":
    # Small shapes consistent with the module: d_model=32, seq=16, batch=8,
    # n_heads=4, d_k=d_v=8, num_of_d=1.
    B, L, D = 8, 16, 32
    n_heads, d_k, d_v = 4, 8, 8

    key = jax.random.PRNGKey(0)
    kq, kk, kv, k1, k2, k3, k4 = jax.random.split(key, 7)

    input_q = jax.random.normal(kq, (B, L, D), jnp.float32)
    input_k = jax.random.normal(kk, (B, L, D), jnp.float32)
    input_v = jax.random.normal(kv, (B, L, D), jnp.float32)

    # nn.Linear weights, pre-transposed to [in, out].
    wq = 0.1 * jax.random.normal(k1, (D, n_heads * d_k), jnp.float32)
    wk = 0.1 * jax.random.normal(k2, (D, n_heads * d_k), jnp.float32)
    wv = 0.1 * jax.random.normal(k3, (D, n_heads * d_v), jnp.float32)
    wo = 0.1 * jax.random.normal(k4, (n_heads * d_v, D), jnp.float32)
    gamma = jnp.ones((1, D), jnp.float32)    # fresh nn.LayerNorm weight
    beta = jnp.zeros((1, D), jnp.float32)    # fresh nn.LayerNorm bias

    out = multi_head_attention(input_q, input_k, input_v, wq, wk, wv, wo,
                               gamma, beta, attn_mask=None, res_att=None,
                               n_heads=n_heads, d_k=d_k, d_v=d_v)
    out = jax.block_until_ready(out)

    ref = reference(input_q, input_k, input_v, wq, wk, wv, wo, gamma, beta,
                    n_heads=n_heads, d_k=d_k, d_v=d_v)

    assert out.shape == (B, L, D)
    assert jnp.allclose(out, ref, atol=1e-4, rtol=1e-4), "mismatch vs reference"
    print("KERNEL_OK")
</pallas_src>

<mosaic_0001>
module attributes {stable_mosaic.version = 11 : i64} {
  func.func @mha_kernel(%arg0: i32, %arg1: memref<8x16x96xf32, #tpu.memory_space<vmem>>, %arg2: memref<96x384xf32, #tpu.memory_space<vmem>>, %arg3: memref<1x32xf32, #tpu.memory_space<vmem>>, %arg4: memref<1x32xf32, #tpu.memory_space<vmem>>, %arg5: memref<8x16x32xf32, #tpu.memory_space<vmem>>) attributes {dimension_semantics = [#tpu.dimension_semantics<parallel>], iteration_bounds = array<i64: 1>, scalar_prefetch = 0 : i64, scratch_operands = 0 : i64, tpu.core_type = #tpu.core_type<tc>, window_params = [{transform_indices = @transform_0, window_bounds = array<i64: 8, 16, 96>}, {pipeline_mode = #tpu.pipeline_mode<synchronous>, transform_indices = @transform_1, window_bounds = array<i64: 96, 384>}, {pipeline_mode = #tpu.pipeline_mode<synchronous>, transform_indices = @transform_2, window_bounds = array<i64: 1, 32>}, {pipeline_mode = #tpu.pipeline_mode<synchronous>, transform_indices = @transform_3, window_bounds = array<i64: 1, 32>}, {transform_indices = @transform_4, window_bounds = array<i64: 8, 16, 32>}]} {
    %c0 = arith.constant 0 : index
    %c0_0 = arith.constant 0 : index
    %c0_1 = arith.constant 0 : index
    %0 = vector.load %arg1[%c0, %c0_0, %c0_1] : memref<8x16x96xf32, #tpu.memory_space<vmem>>, vector<8x16x96xf32>
    %1 = vector.extract_strided_slice %0 {offsets = [0, 0, 0], sizes = [8, 16, 32], strides = [1, 1, 1]} : vector<8x16x96xf32> to vector<8x16x32xf32>
    %2 = vector.shape_cast %0 : vector<8x16x96xf32> to vector<128x96xf32>
    %c0_2 = arith.constant 0 : index
    %c0_3 = arith.constant 0 : index
    %3 = vector.load %arg2[%c0_2, %c0_3] : memref<96x384xf32, #tpu.memory_space<vmem>>, vector<96x384xf32>
    %cst = arith.constant dense<0.000000e+00> : vector<128x384xf32>
    %4 = tpu.matmul %2, %3, %cst {dimension_numbers = #tpu.dot_dimension_numbers<[1], [0], [0], [1], [0, 0, 1, 1], [], []>} : vector<128x96xf32>, vector<96x384xf32>, vector<128x384xf32> -> vector<128x384xf32>
    %5 = vector.shape_cast %4 : vector<128x384xf32> to vector<8x16x384xf32>
    %6 = vector.extract_strided_slice %5 {offsets = [0, 0, 0], sizes = [8, 16, 8], strides = [1, 1, 1]} : vector<8x16x384xf32> to vector<8x16x8xf32>
    %7 = vector.extract_strided_slice %5 {offsets = [0, 0, 128], sizes = [8, 16, 8], strides = [1, 1, 1]} : vector<8x16x384xf32> to vector<8x16x8xf32>
    %8 = vector.extract_strided_slice %5 {offsets = [0, 0, 256], sizes = [8, 16, 32], strides = [1, 1, 1]} : vector<8x16x384xf32> to vector<8x16x32xf32>
    "tpu.trace_start"() <{level = 10 : i32, message = "bqd,bkd->bqk"}> : () -> ()
    %cst_4 = arith.constant dense<0.000000e+00> : vector<8x16x16xf32>
    %9 = tpu.matmul %6, %7, %cst_4 {dimension_numbers = #tpu.dot_dimension_numbers<[2], [2], [1], [1], [0, 0, 0, 1, 1, 1], [0], [0]>} : vector<8x16x8xf32>, vector<8x16x8xf32>, vector<8x16x16xf32> -> vector<8x16x16xf32>
    "tpu.trace_stop"() : () -> ()
    %cst_5 = arith.constant dense<0xFF800000> : vector<8x16xf32>
    %10 = vector.multi_reduction <maximumf>, %9, %cst_5 [1] : vector<8x16x16xf32> to vector<8x16xf32>
    %11 = vector.shape_cast %10 : vector<8x16xf32> to vector<8x1x16xf32>
    %12 = vector.broadcast %11 : vector<8x1x16xf32> to vector<8x16x16xf32>
    %13 = arith.subf %9, %12 : vector<8x16x16xf32>
    %14 = math.exp %13 : vector<8x16x16xf32>
    %cst_6 = arith.constant dense<0.000000e+00> : vector<8x16xf32>
    %15 = vector.multi_reduction <add>, %14, %cst_6 [1] : vector<8x16x16xf32> to vector<8x16xf32>
    %16 = vector.shape_cast %15 : vector<8x16xf32> to vector<8x1x16xf32>
    %17 = vector.broadcast %16 : vector<8x1x16xf32> to vector<8x16x16xf32>
    %18 = arith.divf %14, %17 : vector<8x16x16xf32>
    "tpu.trace_start"() <{level = 10 : i32, message = "bqk,bkd->bqd"}> : () -> ()
    %cst_7 = arith.constant dense<0.000000e+00> : vector<8x16x32xf32>
    %19 = tpu.matmul %18, %8, %cst_7 {dimension_numbers = #tpu.dot_dimension_numbers<[2], [1], [1], [2], [0, 0, 0, 1, 1, 2], [0], [0]>} : vector<8x16x16xf32>, vector<8x16x32xf32>, vector<8x16x32xf32> -> vector<8x16x32xf32>
    "tpu.trace_stop"() : () -> ()
    %20 = vector.extract_strided_slice %5 {offsets = [0, 0, 8], sizes = [8, 16, 8], strides = [1, 1, 1]} : vector<8x16x384xf32> to vector<8x16x8xf32>
    %21 = vector.extract_strided_slice %5 {offsets = [0, 0, 136], sizes = [8, 16, 8], strides = [1, 1, 1]} : vector<8x16x384xf32> to vector<8x16x8xf32>
    %22 = vector.extract_strided_slice %5 {offsets = [0, 0, 288], sizes = [8, 16, 32], strides = [1, 1, 1]} : vector<8x16x384xf32> to vector<8x16x32xf32>
    "tpu.trace_start"() <{level = 10 : i32, message = "bqd,bkd->bqk"}> : () -> ()
    %cst_8 = arith.constant dense<0.000000e+00> : vector<8x16x16xf32>
    %23 = tpu.matmul %20, %21, %cst_8 {dimension_numbers = #tpu.dot_dimension_numbers<[2], [2], [1], [1], [0, 0, 0, 1, 1, 1], [0], [0]>} : vector<8x16x8xf32>, vector<8x16x8xf32>, vector<8x16x16xf32> -> vector<8x16x16xf32>
    "tpu.trace_stop"() : () -> ()
    %cst_9 = arith.constant dense<0xFF800000> : vector<8x16xf32>
    %24 = vector.multi_reduction <maximumf>, %23, %cst_9 [1] : vector<8x16x16xf32> to vector<8x16xf32>
    %25 = vector.shape_cast %24 : vector<8x16xf32> to vector<8x1x16xf32>
    %26 = vector.broadcast %25 : vector<8x1x16xf32> to vector<8x16x16xf32>
    %27 = arith.subf %23, %26 : vector<8x16x16xf32>
    %28 = math.exp %27 : vector<8x16x16xf32>
    %cst_10 = arith.constant dense<0.000000e+00> : vector<8x16xf32>
    %29 = vector.multi_reduction <add>, %28, %cst_10 [1] : vector<8x16x16xf32> to vector<8x16xf32>
    %30 = vector.shape_cast %29 : vector<8x16xf32> to vector<8x1x16xf32>
    %31 = vector.broadcast %30 : vector<8x1x16xf32> to vector<8x16x16xf32>
    %32 = arith.divf %28, %31 : vector<8x16x16xf32>
    "tpu.trace_start"() <{level = 10 : i32, message = "bqk,bkd->bqd"}> : () -> ()
    %cst_11 = arith.constant dense<0.000000e+00> : vector<8x16x32xf32>
    %33 = tpu.matmul %32, %22, %cst_11 {dimension_numbers = #tpu.dot_dimension_numbers<[2], [1], [1], [2], [0, 0, 0, 1, 1, 2], [0], [0]>} : vector<8x16x16xf32>, vector<8x16x32xf32>, vector<8x16x32xf32> -> vector<8x16x32xf32>
    "tpu.trace_stop"() : () -> ()
    %34 = arith.addf %19, %33 : vector<8x16x32xf32>
    %35 = vector.extract_strided_slice %5 {offsets = [0, 0, 16], sizes = [8, 16, 8], strides = [1, 1, 1]} : vector<8x16x384xf32> to vector<8x16x8xf32>
    %36 = vector.extract_strided_slice %5 {offsets = [0, 0, 144], sizes = [8, 16, 8], strides = [1, 1, 1]} : vector<8x16x384xf32> to vector<8x16x8xf32>
    %37 = vector.extract_strided_slice %5 {offsets = [0, 0, 320], sizes = [8, 16, 32], strides = [1, 1, 1]} : vector<8x16x384xf32> to vector<8x16x32xf32>
    "tpu.trace_start"() <{level = 10 : i32, message = "bqd,bkd->bqk"}> : () -> ()
    %cst_12 = arith.constant dense<0.000000e+00> : vector<8x16x16xf32>
    %38 = tpu.matmul %35, %36, %cst_12 {dimension_numbers = #tpu.dot_dimension_numbers<[2], [2], [1], [1], [0, 0, 0, 1, 1, 1], [0], [0]>} : vector<8x16x8xf32>, vector<8x16x8xf32>, vector<8x16x16xf32> -> vector<8x16x16xf32>
    "tpu.trace_stop"() : () -> ()
    %cst_13 = arith.constant dense<0xFF800000> : vector<8x16xf32>
    %39 = vector.multi_reduction <maximumf>, %38, %cst_13 [1] : vector<8x16x16xf32> to vector<8x16xf32>
    %40 = vector.shape_cast %39 : vector<8x16xf32> to vector<8x1x16xf32>
    %41 = vector.broadcast %40 : vector<8x1x16xf32> to vector<8x16x16xf32>
    %42 = arith.subf %38, %41 : vector<8x16x16xf32>
    %43 = math.exp %42 : vector<8x16x16xf32>
    %cst_14 = arith.constant dense<0.000000e+00> : vector<8x16xf32>
    %44 = vector.multi_reduction <add>, %43, %cst_14 [1] : vector<8x16x16xf32> to vector<8x16xf32>
    %45 = vector.shape_cast %44 : vector<8x16xf32> to vector<8x1x16xf32>
    %46 = vector.broadcast %45 : vector<8x1x16xf32> to vector<8x16x16xf32>
    %47 = arith.divf %43, %46 : vector<8x16x16xf32>
    "tpu.trace_start"() <{level = 10 : i32, message = "bqk,bkd->bqd"}> : () -> ()
    %cst_15 = arith.constant dense<0.000000e+00> : vector<8x16x32xf32>
    %48 = tpu.matmul %47, %37, %cst_15 {dimension_numbers = #tpu.dot_dimension_numbers<[2], [1], [1], [2], [0, 0, 0, 1, 1, 2], [0], [0]>} : vector<8x16x16xf32>, vector<8x16x32xf32>, vector<8x16x32xf32> -> vector<8x16x32xf32>
    "tpu.trace_stop"() : () -> ()
    %49 = arith.addf %34, %48 : vector<8x16x32xf32>
    %50 = vector.extract_strided_slice %5 {offsets = [0, 0, 24], sizes = [8, 16, 8], strides = [1, 1, 1]} : vector<8x16x384xf32> to vector<8x16x8xf32>
    %51 = vector.extract_strided_slice %5 {offsets = [0, 0, 152], sizes = [8, 16, 8], strides = [1, 1, 1]} : vector<8x16x384xf32> to vector<8x16x8xf32>
    %52 = vector.extract_strided_slice %5 {offsets = [0, 0, 352], sizes = [8, 16, 32], strides = [1, 1, 1]} : vector<8x16x384xf32> to vector<8x16x32xf32>
    "tpu.trace_start"() <{level = 10 : i32, message = "bqd,bkd->bqk"}> : () -> ()
    %cst_16 = arith.constant dense<0.000000e+00> : vector<8x16x16xf32>
    %53 = tpu.matmul %50, %51, %cst_16 {dimension_numbers = #tpu.dot_dimension_numbers<[2], [2], [1], [1], [0, 0, 0, 1, 1, 1], [0], [0]>} : vector<8x16x8xf32>, vector<8x16x8xf32>, vector<8x16x16xf32> -> vector<8x16x16xf32>
    "tpu.trace_stop"() : () -> ()
    %cst_17 = arith.constant dense<0xFF800000> : vector<8x16xf32>
    %54 = vector.multi_reduction <maximumf>, %53, %cst_17 [1] : vector<8x16x16xf32> to vector<8x16xf32>
    %55 = vector.shape_cast %54 : vector<8x16xf32> to vector<8x1x16xf32>
    %56 = vector.broadcast %55 : vector<8x1x16xf32> to vector<8x16x16xf32>
    %57 = arith.subf %53, %56 : vector<8x16x16xf32>
    %58 = math.exp %57 : vector<8x16x16xf32>
    %cst_18 = arith.constant dense<0.000000e+00> : vector<8x16xf32>
    %59 = vector.multi_reduction <add>, %58, %cst_18 [1] : vector<8x16x16xf32> to vector<8x16xf32>
    %60 = vector.shape_cast %59 : vector<8x16xf32> to vector<8x1x16xf32>
    %61 = vector.broadcast %60 : vector<8x1x16xf32> to vector<8x16x16xf32>
    %62 = arith.divf %58, %61 : vector<8x16x16xf32>
    "tpu.trace_start"() <{level = 10 : i32, message = "bqk,bkd->bqd"}> : () -> ()
    %cst_19 = arith.constant dense<0.000000e+00> : vector<8x16x32xf32>
    %63 = tpu.matmul %62, %52, %cst_19 {dimension_numbers = #tpu.dot_dimension_numbers<[2], [1], [1], [2], [0, 0, 0, 1, 1, 2], [0], [0]>} : vector<8x16x16xf32>, vector<8x16x32xf32>, vector<8x16x32xf32> -> vector<8x16x32xf32>
    "tpu.trace_stop"() : () -> ()
    %64 = arith.addf %49, %63 : vector<8x16x32xf32>
    %65 = arith.addf %64, %1 : vector<8x16x32xf32>
    %cst_20 = arith.constant dense<0.000000e+00> : vector<8x16xf32>
    %66 = vector.multi_reduction <add>, %65, %cst_20 [2] : vector<8x16x32xf32> to vector<8x16xf32>
    %67 = vector.shape_cast %66 : vector<8x16xf32> to vector<8x16x1xf32>
    %cst_21 = arith.constant 3.200000e+01 : f32
    %68 = vector.broadcast %cst_21 : f32 to vector<8x16x1xf32>
    %69 = arith.divf %67, %68 : vector<8x16x1xf32>
    %70 = vector.broadcast %69 : vector<8x16x1xf32> to vector<8x16x32xf32>
    %71 = arith.subf %65, %70 : vector<8x16x32xf32>
    %72 = arith.mulf %71, %71 : vector<8x16x32xf32>
    %cst_22 = arith.constant dense<0.000000e+00> : vector<8x16xf32>
    %73 = vector.multi_reduction <add>, %72, %cst_22 [2] : vector<8x16x32xf32> to vector<8x16xf32>
    %74 = vector.shape_cast %73 : vector<8x16xf32> to vector<8x16x1xf32>
    %cst_23 = arith.constant 3.200000e+01 : f32
    %75 = vector.broadcast %cst_23 : f32 to vector<8x16x1xf32>
    %76 = arith.divf %74, %75 : vector<8x16x1xf32>
    %77 = vector.broadcast %69 : vector<8x16x1xf32> to vector<8x16x32xf32>
    %78 = arith.subf %65, %77 : vector<8x16x32xf32>
    %cst_24 = arith.constant 9.99999974E-6 : f32
    %79 = vector.broadcast %cst_24 : f32 to vector<8x16x1xf32>
    %80 = arith.addf %76, %79 : vector<8x16x1xf32>
    %81 = math.rsqrt %80 : vector<8x16x1xf32>
    %82 = vector.broadcast %81 : vector<8x16x1xf32> to vector<8x16x32xf32>
    %83 = arith.mulf %78, %82 : vector<8x16x32xf32>
    %c0_25 = arith.constant 0 : index
    %c0_26 = arith.constant 0 : index
    %84 = vector.load %arg3[%c0_25, %c0_26] : memref<1x32xf32, #tpu.memory_space<vmem>>, vector<1x32xf32>
    %85 = vector.shape_cast %84 : vector<1x32xf32> to vector<1x1x32xf32>
    %86 = vector.broadcast %85 : vector<1x1x32xf32> to vector<8x16x32xf32>
    %87 = arith.mulf %83, %86 : vector<8x16x32xf32>
    %c0_27 = arith.constant 0 : index
    %c0_28 = arith.constant 0 : index
    %88 = vector.load %arg4[%c0_27, %c0_28] : memref<1x32xf32, #tpu.memory_space<vmem>>, vector<1x32xf32>
    %89 = vector.shape_cast %88 : vector<1x32xf32> to vector<1x1x32xf32>
    %90 = vector.broadcast %89 : vector<1x1x32xf32> to vector<8x16x32xf32>
    %91 = arith.addf %87, %90 : vector<8x16x32xf32>
    %c0_29 = arith.constant 0 : index
    %c0_30 = arith.constant 0 : index
    %c0_31 = arith.constant 0 : index
    %92 = vector.load %arg5[%c0_29, %c0_30, %c0_31] : memref<8x16x32xf32, #tpu.memory_space<vmem>>, vector<8x16x32xf32>
    tpu.vector_store %arg5[%c0_29, %c0_30, %c0_31], %91 {strides = array<i32>} : memref<8x16x32xf32, #tpu.memory_space<vmem>>, vector<8x16x32xf32>,
    return
  }
  func.func @transform_0(%arg0: i32) -> (i32, i32, i32) {
    %c0_i32 = arith.constant 0 : i32
    %c0_i32_0 = arith.constant 0 : i32
    %c0_i32_1 = arith.constant 0 : i32
    return %arg0, %c0_i32, %c0_i32_0 : i32, i32, i32
  }
  func.func @transform_1(%arg0: i32) -> (i32, i32) {
    %c0_i32 = arith.constant 0 : i32
    %c0_i32_0 = arith.constant 0 : i32
    %c0_i32_1 = arith.constant 0 : i32
    return %c0_i32, %c0_i32_0 : i32, i32
  }
  func.func @transform_2(%arg0: i32) -> (i32, i32) {
    %c0_i32 = arith.constant 0 : i32
    %c0_i32_0 = arith.constant 0 : i32
    %c0_i32_1 = arith.constant 0 : i32
    return %c0_i32, %c0_i32_0 : i32, i32
  }
  func.func @transform_3(%arg0: i32) -> (i32, i32) {
    %c0_i32 = arith.constant 0 : i32
    %c0_i32_0 = arith.constant 0 : i32
    %c0_i32_1 = arith.constant 0 : i32
    return %c0_i32, %c0_i32_0 : i32, i32
  }
  func.func @transform_4(%arg0: i32) -> (i32, i32, i32) {
    %c0_i32 = arith.constant 0 : i32
    %c0_i32_0 = arith.constant 0 : i32
    %c0_i32_1 = arith.constant 0 : i32
    return %arg0, %c0_i32, %c0_i32_0 : i32, i32, i32
  }
}

</mosaic_0001>

<bundles_post_ra>
// kernel: tpu_custom_call.1
= control target key start
LH: loop header
LB: loop body
LE: loop exit
PB: predicated region body
PF: predicated region fallthrough
CT: control target
= control target key end

     0   :  { %9 = vsyncpa [#allocation3], 0  ;;  %s7480_s0 = inlined_call_operand.hbm [shape: f32[8,16,96], index: 0, kind: input, shape index: {}]   ;;  %s7481_s1 = inlined_call_operand.hbm [shape: f32[96,384], index: 1, kind: input, shape index: {}]   ;;  %s7482_s2 = inlined_call_operand.vmem [shape: f32[1,32], index: 2, kind: input, shape index: {}]   ;;  %s7483_s3 = inlined_call_operand.vmem [shape: f32[1,32], index: 3, kind: input, shape index: {}]   ;;  %s7484_s4 = inlined_call_operand.hbm [shape: f32[8,16,32], index: 4, kind: output, shape index: {}]  }
   0x1   :  { %10 = vsyncpa [#allocation6], 0 }
   0x2   :  { %11 = vsyncpa [#allocation4], 0  ;;  %s16_s17 = sshll.u32 %s7480_s0, 4  ;;  %s5114_s18 = smov [#allocation2]   ;;  %s17_s17 = int_to_ptr.hbm [resolvable:$true] %s16_s17 }
   0x3   :  { %s18_s19 = sshll.u32 %s5114_s18, 4  ;;  %s29_s22 = sshll.u32 %s7481_s1, 4  ;;  %s19_s19 = int_to_ptr.vmem [resolvable:$true] %s18_s19  ;;  %s30_s22 = int_to_ptr.hbm [resolvable:$true] %s29_s22 }
   0x4   :  { %s5115_s23 = smov 128   ;;  %s5116_s24 = smov 8  }
   0x5   :  { %24 = dma.hbm_to_vmem [thread:$0]  %s17_s17, 2048, %s19_s19, [#allocation3], %s5115_s23, %s5115_s23, %s5116_s24  }
   0x6   :  { %s5117_s25 = smov [#allocation5]   ;;  %s5118_s27 = smov 384  }
   0x7   :  { %s31_s26 = sshll.u32 %s5117_s25, 4  ;;  %s5119_s0 = smov 24   ;;  %s32_s26 = int_to_ptr.vmem [resolvable:$true] %s31_s26 }
   0x8   :  { %37 = dma.hbm_to_vmem [thread:$0]  %s30_s22, 4608, %s32_s26, [#allocation6], %s5118_s27, %s5118_s27, %s5119_s0  }
   0x9   :  { %5108 = dma.done.wait [#allocation3], 2048  }
   0xa   :  { %5109 = vsyncadd [#allocation3], 4294965248 }
   0xb   :  { %5110 = dma.done.wait [#allocation6], 4608  }
   0xc   :  { %5111 = vsyncadd [#allocation6], 4294962688  ;;  %v99_v0 = vld [vmem:[#allocation5 + $0x108] sm:$0xff]  ;;  %v100_v1 = vld [vmem:[#allocation5 + $0x110] sm:$0xff]  ;;  %vm102_vm0 = vcmask 785408   ;;  %s5120_s1 = smov 120  }
   0xd   :  { %v96_v2 = vld [vmem:[#allocation5 + $0xf0] sm:$0xff]  ;;  %155 = vmatpush.msra.mxu0 %v99_v0  ;;  %220 = vmatpush.msra.mxu1 %v100_v1  ;;  %v97_v3 = vld [vmem:[#allocation5 + $0xf8] sm:$0xff]  ;;  %v94_v5 = vld [vmem:[#allocation5 + $0xe0] sm:$0xff]  ;;  %vm346_vm1 = vcmask 64512   ;;  %s5121_s28 = smov 96   ;;  %s5122_s29 = smov 112  }
   0xe   :  { %v93_v4 = vld [vmem:[#allocation5 + $0xd8] sm:$0xff]  ;;  %v90_v6 = vld [vmem:[#allocation5 + $0xc0] sm:$0xff]  ;;  %v91_v7 = vld [vmem:[#allocation5 + $0xc8] sm:$0xff]  ;;  %vm627_vm2 = vcmask 130048   ;;  %s5123_s30 = smov 64   ;;  %s5124_s5 = smov 104  }
   0xf   :  { %156 = vmatpush.msra.mxu0 %v96_v2  ;;  %221 = vmatpush.msra.mxu1 %v97_v3  ;;  %v87_v8 = vld [vmem:[#allocation5 + $0xa8] sm:$0xff]  ;;  %v88_v9 = vld [vmem:[#allocation5 + $0xb0] sm:$0xff]  ;;  %v85_v11 = vld [vmem:[#allocation5 + $0x98] sm:$0xff]  ;;  %s5125_s6 = smov 32   ;;  %s4402_s13 = sshll.u32 %s7484_s4, 4  ;;  %s4403_s13 = int_to_ptr.hbm [resolvable:$true] %s4402_s13 }
  0x10   :  { %v84_v10 = vld [vmem:[#allocation5 + $0x90] sm:$0xff]  ;;  %v101_v12 = vld [vmem:[#allocation5 + $0x118] sm:$0xff]  ;;  %v98_v13 = vld [vmem:[#allocation5 + $0x100] sm:$0xff] }
  0x11   :  { %157 = vmatpush.msra.mxu0 %v93_v4  ;;  %222 = vmatpush.msra.mxu1 %v94_v5  ;;  %v81_v14 = vld [vmem:[#allocation5 + $0x78] sm:$0xff]  ;;  %v82_v15 = vld [vmem:[#allocation5 + $0x80] sm:$0xff]  ;;  %v95_v17 = vld [vmem:[#allocation5 + $0xe8] sm:$0xff] }
  0x12   :  { %285 = vmatpush.msra.mxu2 %v101_v12  ;;  %v78_v16 = vld [vmem:[#allocation5 + $0x60] sm:$0xff]  ;;  %v79_v18 = vld [vmem:[#allocation5 + $0x68] sm:$0xff]  ;;  %v92_v19 = vld [vmem:[#allocation5 + $0xd0] sm:$0xff] }
  0x13   :  { %158 = vmatpush.msra.mxu0 %v90_v6  ;;  %223 = vmatpush.msra.mxu1 %v91_v7  ;;  %v75_v20 = vld [vmem:[#allocation5 + $0x48] sm:$0xff]  ;;  %v76_v21 = vld [vmem:[#allocation5 + $0x50] sm:$0xff]  ;;  %v89_v22 = vld [vmem:[#allocation5 + $0xb8] sm:$0xff] }
  0x14   :  { %286 = vmatpush.msra.mxu2 %v98_v13  ;;  %v72_v23 = vld [vmem:[#allocation5 + $0x30] sm:$0xff]  ;;  %v73_v24 = vld [vmem:[#allocation5 + $0x38] sm:$0xff]  ;;  %v86_v25 = vld [vmem:[#allocation5 + $0xa0] sm:$0xff] }
  0x15   :  { %159 = vmatpush.msra.mxu0 %v87_v8  ;;  %224 = vmatpush.msra.mxu1 %v88_v9  ;;  %v69_v26 = vld [vmem:[#allocation5 + $0x18] sm:$0xff]  ;;  %v70_v27 = vld [vmem:[#allocation5 + $0x20] sm:$0xff]  ;;  %v83_v28 = vld [vmem:[#allocation5 + $0x88] sm:$0xff] }
  0x16   :  { %287 = vmatpush.msra.mxu2 %v95_v17  ;;  %v66_v29 = vld [vmem:[#allocation5] sm:$0xff]  ;;  %v67_v30 = vld [vmem:[#allocation5 + $0x8] sm:$0xff]  ;;  %v80_v32 = vld [vmem:[#allocation5 + $0x70] sm:$0xff] }
  0x17   :  { %160 = vmatpush.msra.mxu0 %v84_v10  ;;  %225 = vmatpush.msra.mxu1 %v85_v11  ;;  %v50_v31 = vld [vmem:[#allocation2] sm:$0xff]  ;;  %v77_v33 = vld [vmem:[#allocation5 + $0x58] sm:$0xff]  ;;  %v71_v35 = vld [vmem:[#allocation5 + $0x28] sm:$0xff] }
  0x18   :  { %288 = vmatpush.msra.mxu2 %v92_v19  ;;  %v74_v34 = vld [vmem:[#allocation5 + $0x40] sm:$0xff]  ;;  %v51_v36 = vld [vmem:[#allocation2 + $0x8] sm:$0xff]  ;;  %v68_v37 = vld [vmem:[#allocation5 + $0x10] sm:$0xff] }
  0x19   :  { %161 = vmatpush.msra.mxu0 %v81_v14  ;;  %226 = vmatpush.msra.mxu1 %v82_v15  ;;  %v52_v38 = vld [vmem:[#allocation2 + $0x10] sm:$0xff]  ;;  %v53_v39 = vld [vmem:[#allocation2 + $0x18] sm:$0xff]  ;;  %v54_v40 = vld [vmem:[#allocation2 + $0x20] sm:$0xff] }
  0x1a   :  { %289 = vmatpush.msra.mxu2 %v89_v22  ;;  %v55_v41 = vld [vmem:[#allocation2 + $0x28] sm:$0xff]  ;;  %v56_v42 = vld [vmem:[#allocation2 + $0x30] sm:$0xff]  ;;  %v57_v43 = vld [vmem:[#allocation2 + $0x38] sm:$0xff] }
  0x1b   :  { %162 = vmatpush.msra.mxu0 %v78_v16  ;;  %227 = vmatpush.msra.mxu1 %v79_v18  ;;  %v58_v44 = vld [vmem:[#allocation2 + $0x40] sm:$0xff]  ;;  %v59_v45 = vld [vmem:[#allocation2 + $0x48] sm:$0xff]  ;;  %v60_v46 = vld [vmem:[#allocation2 + $0x50] sm:$0xff] }
  0x1c   :  { %290 = vmatpush.msra.mxu2 %v86_v25  ;;  %v61_v47 = vld [vmem:[#allocation2 + $0x58] sm:$0xff]  ;;  %v62_v48 = vld [vmem:[#allocation2 + $0x60] sm:$0xff]  ;;  %v63_v49 = vld [vmem:[#allocation2 + $0x68] sm:$0xff] }
  0x1d   :  { %163 = vmatpush.msra.mxu0 %v75_v20  ;;  %228 = vmatpush.msra.mxu1 %v76_v21  ;;  %v64_v50 = vld [vmem:[#allocation2 + $0x70] sm:$0xff]  ;;  %v65_v51 = vld [vmem:[#allocation2 + $0x78] sm:$0xff] }
  0x1e   :  { %291 = vmatpush.msra.mxu2 %v83_v28 }
  0x1f   :  { %164 = vmatpush.msra.mxu0 %v72_v23  ;;  %229 = vmatpush.msra.mxu1 %v73_v24 }
  0x20   :  { %292 = vmatpush.msra.mxu2 %v80_v32 }
  0x21   :  { %165 = vmatpush.msra.mxu0 %v69_v26  ;;  %230 = vmatpush.msra.mxu1 %v70_v27 }
  0x22   :  { %293 = vmatpush.msra.mxu2 %v77_v33 }
  0x23   :  { %166 = vmatpush.msra.mxu0 %v66_v29  ;;  %231 = vmatpush.msra.mxu1 %v67_v30 }
  0x24   :  { %4416 = vmatmul.msk.f32.vlgmr.msra.gmra.mxu0 %vm102_vm0, %v50_v31  ;;  %4432 = vmatmul.msk.f32.vlgmr.msra.gmra.mxu1 %vm102_vm0, %v50_v31 }
  0x25   :  { %294 = vmatpush.msra.mxu2 %v74_v34 }
  0x27   :  { %295 = vmatpush.msra.mxu2 %v71_v35 }
  0x29   :  { %296 = vmatpush.msra.mxu2 %v68_v37 }
  0x2a   :  { %4448 = vmatmul.msk.f32.vlgmr.msra.gmra.mxu2 %vm102_vm0, %v50_v31 }
  0x2c   :  { %4417 = vmatmul.msk.f32.gmra.mxu0 %vm102_vm0, %v51_v36  ;;  %4433 = vmatmul.msk.f32.gmra.mxu1 %vm102_vm0, %v51_v36 }
  0x32   :  { %4449 = vmatmul.msk.f32.gmra.mxu2 %vm102_vm0, %v51_v36 }
  0x34   :  { %4418 = vmatmul.msk.f32.gmra.mxu0 %vm102_vm0, %v52_v38  ;;  %4434 = vmatmul.msk.f32.gmra.mxu1 %vm102_vm0, %v52_v38 }
  0x3a   :  { %4450 = vmatmul.msk.f32.gmra.mxu2 %vm102_vm0, %v52_v38 }
  0x3c   :  { %4419 = vmatmul.msk.f32.gmra.mxu0 %vm102_vm0, %v53_v39  ;;  %4435 = vmatmul.msk.f32.gmra.mxu1 %vm102_vm0, %v53_v39 }
  0x42   :  { %4451 = vmatmul.msk.f32.gmra.mxu2 %vm102_vm0, %v53_v39 }
  0x44   :  { %4420 = vmatmul.msk.f32.gmra.mxu0 %vm102_vm0, %v54_v40  ;;  %4436 = vmatmul.msk.f32.gmra.mxu1 %vm102_vm0, %v54_v40 }
  0x4a   :  { %4452 = vmatmul.msk.f32.gmra.mxu2 %vm102_vm0, %v54_v40 }
  0x4c   :  { %4421 = vmatmul.msk.f32.gmra.mxu0 %vm102_vm0, %v55_v41  ;;  %4437 = vmatmul.msk.f32.gmra.mxu1 %vm102_vm0, %v55_v41 }
  0x52   :  { %4453 = vmatmul.msk.f32.gmra.mxu2 %vm102_vm0, %v55_v41 }
  0x54   :  { %4422 = vmatmul.msk.f32.gmra.mxu0 %vm102_vm0, %v56_v42  ;;  %4438 = vmatmul.msk.f32.gmra.mxu1 %vm102_vm0, %v56_v42 }
  0x5a   :  { %4454 = vmatmul.msk.f32.gmra.mxu2 %vm102_vm0, %v56_v42 }
  0x5c   :  { %4423 = vmatmul.msk.f32.gmra.mxu0 %vm102_vm0, %v57_v43  ;;  %4439 = vmatmul.msk.f32.gmra.mxu1 %vm102_vm0, %v57_v43 }
  0x62   :  { %4455 = vmatmul.msk.f32.gmra.mxu2 %vm102_vm0, %v57_v43 }
  0x64   :  { %4424 = vmatmul.msk.f32.gmra.mxu0 %vm102_vm0, %v58_v44  ;;  %4440 = vmatmul.msk.f32.gmra.mxu1 %vm102_vm0, %v58_v44 }
  0x6a   :  { %4456 = vmatmul.msk.f32.gmra.mxu2 %vm102_vm0, %v58_v44 }
  0x6c   :  { %4425 = vmatmul.msk.f32.gmra.mxu0 %vm102_vm0, %v59_v45  ;;  %4441 = vmatmul.msk.f32.gmra.mxu1 %vm102_vm0, %v59_v45 }
  0x72   :  { %4457 = vmatmul.msk.f32.gmra.mxu2 %vm102_vm0, %v59_v45 }
  0x74   :  { %4426 = vmatmul.msk.f32.gmra.mxu0 %vm102_vm0, %v60_v46  ;;  %4442 = vmatmul.msk.f32.gmra.mxu1 %vm102_vm0, %v60_v46 }
  0x7a   :  { %4458 = vmatmul.msk.f32.gmra.mxu2 %vm102_vm0, %v60_v46 }
  0x7c   :  { %4427 = vmatmul.msk.f32.gmra.mxu0 %vm102_vm0, %v61_v47  ;;  %4443 = vmatmul.msk.f32.gmra.mxu1 %vm102_vm0, %v61_v47 }
  0x82   :  { %4459 = vmatmul.msk.f32.gmra.mxu2 %vm102_vm0, %v61_v47 }
  0x84   :  { %4428 = vmatmul.msk.f32.gmra.mxu0 %vm102_vm0, %v62_v48  ;;  %4444 = vmatmul.msk.f32.gmra.mxu1 %vm102_vm0, %v62_v48 }
  0x8a   :  { %4460 = vmatmul.msk.f32.gmra.mxu2 %vm102_vm0, %v62_v48 }
  0x8c   :  { %4429 = vmatmul.msk.f32.gmra.mxu0 %vm102_vm0, %v63_v49  ;;  %4445 = vmatmul.msk.f32.gmra.mxu1 %vm102_vm0, %v63_v49 }
  0x92   :  { %4461 = vmatmul.msk.f32.gmra.mxu2 %vm102_vm0, %v63_v49 }
  0x94   :  { %4430 = vmatmul.msk.f32.gmra.mxu0 %vm102_vm0, %v64_v50  ;;  %4446 = vmatmul.msk.f32.gmra.mxu1 %vm102_vm0, %v64_v50 }
  0x9a   :  { %4462 = vmatmul.msk.f32.gmra.mxu2 %vm102_vm0, %v64_v50 }
  0x9c   :  { %4447 = vmatmul.msk.f32.gmra.mxu1 %vm102_vm0, %v65_v51  ;;  %4431 = vmatmul.msk.f32.gmra.mxu0 %vm102_vm0, %v65_v51 }
  0xa1   :  { %v5209_v52 = vpop.f32.mrf.mxu0  ;;  %v5211_v53 = vpop.f32.mrf.mxu1 }
  0xa2   :  { %952 = vrot.lane.b32.xlu0 %v5211_v53, %s5120_s1  ;;  %948 = vrot.lane.b32.xlu1 %v5209_v52, %s5120_s1 }
  0xa3   :  { %4463 = vmatmul.msk.f32.gmra.mxu2 %vm102_vm0, %v65_v51 }
  0xa9   :  { %v5218_v54 = vpop.f32.mrf.mxu0  ;;  %v5220_v55 = vpop.f32.mrf.mxu1 }
  0xaa   :  { %954 = vrot.lane.b32.xlu0 %v5220_v55, %s5120_s1  ;;  %4464 = vmatpush.xpose.msk.msra.mxu3 %vm346_vm1, %v5220_v55 }
  0xab   :  { %950 = vrot.lane.b32.xlu2 %v5218_v54, %s5120_s1 }
  0xad   :  { %v5236_v58 = vpop.f32.mrf.mxu2 }
  0xae   :  { %4465 = vmatpush.xpose.msk.msra.mxu3 %vm346_vm1, %v5211_v53 }
  0xb1   :  { %v5230_v56 = vpop.f32.mrf.mxu0  ;;  %v5232_v57 = vpop.f32.mrf.mxu1  ;;  %4466 = vmatmul.msk.f32.vlgmr.msra.gmra.mxu3 %vm346_vm1, %v5209_v52 }
  0xb3   :  { %991 = vrot.lane.b32.xlu2 %v5232_v57, %s5120_s1 }
  0xb5   :  { %v5250_v61 = vpop.f32.mrf.mxu2 }
  0xb9   :  { %v5240_v59 = vpop.f32.mrf.mxu0  ;;  %v5242_v60 = vpop.f32.mrf.mxu1  ;;  %4467 = vmatmul.msk.f32.gmra.mxu3 %vm346_vm1, %v5218_v54 }
  0xba   :  { %4468 = vmatpush.xpose.msk.msrb.mxu3 %vm346_vm1, %v5242_v60  ;;  %993 = vrot.lane.b32.xlu1 %v5242_v60, %s5120_s1 }
  0xbb   :  { %989 = vrot.lane.b32.xlu0 %v5240_v59, %s5120_s1 }
  0xbd   :  { %v5262_v0 = vpop.f32.mrf.mxu2 }
  0xbe   :  { %4469 = vmatpush.xpose.msk.msrb.mxu3 %vm346_vm1, %v5232_v57  ;;  %7516 = vst [vmem:[#allocation11_spill] sm:$0xff] %v5262_v0 }
  0xc1   :  { %v5256_v62 = vpop.f32.mrf.mxu0  ;;  %v5258_v63 = vpop.f32.mrf.mxu1  ;;  %4470 = vmatmul.msk.f32.vlgmr.msrb.gmra.mxu3 %vm346_vm1, %v5230_v56 }
  0xc5   :  { %v5274_v3 = vpop.f32.mrf.mxu2 }
  0xc6   :  { %7517 = vst [vmem:[#allocation12_spill] sm:$0xff] %v5274_v3 }
  0xc9   :  { %v5264_v1 = vpop.f32.mrf.mxu0  ;;  %v5266_v2 = vpop.f32.mrf.mxu1  ;;  %4471 = vmatmul.msk.f32.gmra.mxu3 %vm346_vm1, %v5240_v59 }
  0xca   :  { %4472 = vmatpush.xpose.msk.msra.mxu3 %vm346_vm1, %v5266_v2  ;;  %1032 = vrot.lane.b32.xlu2 %v5266_v2, %s5120_s1 }
  0xcd   :  { %v5288_v6 = vpop.f32.mrf.mxu2 }
  0xce   :  { %4473 = vmatpush.xpose.msk.msra.mxu3 %vm346_vm1, %v5258_v63  ;;  %7518 = vst [vmem:[#allocation13_spill] sm:$0xff] %v5288_v6 }
  0xd1   :  { %v5278_v4 = vpop.f32.mrf.mxu0  ;;  %v5280_v5 = vpop.f32.mrf.mxu1  ;;  %4474 = vmatmul.msk.f32.vlgmr.msra.gmra.mxu3 %vm346_vm1, %v5256_v62 }
  0xd2   :  { %1069 = vrot.lane.b32.xlu2 %v5280_v5, %s5120_s1  ;;  %1065 = vrot.lane.b32.xlu0 %v5278_v4, %s5120_s1 }
  0xd5   :  { %v5300_v9 = vpop.f32.mrf.mxu2 }
  0xd6   :  { %7519 = vst [vmem:[#allocation14_spill] sm:$0xff] %v5300_v9  ;;  %v5453_v47 = vpack.i.bf16 %v5300_v9, %v5274_v3 }
  0xd8   :  { %7534 = vst [vmem:[#allocation29_spill] sm:$0xff] %v5453_v47 }
  0xd9   :  { %v5290_v7 = vpop.f32.mrf.mxu1  ;;  %v5292_v8 = vpop.f32.mrf.mxu0  ;;  %4475 = vmatmul.msk.f32.gmra.mxu3 %vm346_vm1, %v5264_v1 }
  0xda   :  { %1071 = vrot.lane.b32.xlu1 %v5290_v7, %s5120_s1  ;;  %4476 = vmatpush.xpose.msk.msrb.mxu3 %vm346_vm1, %v5290_v7 }
  0xdd   :  { %v5312_v12 = vpop.f32.mrf.mxu2 }
  0xde   :  { %4477 = vmatpush.xpose.msk.msrb.mxu3 %vm346_vm1, %v5280_v5  ;;  %7520 = vst [vmem:[#allocation15_spill] sm:$0xff] %v5312_v12 }
  0xe1   :  { %v5304_v10 = vpop.f32.mrf.mxu1  ;;  %v5306_v11 = vpop.f32.mrf.mxu0  ;;  %4478 = vmatmul.msk.f32.vlgmr.msrb.gmra.mxu3 %vm346_vm1, %v5278_v4 }
  0xe2   :  { %1067 = vrot.lane.b32.xlu1 %v5292_v8, %s5120_s1  ;;  %1104 = vrot.lane.b32.xlu0 %v5306_v11, %s5120_s1 }
  0xe5   :  { %v5326_v15 = vpop.f32.mrf.mxu2 }
  0xe6   :  { %7521 = vst [vmem:[#allocation16_spill] sm:$0xff] %v5326_v15  ;;  %v5438_v43 = vpack.i.bf16 %v5326_v15, %v5250_v61 }
  0xe9   :  { %v5316_v13 = vpop.f32.mrf.mxu0  ;;  %v5318_v14 = vpop.f32.mrf.mxu1  ;;  %4479 = vmatmul.msk.f32.gmra.mxu3 %vm346_vm1, %v5292_v8 }
  0xea   :  { %1110 = vrot.lane.b32.xlu2 %v5318_v14, %s5120_s1  ;;  %4480 = vmatpush.xpose.msk.msra.mxu3 %vm346_vm1, %v5318_v14 }
  0xeb   :  { %1108 = vrot.lane.b32.xlu1 %v5304_v10, %s5120_s1 }
  0xed   :  { %v5338_v18 = vpop.f32.mrf.mxu2 }
  0xee   :  { %4481 = vmatpush.xpose.msk.msra.mxu3 %vm346_vm1, %v5304_v10  ;;  %7523 = vst [vmem:[#allocation18_spill] sm:$0xff] %v5338_v18 }
  0xf1   :  { %v5332_v16 = vpop.f32.mrf.mxu0  ;;  %v5334_v17 = vpop.f32.mrf.mxu1  ;;  %4482 = vmatmul.msk.f32.vlgmr.msra.gmra.mxu3 %vm346_vm1, %v5306_v11 }
  0xf2   :  { %7522 = vst [vmem:[#allocation17_spill] sm:$0xff] %v5332_v16 }
  0xf5   :  { %v5350_v21 = vpop.f32.mrf.mxu2 }
  0xf6   :  { %7525 = vst [vmem:[#allocation20_spill] sm:$0xff] %v5350_v21 }
  0xf9   :  { %v5340_v19 = vpop.f32.mrf.mxu0  ;;  %v5342_v20 = vpop.f32.mrf.mxu1  ;;  %4483 = vmatmul.msk.f32.gmra.mxu3 %vm346_vm1, %v5316_v13 }
  0xfa   :  { %7524 = vst [vmem:[#allocation19_spill] sm:$0xff] %v5340_v19  ;;  %4484 = vmatpush.xpose.msk.msrb.mxu3 %vm346_vm1, %v5342_v20 }
  0xfd   :  { %v5358_v24 = vpop.f32.mrf.mxu2 }
  0xfe   :  { %4485 = vmatpush.xpose.msk.msrb.mxu3 %vm346_vm1, %v5334_v17  ;;  %7526 = vst [vmem:[#allocation21_spill] sm:$0xff] %v5358_v24 }
 0x101   :  { %v5352_v22 = vpop.f32.mrf.mxu0  ;;  %v5354_v23 = vpop.f32.mrf.mxu1  ;;  %4486 = vmatmul.msk.f32.vlgmr.msrb.gmra.mxu3 %vm346_vm1, %v5332_v16 }
 0x105   :  { %v951_v29 = vpop.permute.xlu2 %950  ;;  %v5380_v30 = vpop.f32.mrf.mxu2 }
 0x106   :  { %7528 = vst [vmem:[#allocation23_spill] sm:$0xff] %v5380_v30 }
 0x109   :  { %v5360_v25 = vpop.f32.mrf.mxu0  ;;  %v5362_v26 = vpop.f32.mrf.mxu1  ;;  %4487 = vmatmul.msk.f32.gmra.mxu3 %vm346_vm1, %v5340_v19 }
 0x10a   :  { %7527 = vst [vmem:[#allocation22_spill] sm:$0xff] %v5360_v25  ;;  %4488 = vmatpush.xpose.msk.msra.mxu3 %vm346_vm1, %v5362_v26 }
 0x10d   :  { %v992_v33 = vpop.permute.xlu2 %991  ;;  %v5394_v34 = vpop.f32.mrf.mxu2 }
 0x10e   :  { %4489 = vmatpush.xpose.msk.msra.mxu3 %vm346_vm1, %v5354_v23  ;;  %7529 = vst [vmem:[#allocation24_spill] sm:$0xff] %v5394_v34 }
 0x111   :  { %v5370_v27 = vpop.f32.mrf.mxu0  ;;  %v5372_v28 = vpop.f32.mrf.mxu1  ;;  %4490 = vmatmul.msk.f32.vlgmr.msra.gmra.mxu3 %vm346_vm1, %v5352_v22 }
 0x112   :  { %1225 = vrot.lane.b32.xlu2 %v5372_v28, %s5120_s1  ;;  %1221 = vrot.lane.b32.xlu1 %v5370_v27, %s5120_s1 }
 0x114   :  { %v953_v31 = vpop.permute.xlu0 %952  ;;  %v949_v36 = vpop.permute.xlu1 %948 }
 0x115   :  { %v5411_v39 = vpop.f32.mrf.mxu2 }
 0x116   :  { %7531 = vst [vmem:[#allocation26_spill] sm:$0xff] %v5411_v39 }
 0x119   :  { %v5382_v32 = vpop.f32.mrf.mxu1  ;;  %4491 = vmatmul.msk.f32.gmra.mxu3 %vm346_vm1, %v5360_v25  ;;  %v5409_v38 = vpop.f32.mrf.mxu0 }
 0x11a   :  { %1227 = vrot.lane.b32.xlu0 %v5382_v32, %s5120_s1  ;;  %1106 = vrot.lane.b32.xlu2 %v5316_v13, %s5120_s1  ;;  %7530 = vst [vmem:[#allocation25_spill] sm:$0xff] %v5409_v38 }
 0x11b   :  { %4492 = vmatpush.xpose.msk.msrb.mxu3 %vm346_vm1, %v5382_v32  ;;  %1026 = vrot.lane.b32.xlu1 %v5256_v62, %s5120_s1 }
 0x11c   :  { %v955_v35 = vpop.permute.xlu0 %954 }
 0x11d   :  { %v5425_v41 = vpop.f32.mrf.mxu2 }
 0x11e   :  { %7532 = vst [vmem:[#allocation27_spill] sm:$0xff] %v5425_v41 }
 0x11f   :  { %4493 = vmatpush.xpose.msk.msrb.mxu3 %vm346_vm1, %v5372_v28 }
 0x122   :  { %4494 = vmatmul.msk.f32.vlgmr.msrb.gmra.mxu3 %vm346_vm1, %v5370_v27  ;;  %1030 = vrot.lane.b32.xlu0 %v5258_v63, %s5120_s1 }
 0x123   :  { %4496 = vmatpush.xpose.msk.msra.mxu3 %vm346_vm1, %v955_v35  ;;  %1028 = vrot.lane.b32.xlu2 %v5264_v1, %s5120_s1 }
 0x124   :  { %987 = vrot.lane.b32.xlu1 %v5230_v56, %s5120_s1  ;;  %v1033_v37 = vpop.permute.xlu2 %1032 }
 0x125   :  { %4504 = vmatpush.xpose.msk.msrb.mxu1 %vm346_vm1, %v1033_v37  ;;  %v5492_v37 = vpack.i.bf16 %v5425_v41, %v5338_v18 }
 0x126   :  { %v5447_v44 = vpop.f32.mrf.mxu2 }
 0x127   :  { %4497 = vmatpush.xpose.msk.msra.mxu3 %vm346_vm1, %v953_v31  ;;  %7533 = vst [vmem:[#allocation28_spill] sm:$0xff] %v5447_v44  ;;  %v5457_v48 = vpack.i.bf16 %v5447_v44, %v5350_v21  ;;  %v5475_v31 = vpack.i.bf16 %v5411_v39, %v5380_v30 }
 0x128   :  { %7535 = vst [vmem:[#allocation30_spill] sm:$0xff] %v5492_v37 }
 0x12a   :  { %4495 = vmatmul.msk.f32.gmra.mxu3 %vm346_vm1, %v5409_v38  ;;  %1223 = vrot.lane.b32.xlu0 %v5409_v38, %s5120_s1 }
 0x12b   :  { %1147 = vrot.lane.b32.xlu2 %v5334_v17, %s5120_s1 }
 0x12c   :  { %1188 = vrot.lane.b32.xlu1 %v5362_v26, %s5120_s1  ;;  %v994_v40 = vpop.permute.xlu1 %993  ;;  %v1070_v45 = vpop.permute.xlu2 %1069 }
 0x12d   :  { %4500 = vmatpush.xpose.msk.msrb.mxu0 %vm346_vm1, %v994_v40  ;;  %4656 = vmatpush.xpose.msk.msrb.mxu3 %vm346_vm1, %v994_v40  ;;  %v990_v49 = vpop.permute.xlu0 %989 }
 0x131   :  { %4501 = vmatpush.xpose.msk.msrb.mxu0 %vm346_vm1, %v992_v33  ;;  %4657 = vmatpush.xpose.msk.msrb.mxu3 %vm346_vm1, %v992_v33  ;;  %v5479_v33 = vpack.i.bf16 %v5288_v6, %v5262_v0 }
 0x132   :  { %4498 = vmatmul.msk.f32.vlgmr.msra.gmra.mxu3 %vm346_vm1, %v949_v36  ;;  %1149 = vrot.lane.b32.xlu0 %v5342_v20, %s5120_s1 }
 0x133   :  { %1182 = vrot.lane.b32.xlu2 %v5352_v22, %s5120_s1 }
 0x134   :  { %1143 = vrot.lane.b32.xlu1 %v5332_v16, %s5120_s1  ;;  %v5434_v42 = vpop.f32.mrf.mxu3 }
 0x13a   :  { %4499 = vmatmul.msk.f32.gmra.mxu3 %vm346_vm1, %v951_v29  ;;  %1186 = vrot.lane.b32.xlu0 %v5354_v23, %s5120_s1  ;;  %v5471_v29 = vpack.i.bf16 %v5312_v12, %v5236_v58 }
 0x13b   :  { %4673 = vrot.lane.b32.xlu2 %v5438_v43, %s5121_s28 }
 0x13c   :  { %1184 = vrot.lane.b32.xlu1 %v5360_v25, %s5120_s1  ;;  %v5449_v46 = vpop.f32.mrf.mxu3 }
 0x142   :  { %1145 = vrot.lane.b32.xlu0 %v5340_v19, %s5120_s1  ;;  %4503 = vmatmul.msk.f32.vlgmr.msrb.gmra.mxu3 %vm346_vm1, %v990_v49 }
 0x143   :  { %4683 = vrot.lane.b32.xlu2 %v5453_v47, %s5121_s28 }
 0x144   :  { %4693 = vrot.lane.b32.xlu1 %v5457_v48, %s5121_s28  ;;  %v1111_v50 = vpop.permute.xlu2 %1110  ;;  %v5466_v51 = vpop.f32.mrf.mxu3 }
 0x145   :  { %4512 = vmatpush.xpose.msk.msra.mxu3 %vm346_vm1, %v1111_v50  ;;  %v1066_v40 = vpop.permute.xlu0 %1065 }
 0x14a   :  { %4678 = vrot.lane.b32.xlu0 %v5471_v29, %s5121_s28 }
 0x14b   :  { %4703 = vrot.lane.b32.xlu2 %v5475_v31, %s5121_s28 }
 0x14c   :  { %4698 = vrot.lane.b32.xlu1 %v5479_v33, %s5121_s28  ;;  %v1072_v35 = vpop.permute.xlu1 %1071  ;;  %v5487_v36 = vpop.f32.mrf.mxu3 }
 0x14d   :  { %4508 = vmatpush.xpose.msk.msrb.mxu2 %vm346_vm1, %v1072_v35  ;;  %v5506_v35 = vpack.i.bf16 %v5394_v34, %v5358_v24 }
 0x151   :  { %4509 = vmatpush.xpose.msk.msrb.mxu2 %vm346_vm1, %v1070_v45 }
 0x152   :  { %4688 = vrot.lane.b32.xlu0 %v5492_v37, %s5121_s28 }
 0x153   :  { %2231 = vrot.lane.b32.xlu2 %v5290_v7, %s5122_s29 }
 0x154   :  { %2114 = vrot.lane.b32.xlu1 %v5220_v55, %s5122_s29  ;;  %v5501_v49 = vpop.f32.mrf.mxu3  ;;  %4510 = vmatmul.msk.f32.vlgmr.msrb.gmra.mxu2 %vm346_vm1, %v1066_v40  ;;  %v1068_v50 = vpop.permute.xlu1 %1067 }
 0x155   :  { %v1105_v40 = vpop.permute.xlu0 %1104 }
 0x15a   :  { %4708 = vrot.lane.b32.xlu0 %v5506_v35, %s5121_s28 }
 0x15b   :  { %2108 = vrot.lane.b32.xlu2 %v5209_v52, %s5122_s29 }
 0x15c   :  { %2229 = vrot.lane.b32.xlu1 %v5280_v5, %s5122_s29  ;;  %v5514_v45 = vpop.f32.mrf.mxu3  ;;  %4511 = vmatmul.msk.f32.gmra.mxu2 %vm346_vm1, %v1068_v50 }
 0x15d   :  { %v1109_v39 = vpop.permute.xlu1 %1108 }
 0x15e   :  { %4513 = vmatpush.xpose.msk.msra.mxu3 %vm346_vm1, %v1109_v39 }
 0x161   :  { %4514 = vmatmul.msk.f32.vlgmr.msra.gmra.mxu3 %vm346_vm1, %v1105_v40 }
 0x162   :  { %2112 = vrot.lane.b32.xlu0 %v5211_v53, %s5122_s29 }
 0x163   :  { %2227 = vrot.lane.b32.xlu2 %v5292_v8, %s5122_s29 }
 0x164   :  { %2110 = vrot.lane.b32.xlu1 %v5218_v54, %s5122_s29  ;;  %v5525_v34 = vpop.f32.mrf.mxu3 }
 0x16a   :  { %2225 = vrot.lane.b32.xlu0 %v5278_v4, %s5122_s29 }
 0x16b   :  { %2153 = vrot.lane.b32.xlu2 %v5242_v60, %s5122_s29 }
 0x16c   :  { %2387 = vrot.lane.b32.xlu1 %v5382_v32, %s5122_s29  ;;  %v1226_v39 = vpop.permute.xlu2 %1225  ;;  %v5533_v50 = vpop.f32.mrf.mxu3 }
 0x172   :  { %2270 = vrot.lane.b32.xlu0 %v5318_v14, %s5122_s29 }
 0x173   :  { %2385 = vrot.lane.b32.xlu2 %v5372_v28, %s5122_s29 }
 0x174   :  { %2268 = vrot.lane.b32.xlu1 %v5304_v10, %s5122_s29  ;;  %v5541_v40 = vpop.f32.mrf.mxu3  ;;  %v1107_v24 = vpop.permute.xlu2 %1106 }
 0x175   :  { %4515 = vmatmul.msk.f32.gmra.mxu3 %vm346_vm1, %v1107_v24 }
 0x17a   :  { %2192 = vrot.lane.b32.xlu0 %v5266_v2, %s5122_s29 }
 0x17b   :  { %2264 = vrot.lane.b32.xlu2 %v5306_v11, %s5122_s29 }
 0x17c   :  { %2190 = vrot.lane.b32.xlu1 %v5258_v63, %s5122_s29  ;;  %v5550_v30 = vpop.f32.mrf.mxu3 }
 0x17d   :  { %v1029_v41 = vpop.permute.xlu2 %1028 }
 0x182   :  { %2151 = vrot.lane.b32.xlu0 %v5232_v57, %s5122_s29 }
 0x183   :  { %2186 = vrot.lane.b32.xlu2 %v5256_v62, %s5122_s29 }
 0x184   :  { %2147 = vrot.lane.b32.xlu1 %v5230_v56, %s5122_s29  ;;  %v5558_v24 = vpop.f32.mrf.mxu3  ;;  %v1222_v44 = vpop.permute.xlu1 %1221 }
 0x185   :  { %7536 = vst [vmem:[#allocation31_spill] sm:$0xff] %v5558_v24  ;;  %v1148_v6 = vpop.permute.xlu2 %1147 }
 0x18a   :  { %2381 = vrot.lane.b32.xlu0 %v5370_v27, %s5122_s29 }
 0x18b   :  { %2149 = vrot.lane.b32.xlu2 %v5240_v59, %s5122_s29 }
 0x18c   :  { %2383 = vrot.lane.b32.xlu1 %v5409_v38, %s5122_s29  ;;  %v1228_v9 = vpop.permute.xlu0 %1227  ;;  %v5566_v0 = vpop.f32.mrf.mxu3 }
 0x18d   :  { %v1027_v3 = vpop.permute.xlu1 %1026  ;;  %4524 = vmatpush.xpose.msk.msra.mxu2 %vm346_vm1, %v1228_v9  ;;  %v1183_v9 = vpop.permute.xlu2 %1182 }
 0x191   :  { %4525 = vmatpush.xpose.msk.msra.mxu2 %vm346_vm1, %v1226_v39 }
 0x192   :  { %2266 = vrot.lane.b32.xlu0 %v5316_v13, %s5122_s29 }
 0x193   :  { %2348 = vrot.lane.b32.xlu2 %v5362_v26, %s5122_s29 }
 0x194   :  { %2309 = vrot.lane.b32.xlu1 %v5342_v20, %s5122_s29  ;;  %v1031_v18 = vpop.permute.xlu0 %1030  ;;  %v5576_v21 = vpop.f32.mrf.mxu3  ;;  %4526 = vmatmul.msk.f32.vlgmr.msra.gmra.mxu2 %vm346_vm1, %v1222_v44 }
 0x195   :  { %7537 = vst [vmem:[#allocation32_spill] sm:$0xff] %v5576_v21  ;;  %4505 = vmatpush.xpose.msk.msrb.mxu1 %vm346_vm1, %v1031_v18 }
 0x196   :  { %v988_v12 = vpop.permute.xlu1 %987 }
 0x197   :  { %4502 = vmatmul.msk.f32.vlgmr.msrb.gmra.mxu0 %vm346_vm1, %v988_v12  ;;  %v4674_v12 = vpop.permute.xlu2 %4673 }
 0x198   :  { %4506 = vmatmul.msk.f32.vlgmr.msrb.gmra.mxu1 %vm346_vm1, %v1027_v3  ;;  %v629_v3 = vsel %vm627_vm2, %v5449_v46, -inf }
 0x19a   :  { %2188 = vrot.lane.b32.xlu0 %v5264_v1, %s5122_s29 }
 0x19b   :  { %2303 = vrot.lane.b32.xlu2 %v5332_v16, %s5122_s29 }
 0x19c   :  { %2346 = vrot.lane.b32.xlu1 %v5354_v23, %s5122_s29  ;;  %v5588_v39 = vpop.f32.mrf.mxu3  ;;  %v1224_v44 = vpop.permute.xlu0 %1223 }
 0x19d   :  { %7538 = vst [vmem:[#allocation33_spill] sm:$0xff] %v5588_v39  ;;  %4527 = vmatmul.msk.f32.gmra.mxu2 %vm346_vm1, %v1224_v44  ;;  %v4676_v39 = vunpack.i.h.bf16 %v4674_v12 }
 0x19e   :  { %v1189_v15 = vpop.permute.xlu1 %1188 }
 0x19f   :  { %4520 = vmatpush.xpose.msk.msra.mxu1 %vm346_vm1, %v1189_v15  ;;  %v628_v15 = vsel %vm627_vm2, %v5434_v42, -inf  ;;  %v4684_v21 = vpop.permute.xlu2 %4683  ;;  %1719 = vmatpush.msrb.mxu2 %v4676_v39 }
 0x1a0   :  { %4507 = vmatmul.msk.f32.gmra.mxu1 %vm346_vm1, %v1029_v41  ;;  %v630_v16 = vmax.f32 %v628_v15, %v629_v3  ;;  %v4686_v38 = vunpack.i.h.bf16 %v4684_v21  ;;  %v4685_v24 = vunpack.i.l.bf16 %v4684_v21 }
 0x1a2   :  { %2307 = vrot.lane.b32.xlu0 %v5334_v17, %s5122_s29 }
 0x1a3   :  { %2344 = vrot.lane.b32.xlu2 %v5360_v25, %s5122_s29  ;;  %v4675_v25 = vunpack.i.l.bf16 %v4674_v12 }
 0x1a4   :  { %2305 = vrot.lane.b32.xlu1 %v5340_v19, %s5122_s29  ;;  %v1150_v18 = vpop.permute.xlu0 %1149  ;;  %v631_v19 = vrot.slane %v630_v16, 4 }
 0x1a5   :  { %4516 = vmatpush.xpose.msk.msra.mxu0 %vm346_vm1, %v1150_v18  ;;  %v5604_v41 = vpop.f32.mrf.mxu3  ;;  %1608 = vmatpush.msrb.mxu3 %v4675_v25 }
 0x1a6   :  { %v1144_v44 = vpop.permute.xlu1 %1143  ;;  %v632_v21 = vmax.f32 %v630_v16, %v631_v19 }
 0x1a8   :  { %v633_v18 = vrot.slane %v632_v21, 2 }
 0x1a9   :  { %4517 = vmatpush.xpose.msk.msra.mxu0 %vm346_vm1, %v1148_v6 }
 0x1aa   :  { %2342 = vrot.lane.b32.xlu0 %v5352_v22, %s5122_s29  ;;  %v634_v16 = vmax.f32 %v632_v21, %v633_v18 }
 0x1ab   :  { %4723 = vrot.lane.b32.xlu2 %v5453_v47, %s5123_s30 }
 0x1ac   :  { %4718 = vrot.lane.b32.xlu1 %v5471_v29, %s5123_s30  ;;  %4518 = vmatmul.msk.f32.vlgmr.msra.gmra.mxu0 %vm346_vm1, %v1144_v44  ;;  %v1187_v3 = vpop.permute.xlu0 %1186  ;;  %v635_v19 = vrot.slane %v634_v16, 1 }
 0x1ad   :  { %4521 = vmatpush.xpose.msk.msra.mxu1 %vm346_vm1, %v1187_v3  ;;  %v5615_v12 = vpop.f32.mrf.mxu3  ;;  %1645 = vmatpush.msrb.mxu0 %v4685_v24 }
 0x1ae   :  { %v1185_v6 = vpop.permute.xlu1 %1184 }
 0x1b0   :  { %4522 = vmatmul.msk.f32.vlgmr.msra.gmra.mxu1 %vm346_vm1, %v1183_v9  ;;  %v636_v9 = vmax.f32 %v634_v16, %v635_v19 }
 0x1b1   :  { %1682 = vmatpush.msrb.mxu1 %v4686_v38 }
 0x1b2   :  { %4713 = vrot.lane.b32.xlu0 %v5438_v43, %s5123_s30 }
 0x1b3   :  { %4733 = vrot.lane.b32.xlu2 %v5492_v37, %s5123_s30 }
 0x1b4   :  { %3042 = vrot.lane.b32.xlu1 %v5220_v55, %s5124_s5  ;;  %v1146_v25 = vpop.permute.xlu0 %1145 }
 0x1b5   :  { %4519 = vmatmul.msk.f32.gmra.mxu0 %vm346_vm1, %v1146_v25  ;;  %v5625_v24 = vpop.f32.mrf.mxu3 }
 0x1b6   :  { %v4694_v39 = vpop.permute.xlu1 %4693  ;;  %v1260_v44 = vsel %vm627_vm2, %v5625_v24, -inf }
 0x1b8   :  { %4523 = vmatmul.msk.f32.gmra.mxu1 %vm346_vm1, %v1185_v6 }
 0x1ba   :  { %4728 = vrot.lane.b32.xlu0 %v5479_v33, %s5123_s30 }
 0x1bb   :  { %3159 = vrot.lane.b32.xlu2 %v5290_v7, %s5124_s5  ;;  %v700_v7 = vsub.f32 %v5434_v42, %v636_v9  ;;  %v4704_v42 = vpop.permute.xlu2 %4703 }
 0x1bc   :  { %3040 = vrot.lane.b32.xlu1 %v5211_v53, %s5124_s5  ;;  %v4679_v55 = vpop.permute.xlu0 %4678  ;;  %v701_v53 = vsub.f32 %v5449_v46, %v636_v9  ;;  %v4696_v46 = vunpack.i.h.bf16 %v4694_v39  ;;  %v4705_v9 = vunpack.i.l.bf16 %v4704_v42 }
 0x1bd   :  { %v984_v38 = vpop.f32.mrf.mxu3  ;;  %v4681_v21 = vunpack.i.h.bf16 %v4679_v55  ;;  %v4680_v18 = vunpack.i.l.bf16 %v4679_v55  ;;  %v716_v55 = vmul.f32 1.442695, %v700_v7 }
 0x1be   :  { %v1261_v15 = vsel %vm627_vm2, %v984_v38, -inf  ;;  %v4699_v3 = vpop.permute.xlu1 %4698 }
 0x1bf   :  { %v1262_v6 = vmax.f32 %v1260_v44, %v1261_v15  ;;  %1609 = vmatpush.msrb.mxu3 %v4680_v18  ;;  %1720 = vmatpush.msrb.mxu2 %v4681_v21  ;;  %v718_v15 = vmul.f32 1.442695, %v701_v53  ;;  %4794 = vpow2.f32 %v716_v55  ;;  %v4701_v21 = vunpack.i.h.bf16 %v4699_v3 }
 0x1c0   :  { %v4700_v18 = vunpack.i.l.bf16 %v4699_v3 }
 0x1c1   :  { %v1263_v25 = vrot.slane %v1262_v6, 4  ;;  %4796 = vpow2.f32 %v718_v15  ;;  %1867 = vmatpush.msra.mxu2 %v4696_v46  ;;  %1683 = vmatpush.msrb.mxu1 %v4701_v21 }
 0x1c2   :  { %4738 = vrot.lane.b32.xlu0 %v5475_v31, %s5123_s30  ;;  %1646 = vmatpush.msrb.mxu0 %v4700_v18 }
 0x1c3   :  { %3157 = vrot.lane.b32.xlu2 %v5280_v5, %s5124_s5  ;;  %v1264_v16 = vmax.f32 %v1262_v6, %v1263_v25  ;;  %v4695_v6 = vunpack.i.l.bf16 %v4694_v39  ;;  %v4706_v25 = vunpack.i.h.bf16 %v4704_v42 }
 0x1c4   :  { %3153 = vrot.lane.b32.xlu1 %v5278_v4, %s5124_s5  ;;  %v4689_v19 = vpop.permute.xlu0 %4688  ;;  %v638_v4 = vsel %vm627_vm2, %v5487_v36, -inf  ;;  %1793 = vmatpush.msra.mxu0 %v4705_v9  ;;  %v655_v9 = vsel %vm627_vm2, %v5525_v34, -inf }
 0x1c5   :  { %v1265_v44 = vrot.slane %v1264_v16, 2  ;;  %v4691_v53 = vunpack.i.h.bf16 %v4689_v19  ;;  %1756 = vmatpush.msra.mxu3 %v4695_v6  ;;  %v5658_v39 = vpop.eup %4794  ;;  %1830 = vmatpush.msra.mxu1 %v4706_v25 }
 0x1c6   :  { %v5645_v47 = vpop.permute.xlu1 %2114  ;;  %7540 = vst [vmem:[#allocation35_spill] sm:$0xff] %v5658_v39 }
 0x1c7   :  { %v1266_v37 = vmax.f32 %v1264_v16, %v1265_v44  ;;  %7539 = vst [vmem:[#allocation34_spill] sm:$0xff] %v5645_v47  ;;  %v4690_v16 = vunpack.i.l.bf16 %v4689_v19  ;;  %1868 = vmatpush.msra.mxu2 %v4691_v53  ;;  %v5662_v19 = vpop.eup %4796 }
 0x1c8   :  { %7541 = vst [vmem:[#allocation36_spill] sm:$0xff] %v5662_v19 }
 0x1c9   :  { %v1267_v5 = vrot.slane %v1266_v37, 1  ;;  %1757 = vmatpush.msra.mxu3 %v4690_v16 }
 0x1ca   :  { %4743 = vrot.lane.b32.xlu0 %v5506_v35, %s5123_s30 }
 0x1cb   :  { %3081 = vrot.lane.b32.xlu2 %v5242_v60, %s5124_s5  ;;  %v1268_v7 = vmax.f32 %v1266_v37, %v1267_v5  ;;  %v637_v60 = vsel %vm627_vm2, %v5466_v51, -inf  ;;  %v665_v37 = vsel %vm627_vm2, %v5550_v30, -inf }
 0x1cc   :  { %3038 = vrot.lane.b32.xlu1 %v5218_v54, %s5124_s5  ;;  %v4709_v44 = vpop.permute.xlu0 %4708  ;;  %v639_v3 = vmax.f32 %v637_v60, %v638_v4 }
 0x1cd   :  { %v1332_v54 = vsub.f32 %v5625_v24, %v1268_v7  ;;  %v1333_v55 = vsub.f32 %v984_v38, %v1268_v7  ;;  %v4711_v15 = vunpack.i.h.bf16 %v4709_v44  ;;  %v4710_v47 = vunpack.i.l.bf16 %v4709_v44 }
 0x1ce   :  { %v664_v24 = vsel %vm627_vm2, %v5541_v40, -inf  ;;  %v656_v38 = vsel %vm627_vm2, %v5533_v50, -inf  ;;  %v5674_v46 = vpop.permute.xlu1 %2229 }
 0x1cf   :  { %v1348_v5 = vmul.f32 1.442695, %v1332_v54  ;;  %v1350_v42 = vmul.f32 1.442695, %v1333_v55  ;;  %v666_v4 = vmax.f32 %v664_v24, %v665_v37  ;;  %7542 = vst [vmem:[#allocation37_spill] sm:$0xff] %v5674_v46  ;;  %1794 = vmatpush.msra.mxu0 %v4710_v47  ;;  %1831 = vmatpush.msra.mxu1 %v4711_v15  ;;  %v657_v6 = vmax.f32 %v655_v9, %v656_v38 }
 0x1d1   :  { %4798 = vpow2.f32 %v1348_v5  ;;  %v667_v18 = vrot.slane %v666_v4, 4  ;;  %v658_v16 = vrot.slane %v657_v6, 4 }
 0x1d2   :  { %3036 = vrot.lane.b32.xlu0 %v5209_v52, %s5124_s5  ;;  %v640_v52 = vrot.slane %v639_v3, 4  ;;  %4800 = vpow2.f32 %v1350_v42 }
 0x1d3   :  { %3155 = vrot.lane.b32.xlu2 %v5292_v8, %s5124_s5  ;;  %v748_v8 = vsel %vm627_vm2, %v5658_v39, 0.0  ;;  %v668_v60 = vmax.f32 %v666_v4, %v667_v18  ;;  %v659_v37 = vmax.f32 %v657_v6, %v658_v16  ;;  %v646_v18 = vsel %vm627_vm2, %v5501_v49, -inf }
 0x1d4   :  { %3118 = vrot.lane.b32.xlu1 %v5258_v63, %s5124_s5  ;;  %v749_v63 = vsel %vm627_vm2, %v5662_v19, 0.0  ;;  %v641_v25 = vmax.f32 %v639_v3, %v640_v52 }
 0x1d5   :  { %v750_v47 = vadd.f32 %v749_v63, %v748_v8  ;;  %v669_v24 = vrot.slane %v668_v60, 2  ;;  %v660_v16 = vrot.slane %v659_v37, 2 }
 0x1d6   :  { %v642_v55 = vrot.slane %v641_v25, 2 }
 0x1d7   :  { %v5682_v21 = vpop.f32.mrf.mxu2  ;;  %v5684_v7 = vpop.eup %4798  ;;  %v751_v3 = vrot.slane %v750_v47, 4 }
 0x1d8   :  { %v5688_v53 = vpop.eup %4800  ;;  %v1380_v44 = vsel %vm627_vm2, %v5684_v7, 0.0  ;;  %v1287_v38 = vsel %vm627_vm2, %v5682_v21, -inf  ;;  %v643_v52 = vmax.f32 %v641_v25, %v642_v55  ;;  %v670_v25 = vmax.f32 %v668_v60, %v669_v24 }
 0x1d9   :  { %v1381_v54 = vsel %vm627_vm2, %v5688_v53, 0.0  ;;  %v752_v63 = vadd.f32 %v751_v3, %v750_v47 }
 0x1da   :  { %3120 = vrot.lane.b32.xlu0 %v5266_v2, %s5124_s5  ;;  %v1382_v15 = vadd.f32 %v1381_v54, %v1380_v44  ;;  %v5698_v2 = vpop.permute.xlu1 %2110  ;;  %v644_v55 = vrot.slane %v643_v52, 1 }
 0x1db   :  { %3198 = vrot.lane.b32.xlu2 %v5318_v14, %s5124_s5  ;;  %7543 = vst [vmem:[#allocation38_spill] sm:$0xff] %v5698_v2  ;;  %v647_v14 = vsel %vm627_vm2, %v5514_v45, -inf  ;;  %v753_v3 = vrot.slane %v752_v63, 2 }
 0x1dc   :  { %4748 = vrot.lane.b32.xlu1 %v5457_v48, %s5123_s30  ;;  %v1383_v5 = vrot.slane %v1382_v15, 4  ;;  %v648_v6 = vmax.f32 %v646_v18, %v647_v14  ;;  %v5715_v18 = vpop.f32.mrf.mxu3  ;;  %v645_v2 = vmax.f32 %v643_v52, %v644_v55 }
 0x1dd   :  { %v754_v39 = vadd.f32 %v753_v3, %v752_v63 }
 0x1de   :  { %v1384_v9 = vadd.f32 %v1383_v5, %v1382_v15  ;;  %v649_v5 = vrot.slane %v648_v6, 4  ;;  %v702_v52 = vsub.f32 %v5466_v51, %v645_v2 }
 0x1df   :  { %v1101_v42 = vpop.f32.mrf.mxu2 }
 0x1e0   :  { %v1288_v4 = vsel %vm627_vm2, %v1101_v42, -inf  ;;  %v1385_v44 = vrot.slane %v1384_v9, 2  ;;  %v720_v55 = vmul.f32 1.442695, %v702_v52 }
 0x1e1   :  { %v1289_v8 = vmax.f32 %v1287_v38, %v1288_v4  ;;  %v661_v38 = vmax.f32 %v659_v37, %v660_v16 }
 0x1e2   :  { %3079 = vrot.lane.b32.xlu0 %v5232_v57, %s5124_s5  ;;  %v1386_v15 = vadd.f32 %v1385_v44, %v1384_v9  ;;  %v671_v57 = vrot.slane %v670_v25, 1  ;;  %v5713_v14 = vpop.permute.xlu1 %2387 }
 0x1e3   :  { %v1290_v54 = vrot.slane %v1289_v8, 4  ;;  %3114 = vrot.lane.b32.xlu2 %v5256_v62, %s5124_s5  ;;  %v662_v60 = vrot.slane %v661_v38, 1 }
 0x1e4   :  { %3075 = vrot.lane.b32.xlu1 %v5230_v56, %s5124_s5  ;;  %v1387_v4 = vrot.slane %v1386_v15, 1  ;;  %v650_v56 = vmax.f32 %v648_v6, %v649_v5  ;;  %v672_v24 = vmax.f32 %v670_v25, %v671_v57 }
 0x1e5   :  { %v1291_v47 = vmax.f32 %v1289_v8, %v1290_v54  ;;  %v703_v8 = vsub.f32 %v5487_v36, %v645_v2  ;;  %v5730_v54 = vpop.f32.mrf.mxu3 }
 0x1e6   :  { %v5717_v19 = vadd.f32 %v1387_v4, %v1386_v15  ;;  %v651_v63 = vrot.slane %v650_v56, 2  ;;  %v708_v44 = vsub.f32 %v5541_v40, %v672_v24 }
 0x1e7   :  { %v1292_v46 = vrot.slane %v1291_v47, 2  ;;  %v722_v51 = vmul.f32 1.442695, %v703_v8 }
 0x1e8   :  { %4802 = vrcp.f32 %v5717_v19  ;;  %v652_v2 = vmax.f32 %v650_v56, %v651_v63  ;;  %vm1457_vm4 = vweird.f32 %v5717_v19 }
 0x1e9   :  { %v1293_v62 = vmax.f32 %v1291_v47, %v1292_v46  ;;  %v755_v46 = vrot.slane %v754_v39, 1 }
 0x1ea   :  { %3315 = vrot.lane.b32.xlu0 %v5382_v32, %s5124_s5  ;;  %v663_v32 = vmax.f32 %v661_v38, %v662_v60  ;;  %v5733_v47 = vpop.permute.xlu1 %2268 }
 0x1eb   :  { %v1294_v37 = vrot.slane %v1293_v62, 1  ;;  %3192 = vrot.lane.b32.xlu2 %v5306_v11, %s5124_s5 }
 0x1ec   :  { %3313 = vrot.lane.b32.xlu1 %v5372_v28, %s5124_s5  ;;  %v709_v28 = vsub.f32 %v5550_v30, %v672_v24  ;;  %v706_v40 = vsub.f32 %v5525_v34, %v663_v32  ;;  %v707_v30 = vsub.f32 %v5533_v50, %v663_v32  ;;  %v1461_v34 = vand.u32 2147483647, %v5717_v19 }
 0x1ed   :  { %v1295_v9 = vmax.f32 %v1293_v62, %v1294_v37  ;;  %v1296_v62 = vsel %vm627_vm2, %v5730_v54, -inf }
 0x1ee   :  { %v4803_v11 = vpop.eup %4802  ;;  %v728_v38 = vmul.f32 1.442695, %v706_v40  ;;  %v730_v4 = vmul.f32 1.442695, %v707_v30  ;;  %vm1462_vm6 = vcmp.eq.f32.partialorder %v1461_v34, 8.507059e+37 }
 0x1ef   :  { %v1338_v6 = vsub.f32 %v5682_v21, %v1295_v9  ;;  %v1339_v16 = vsub.f32 %v1101_v42, %v1295_v9  ;;  %v1453_v36 = vmul.f32 %v4803_v11, %v5717_v19  ;;  %v5738_v21 = vadd.f32 %v755_v46, %v754_v39 }
 0x1f0   :  { %v732_v42 = vmul.f32 1.442695, %v708_v44  ;;  %v1463_v39 = vand.u32 2147483648, %v5717_v19  ;;  %vm1458_vm3 = vweird.f32 %v4803_v11 }
 0x1f1   :  { %v1360_v25 = vmul.f32 1.442695, %v1338_v6  ;;  %v1362_v15 = vmul.f32 1.442695, %v1339_v16  ;;  %v1454_v3 = vsub.f32 1.0, %v1453_v36  ;;  %vm1459_vm5 = vmor %vm1457_vm4, %vm1458_vm3  ;;  %vm825_vm8 = vweird.f32 %v5738_v21 }
 0x1f2   :  { %3196 = vrot.lane.b32.xlu0 %v5304_v10, %s5124_s5  ;;  %v734_v10 = vmul.f32 1.442695, %v709_v28  ;;  %v1464_v60 = vor.u32 1.1754944e-38, %v1463_v39  ;;  %v5774_v16 = vpop.permute.xlu1 %2190  ;;  %v5781_v28 = vpop.permute.xlu2 %2231 }
 0x1f3   :  { %4804 = vpow2.f32 %v1360_v25  ;;  %3116 = vrot.lane.b32.xlu2 %v5264_v1, %s5124_s5  ;;  %v1455_v5 = vmul.f32 %v4803_v11, %v1454_v3  ;;  %v653_v1 = vrot.slane %v652_v2, 1  ;;  %7546 = vst [vmem:[#allocation41_spill] sm:$0xff] %v5774_v16 }
 0x1f4   :  { %3077 = vrot.lane.b32.xlu1 %v5240_v59, %s5124_s5  ;;  %4806 = vpow2.f32 %v1362_v15 }
 0x1f5   :  { %4808 = vpow2.f32 %v720_v55  ;;  %v1456_v50 = vadd.f32 %v4803_v11, %v1455_v5  ;;  %v654_v46 = vmax.f32 %v652_v2, %v653_v1  ;;  %v692_v5 = vsel %vm627_vm2, %v5615_v12, -inf }
 0x1f6   :  { %4810 = vpow2.f32 %v722_v51  ;;  %v5787_v51 = vpop.permute.xlu0 %2112 }
 0x1f7   :  { %4812 = vrcp.f32 %v5738_v21  ;;  %v1460_v9 = vsel %vm1459_vm5, %v4803_v11, %v1456_v50  ;;  %v704_v15 = vsub.f32 %v5501_v49, %v654_v46  ;;  %v691_v50 = vsel %vm627_vm2, %v5604_v41, -inf }
 0x1f8   :  { %4814 = vpow2.f32 %v732_v42  ;;  %v5749_v59 = vpop.f32.mrf.mxu3  ;;  %v1465_v63 = vsel %vm1462_vm6, %v1464_v60, %v1460_v9  ;;  %v7548_v9 = vld [vmem:[#allocation31_spill] sm:$0xff] }
 0x1f9   :  { %v5752_v57 = vpop.eup %4804  ;;  %4816 = vpow2.f32 %v734_v10  ;;  %v1297_v56 = vsel %vm627_vm2, %v5749_v59, -inf  ;;  %v1466_v44 = vmul.f32 %v5684_v7, %v1465_v63  ;;  %v724_v10 = vmul.f32 1.442695, %v704_v15 }
 0x1fa   :  { %v5758_v37 = vpop.eup %4806  ;;  %v1407_v24 = vsel %vm627_vm2, %v5752_v57, 0.0  ;;  %v1298_v52 = vmax.f32 %v1296_v62, %v1297_v56  ;;  %3309 = vrot.lane.b32.xlu0 %v5370_v27, %s5124_s5  ;;  %4818 = vpow2.f32 %v728_v38  ;;  %v5823_v56 = vpop.permute.xlu1 %2147 }
 0x1fb   :  { %v5764_v19 = vpop.eup %4808  ;;  %v1408_v8 = vsel %vm627_vm2, %v5758_v37, 0.0  ;;  %3194 = vrot.lane.b32.xlu2 %v5316_v13, %s5124_s5  ;;  %4820 = vpow2.f32 %v730_v4  ;;  %4528 = vmatmul.msk.f32.vlgmr.msrb.gmra.mxu3 %vm627_vm2, %v1466_v44  ;;  %7547 = vst [vmem:[#allocation42_spill] sm:$0xff] %v5823_v56 }
 0x1fc   :  { %7544 = vst [vmem:[#allocation39_spill] sm:$0xff] %v5764_v19  ;;  %3276 = vrot.lane.b32.xlu1 %v5362_v26, %s5124_s5  ;;  %v5772_v32 = vpop.eup %4810  ;;  %v1409_v6 = vadd.f32 %v1408_v8, %v1407_v24  ;;  %v1299_v27 = vrot.slane %v1298_v52, 4  ;;  %1896 = vmatpush.msrb.mxu3 %v5250_v61  ;;  %v757_v30 = vsel %vm627_vm2, %v5764_v19, 0.0  ;;  %v705_v61 = vsub.f32 %v5514_v45, %v654_v46  ;;  %v5828_v8 = vpop.permute.xlu2 %2108  ;;  %v7560_v19 = vld [vmem:[#allocation22_spill] sm:$0xff] }
 0x1fd   :  { %7545 = vst [vmem:[#allocation40_spill] sm:$0xff] %v5772_v32  ;;  %v5777_v11 = vpop.eup %4812  ;;  %v758_v42 = vsel %vm627_vm2, %v5772_v32, 0.0  ;;  %v1467_v45 = vmul.f32 %v5688_v53, %v1465_v63  ;;  %4822 = vpow2.f32 %v724_v10  ;;  %v673_v46 = vsel %vm627_vm2, %v7548_v9, -inf }
 0x1fe   :  { %v5779_v55 = vpop.eup %4814  ;;  %v1410_v25 = vrot.slane %v1409_v6, 4  ;;  %v1300_v13 = vmax.f32 %v1298_v52, %v1299_v27  ;;  %1897 = vmatpush.msrb.mxu3 %v5236_v58  ;;  %v821_v1 = vmul.f32 %v5777_v11, %v5738_v21  ;;  %v759_v60 = vadd.f32 %v758_v42, %v757_v30  ;;  %v5834_v15 = vpop.permute.xlu0 %2225  ;;  %v7550_v42 = vld [vmem:[#allocation25_spill] sm:$0xff] }
 0x1ff   :  { %v5784_v26 = vpop.eup %4816  ;;  %v784_v39 = vsel %vm627_vm2, %v5779_v55, 0.0  ;;  %v726_v24 = vmul.f32 1.442695, %v705_v61  ;;  %v693_v52 = vmax.f32 %v691_v50, %v692_v5  ;;  %7549 = vst [vmem:[#allocation31_spill] sm:$0xff] %v5834_v15  ;;  %vm826_vm7 = vweird.f32 %v5777_v11 }
 0x200   :  { %v1411_v36 = vadd.f32 %v1410_v25, %v1409_v6  ;;  %v1301_v7 = vrot.slane %v1300_v13, 2  ;;  %v5790_v2 = vpop.eup %4818  ;;  %v785_v58 = vsel %vm627_vm2, %v5784_v26, 0.0  ;;  %v822_v44 = vsub.f32 1.0, %v821_v1  ;;  %vm5916_vm13 = vmor %vm825_vm8, %vm826_vm7 }
 0x201   :  { %v5793_v40 = vpop.eup %4820  ;;  %v775_v38 = vsel %vm627_vm2, %v5790_v2, 0.0 }
 0x202   :  { %v1412_v3 = vrot.slane %v1411_v36, 2  ;;  %v1302_v49 = vmax.f32 %v1300_v13, %v1301_v7  ;;  %3237 = vrot.lane.b32.xlu0 %v5342_v20, %s5124_s5  ;;  %v776_v4 = vsel %vm627_vm2, %v5793_v40, 0.0  ;;  %v823_v61 = vmul.f32 %v5777_v11, %v822_v44  ;;  %v5849_v1 = vpop.permute.xlu1 %2383 }
 0x203   :  { %3274 = vrot.lane.b32.xlu2 %v5354_v23, %s5124_s5  ;;  %v674_v23 = vsel %vm627_vm2, %v5566_v0, -inf  ;;  %4529 = vmatmul.msk.f32.gmra.mxu3 %vm627_vm2, %v1467_v45  ;;  %v777_v25 = vadd.f32 %v776_v4, %v775_v38 }
 0x204   :  { %3235 = vrot.lane.b32.xlu1 %v5334_v17, %s5124_s5  ;;  %v1413_v34 = vadd.f32 %v1412_v3, %v1411_v36  ;;  %v1303_v20 = vrot.slane %v1302_v49, 1  ;;  %v786_v17 = vadd.f32 %v785_v58, %v784_v39  ;;  %v675_v13 = vmax.f32 %v673_v46, %v674_v23 }
 0x205   :  { %v694_v3 = vrot.slane %v693_v52, 4  ;;  %v778_v10 = vrot.slane %v777_v25, 4 }
 0x206   :  { %v1414_v62 = vrot.slane %v1413_v34, 1  ;;  %v1304_v53 = vmax.f32 %v1302_v49, %v1303_v20  ;;  %v787_v36 = vrot.slane %v786_v17, 4  ;;  %v7551_v49 = vld [vmem:[#allocation19_spill] sm:$0xff]  ;;  %v676_v58 = vrot.slane %v675_v13, 4 }
 0x207   :  { %v695_v5 = vmax.f32 %v693_v52, %v694_v3  ;;  %7553 = vst [vmem:[#allocation19_spill] sm:$0xff] %v5849_v1  ;;  %v779_v23 = vadd.f32 %v778_v10, %v777_v25  ;;  %v7556_v52 = vld [vmem:[#allocation33_spill] sm:$0xff] }
 0x208   :  { %v5830_v63 = vadd.f32 %v1414_v62, %v1413_v34  ;;  %v1340_v6 = vsub.f32 %v5730_v54, %v1304_v53  ;;  %v1341_v27 = vsub.f32 %v5749_v59, %v1304_v53  ;;  %v760_v54 = vrot.slane %v759_v60, 4  ;;  %v5843_v59 = vpop.eup %4822 }
 0x209   :  { %7552 = vst [vmem:[#allocation25_spill] sm:$0xff] %v5843_v59  ;;  %v788_v39 = vadd.f32 %v787_v36, %v786_v17  ;;  %v5859_v4 = vsel %vm627_vm2, %v5843_v59, 0.0  ;;  %v677_v53 = vmax.f32 %v675_v13, %v676_v58  ;;  %v683_v46 = vsel %vm627_vm2, %v7556_v52, -inf  ;;  %v5877_v13 = vpop.permute.xlu0 %2270 }
 0x20a   :  { %4824 = vrcp.f32 %v5830_v63  ;;  %v1364_v7 = vmul.f32 1.442695, %v1340_v6  ;;  %v1366_v30 = vmul.f32 1.442695, %v1341_v27  ;;  %3311 = vrot.lane.b32.xlu0 %v7550_v42, %s5124_s5  ;;  %v5847_v45 = vadd.f32 %v760_v54, %v759_v60  ;;  %v7555_v60 = vld [vmem:[#allocation32_spill] sm:$0xff]  ;;  %v5868_v6 = vpop.permute.xlu2 %2227  ;;  %v7558_v27 = vld [vmem:[#allocation17_spill] sm:$0xff]  ;;  %v5902_v59 = vpop.permute.xlu1 %2309 }
 0x20b   :  { %4826 = vpow2.f32 %v726_v24  ;;  %3233 = vrot.lane.b32.xlu2 %v7551_v49, %s5124_s5  ;;  %v789_v62 = vrot.slane %v788_v39, 2  ;;  %v682_v24 = vsel %vm627_vm2, %v7555_v60, -inf  ;;  %7557 = vst [vmem:[#allocation32_spill] sm:$0xff] %v5868_v6  ;;  %v696_v25 = vrot.slane %v695_v5, 2 }
 0x20c   :  { %3270 = vrot.lane.b32.xlu1 %v5352_v22, %s5124_s5  ;;  %4828 = vpow2.f32 %v1364_v7  ;;  %v5854_v22 = vadd.f32 %v5777_v11, %v823_v61  ;;  %v1270_v36 = vsel %vm627_vm2, %v5715_v18, -inf  ;;  %v1509_v54 = vand.u32 2147483647, %v5830_v63  ;;  %7559 = vst [vmem:[#allocation33_spill] sm:$0xff] %v5902_v59 }
 0x20d   :  { %4830 = vpow2.f32 %v1366_v30  ;;  %v1511_v61 = vand.u32 2147483648, %v5830_v63  ;;  %v678_v20 = vrot.slane %v677_v53, 2  ;;  %vm1505_vm10 = vweird.f32 %v5830_v63 }
 0x20e   :  { %v790_v32 = vadd.f32 %v789_v62, %v788_v39  ;;  %vm1510_vm12 = vcmp.eq.f32.partialorder %v1509_v54, 8.507059e+37 }
 0x210   :  { %v4825_v34 = vpop.eup %4824 }
 0x211   :  { %v5851_v38 = vpop.eup %4826  ;;  %v1501_v17 = vmul.f32 %v4825_v34, %v5830_v63  ;;  %vm1506_vm9 = vweird.f32 %v4825_v34  ;;  %v829_v63 = vand.u32 2147483647, %v5738_v21 }
 0x212   :  { %7554 = vst [vmem:[#allocation43_spill] sm:$0xff] %v5851_v38  ;;  %v5862_v50 = vpop.eup %4828  ;;  %3231 = vrot.lane.b32.xlu0 %v7558_v27, %s5124_s5  ;;  %vm1507_vm11 = vmor %vm1505_vm10, %vm1506_vm9  ;;  %v5925_v62 = vpop.permute.xlu2 %2153 }
 0x213   :  { %v5872_v44 = vpop.eup %4830  ;;  %v1416_v7 = vsel %vm627_vm2, %v5862_v50, 0.0  ;;  %4758 = vrot.lane.b32.xlu2 %v5471_v29, %s5125_s6  ;;  %v1502_v42 = vsub.f32 1.0, %v1501_v17  ;;  %v780_v29 = vrot.slane %v779_v23, 2  ;;  %v684_v17 = vmax.f32 %v682_v24, %v683_v46 }
 0x214   :  { %4753 = vrot.lane.b32.xlu1 %v5438_v43, %s5125_s6  ;;  %v5885_v30 = vpop.f32.mrf.mxu0  ;;  %v1417_v3 = vsel %vm627_vm2, %v5872_v44, 0.0  ;;  %v767_v43 = vsel %vm627_vm2, %v5851_v38, 0.0  ;;  %v679_v24 = vmax.f32 %v677_v53, %v678_v20  ;;  %v762_v20 = vrot.slane %v5847_v45, 2  ;;  %v5934_v53 = vpop.permute.xlu0 %2192 }
 0x215   :  { %v1269_v49 = vsel %vm627_vm2, %v5885_v30, -inf  ;;  %v1418_v10 = vadd.f32 %v1417_v3, %v1416_v7  ;;  %v1503_v27 = vmul.f32 %v4825_v34, %v1502_v42  ;;  %v5895_v1 = vpop.f32.mrf.mxu1  ;;  %v697_v7 = vmax.f32 %v695_v5, %v696_v25  ;;  %7564 = vst [vmem:[#allocation17_spill] sm:$0xff] %v5934_v53 }
 0x216   :  { %v1271_v58 = vmax.f32 %v1269_v49, %v1270_v36  ;;  %v1512_v36 = vor.u32 1.1754944e-38, %v1511_v61  ;;  %v5900_v38 = vadd.f32 %v780_v29, %v779_v23  ;;  %v685_v46 = vrot.slane %v684_v17, 4 }
 0x217   :  { %v1419_v56 = vrot.slane %v1418_v10, 4  ;;  %v5897_v15 = vpop.f32.mrf.mxu2  ;;  %v1504_v16 = vadd.f32 %v4825_v34, %v1503_v27  ;;  %v698_v23 = vrot.slane %v697_v7, 1  ;;  %v680_v54 = vrot.slane %v679_v24, 1 }
 0x218   :  { %v1272_v6 = vrot.slane %v1271_v58, 4  ;;  %v782_v25 = vrot.slane %v5900_v38, 1  ;;  %v686_v61 = vmax.f32 %v684_v17, %v685_v46  ;;  %vm5945_vm14 = vcmp.eq.f32.partialorder %v829_v63, 8.507059e+37 }
 0x219   :  { %v1420_v42 = vadd.f32 %v1419_v56, %v1418_v10  ;;  %v1508_v49 = vsel %vm1507_vm11, %v4825_v34, %v1504_v16  ;;  %v7565_v10 = vld [vmem:[#allocation16_spill] sm:$0xff] }
 0x21a   :  { %v1273_v3 = vmax.f32 %v1271_v58, %v1272_v6  ;;  %3272 = vrot.lane.b32.xlu0 %v7560_v19, %s5124_s5  ;;  %v1513_v27 = vsel %vm1510_vm12, %v1512_v36, %v1508_v49  ;;  %v7563_v19 = vand.u32 2147483648, %v5738_v21  ;;  %v687_v56 = vrot.slane %v686_v61, 2 }
 0x21b   :  { %v1421_v39 = vrot.slane %v1420_v42, 2  ;;  %4773 = vrot.lane.b32.xlu2 %v5457_v48, %s5125_s6  ;;  %v1514_v16 = vmul.f32 %v5752_v57, %v1513_v27  ;;  %v791_v48 = vrot.slane %v790_v32, 1  ;;  %v5932_v57 = vadd.f32 %v767_v43, %v5859_v4 }
 0x21c   :  { %v1274_v5 = vrot.slane %v1273_v3, 2  ;;  %4768 = vrot.lane.b32.xlu1 %v5479_v33, %s5125_s6  ;;  %v5922_v34 = vor.u32 1.1754944e-38, %v7563_v19  ;;  %v828_v33 = vsel %vm5916_vm13, %v5777_v11, %v5854_v22  ;;  %v1278_v11 = vsel %vm627_vm2, %v5895_v1, -inf }
 0x21d   :  { %v1422_v6 = vadd.f32 %v1421_v39, %v1420_v42  ;;  %4534 = vmatmul.msk.f32.vlgmr.msrb.gmra.mxu2 %vm627_vm2, %v1514_v16  ;;  %v5939_v58 = vpop.f32.mrf.mxu1  ;;  %v5949_v43 = vadd.f32 %v791_v48, %v790_v32  ;;  %v699_v42 = vmax.f32 %v697_v7, %v698_v23  ;;  %v681_v16 = vmax.f32 %v679_v24, %v680_v54  ;;  %v7569_v7 = vld [vmem:[#allocation29_spill] sm:$0xff] }
 0x21e   :  { %v1275_v21 = vmax.f32 %v1273_v3, %v1274_v5  ;;  %1983 = vmatpush.msrb.mxu2 %v7565_v10  ;;  %v1279_v22 = vsel %vm627_vm2, %v5939_v58, -inf  ;;  %v7568_v3 = vld [vmem:[#allocation15_spill] sm:$0xff]  ;;  %v1323_v5 = vsel %vm627_vm2, %v5897_v15, -inf  ;;  %v1515_v24 = vmul.f32 %v5758_v37, %v1513_v27 }
 0x21f   :  { %v1423_v29 = vrot.slane %v1422_v6, 1  ;;  %v1280_v17 = vmax.f32 %v1278_v11, %v1279_v22  ;;  %v711_v11 = vsub.f32 %v5566_v0, %v681_v16  ;;  %v5984_v22 = vmax.f32 %v686_v61, %v687_v56  ;;  %v7572_v56 = vld [vmem:[#allocation30_spill] sm:$0xff] }
 0x220   :  { %v1276_v36 = vrot.slane %v1275_v21, 1  ;;  %1984 = vmatpush.msrb.mxu2 %v7568_v3  ;;  %v5952_v49 = vpop.f32.mrf.mxu2  ;;  %v5998_v0 = vadd.f32 %v762_v20, %v5847_v45  ;;  %vm889_vm5 = vweird.f32 %v5949_v43 }
 0x221   :  { %v5954_v46 = vadd.f32 %v1423_v29, %v1422_v6  ;;  %v1324_v63 = vsel %vm627_vm2, %v5952_v49, -inf  ;;  %v1281_v19 = vrot.slane %v1280_v17, 4  ;;  %v714_v6 = vsub.f32 %v5604_v41, %v699_v42 }
 0x222   :  { %v1277_v39 = vmax.f32 %v1275_v21, %v1276_v36  ;;  %v1325_v32 = vmax.f32 %v1323_v5, %v1324_v63  ;;  %4763 = vrot.lane.b32.xlu0 %v7569_v7, %s5125_s6  ;;  %v5972_v21 = vpop.permute.xlu1 %2346  ;;  %v710_v41 = vsub.f32 %v7548_v9, %v681_v16  ;;  %v6012_v20 = vmul.f32 1.442695, %v711_v11 }
 0x223   :  { %4832 = vrcp.f32 %v5954_v46  ;;  %4788 = vrot.lane.b32.xlu2 %v5506_v35, %s5125_s6  ;;  %7570 = vst [vmem:[#allocation22_spill] sm:$0xff] %v5972_v21  ;;  %v1282_v54 = vmax.f32 %v1280_v17, %v1281_v19  ;;  %v5980_v35 = vpop.permute.xlu2 %2385  ;;  %v5986_v17 = vpop.permute.xlu0 %2151  ;;  %vm1521_vm15 = vweird.f32 %v5954_v46 }
 0x224   :  { %v1334_v48 = vsub.f32 %v5885_v30, %v1277_v39  ;;  %v1335_v23 = vsub.f32 %v5715_v18, %v1277_v39  ;;  %4783 = vrot.lane.b32.xlu1 %v5475_v31, %s5125_s6  ;;  %4834 = vrcp.f32 %v5949_v43  ;;  %v1326_v10 = vrot.slane %v1325_v32, 4  ;;  %7571 = vst [vmem:[#allocation16_spill] sm:$0xff] %v5986_v17 }
 0x225   :  { %v769_v30 = vrot.slane %v5932_v57, 4  ;;  %v715_v18 = vsub.f32 %v5615_v12, %v699_v42  ;;  %4535 = vmatmul.msk.f32.gmra.mxu2 %vm627_vm2, %v1515_v24  ;;  %v5978_v31 = vadd.f32 %v782_v25, %v5900_v38  ;;  %v1283_v37 = vrot.slane %v1282_v54, 2 }
 0x226   :  { %v1352_v29 = vmul.f32 1.442695, %v1334_v48  ;;  %v1354_v36 = vmul.f32 1.442695, %v1335_v23  ;;  %v1327_v27 = vmax.f32 %v1325_v32, %v1326_v10  ;;  %v744_v12 = vmul.f32 1.442695, %v714_v6 }
 0x227   :  { %v1284_v42 = vmax.f32 %v1282_v54, %v1283_v37  ;;  %v5993_v38 = vsel %vm5945_vm14, %v5922_v34, %v828_v33  ;;  %v746_v9 = vmul.f32 1.442695, %v715_v18  ;;  %v6005_v5 = vadd.f32 %v769_v30, %v5932_v57 }
 0x228   :  { %4836 = vpow2.f32 %v1352_v29  ;;  %v1328_v3 = vrot.slane %v1327_v27, 2  ;;  %v736_v45 = vmul.f32 1.442695, %v710_v41  ;;  %v689_v33 = vrot.slane %v5984_v22, 1 }
 0x229   :  { %4838 = vpow2.f32 %v1354_v36  ;;  %v5988_v39 = vpop.eup %4832  ;;  %v6000_v25 = vpop.f32.mrf.mxu0  ;;  %v1285_v63 = vrot.slane %v1284_v42, 1  ;;  %v1525_v48 = vand.u32 2147483647, %v5954_v46  ;;  %v1527_v23 = vand.u32 2147483648, %v5954_v46 }
 0x22a   :  { %v6002_v61 = vpop.eup %4834  ;;  %v1329_v16 = vmax.f32 %v1327_v27, %v1328_v3  ;;  %4778 = vrot.lane.b32.xlu0 %v7572_v56, %s5125_s6  ;;  %v1517_v34 = vmul.f32 %v5988_v39, %v5954_v46  ;;  %4840 = vrcp.f32 %v5978_v31  ;;  %v6027_v54 = vpop.permute.xlu1 %2305  ;;  %vm1522_vm0 = vweird.f32 %v5988_v39 }
 0x22b   :  { %4842 = vpow2.f32 %v744_v12  ;;  %v1286_v4 = vmax.f32 %v1284_v42, %v1285_v63  ;;  %v6019_v7 = vmul.f32 %v6002_v61, %v5949_v43  ;;  %7573 = vst [vmem:[#allocation15_spill] sm:$0xff] %v6027_v54  ;;  %v6038_v27 = vpop.permute.xlu2 %2264  ;;  %v6043_v42 = vpop.permute.xlu0 %2381  ;;  %vm6047_vm3 = vcmp.eq.f32.partialorder %v1525_v48, 8.507059e+37  ;;  %vm1523_vm4 = vmor %vm1521_vm15, %vm1522_vm0 }
 0x22c   :  { %v1330_v19 = vrot.slane %v1329_v16, 1  ;;  %v1518_v57 = vsub.f32 1.0, %v1517_v34  ;;  %4844 = vpow2.f32 %v746_v9  ;;  %7574 = vst [vmem:[#allocation29_spill] sm:$0xff] %v6043_v42  ;;  %v690_v46 = vmax.f32 %v5984_v22, %v689_v33 }
 0x22d   :  { %v1336_v10 = vsub.f32 %v5895_v1, %v1286_v4  ;;  %v1337_v30 = vsub.f32 %v5939_v58, %v1286_v4  ;;  %v6031_v29 = vpop.f32.mrf.mxu1  ;;  %vm890_vm6 = vweird.f32 %v6002_v61 }
 0x22e   :  { %v6015_v32 = vpop.eup %4836  ;;  %v1331_v18 = vmax.f32 %v1329_v16, %v1330_v19  ;;  %v1519_v37 = vmul.f32 %v5988_v39, %v1518_v57  ;;  %v1528_v16 = vor.u32 1.1754944e-38, %v1527_v23  ;;  %v1314_v22 = vsel %vm627_vm2, %v6031_v29, -inf  ;;  %vm6150_vm7 = vmor %vm889_vm5, %vm890_vm6 }
 0x22f   :  { %v6023_v24 = vpop.eup %4838  ;;  %v1389_v6 = vsel %vm627_vm2, %v6015_v32, 0.0  ;;  %v1356_v11 = vmul.f32 1.442695, %v1336_v10  ;;  %v1358_v12 = vmul.f32 1.442695, %v1337_v30 }
 0x230   :  { %v1390_v36 = vsel %vm627_vm2, %v6023_v24, 0.0  ;;  %v1346_v1 = vsub.f32 %v5897_v15, %v1331_v18  ;;  %v6041_v58 = vpop.eup %4840  ;;  %v1347_v3 = vsub.f32 %v5952_v49, %v1331_v18  ;;  %v1520_v9 = vadd.f32 %v5988_v39, %v1519_v37  ;;  %v7577_v37 = vld [vmem:[#allocation35_spill] sm:$0xff] }
 0x231   :  { %v1391_v41 = vadd.f32 %v1390_v36, %v1389_v6  ;;  %v6051_v56 = vpop.eup %4842  ;;  %4846 = vpow2.f32 %v1356_v11  ;;  %v1305_v15 = vsel %vm627_vm2, %v6000_v25, -inf  ;;  %v886_v18 = vsub.f32 1.0, %v6019_v7 }
 0x232   :  { %v1376_v4 = vmul.f32 1.442695, %v1346_v1  ;;  %v6055_v19 = vpop.f32.mrf.mxu0  ;;  %v6061_v49 = vpop.eup %4844  ;;  %4848 = vpow2.f32 %v1358_v12  ;;  %v1378_v57 = vmul.f32 1.442695, %v1347_v3  ;;  %v1524_v23 = vsel %vm1523_vm4, %v5988_v39, %v1520_v9 }
 0x233   :  { %v1392_v34 = vrot.slane %v1391_v41, 4  ;;  %v1306_v48 = vsel %vm627_vm2, %v6055_v19, -inf  ;;  %v1529_v30 = vsel %vm6047_vm3, %v1528_v16, %v1524_v23  ;;  %v6073_v11 = vmul.f32 %v7577_v37, %v5993_v38  ;;  %v6090_v63 = vpop.permute.xlu1 %4718 }
 0x234   :  { %4850 = vpow2.f32 %v1376_v4  ;;  %v1307_v10 = vmax.f32 %v1305_v15, %v1306_v48  ;;  %v1530_v36 = vmul.f32 %v5862_v50, %v1529_v30  ;;  %v771_v9 = vrot.slane %v6005_v5, 2 }
 0x235   :  { %v1393_v6 = vadd.f32 %v1392_v34, %v1391_v41  ;;  %4852 = vpow2.f32 %v1378_v57  ;;  %v6075_v39 = vpop.f32.mrf.mxu1  ;;  %v7578_v41 = vld [vmem:[#allocation36_spill] sm:$0xff]  ;;  %v887_v4 = vmul.f32 %v6002_v61, %v886_v18  ;;  %v712_v15 = vsub.f32 %v7555_v60, %v690_v46 }
 0x236   :  { %v1308_v1 = vrot.slane %v1307_v10, 4  ;;  %v6079_v3 = vmul.f32 %v7578_v41, %v5993_v38  ;;  %4854 = vpow2.f32 %v736_v45  ;;  %v1315_v50 = vsel %vm627_vm2, %v6075_v39, -inf  ;;  %4536 = vmatmul.msk.f32.vlgmr.msra.gmra.mxu3 %vm627_vm2, %v1530_v36  ;;  %v7579_v34 = vld [vmem:[#allocation20_spill] sm:$0xff] }
 0x237   :  { %v1394_v12 = vrot.slane %v1393_v6, 2  ;;  %v6087_v33 = vpop.eup %4846  ;;  %4856 = vpow2.f32 %v6012_v20  ;;  %v1316_v16 = vmax.f32 %v1314_v22, %v1315_v50  ;;  %2012 = vmatpush.msra.mxu3 %v7579_v34  ;;  %v713_v57 = vsub.f32 %v7556_v52, %v690_v46  ;;  %v6102_v20 = vpop.permute.xlu2 %2186 }
 0x238   :  { %v1309_v38 = vmax.f32 %v1307_v10, %v1308_v1  ;;  %v6093_v45 = vpop.eup %4848  ;;  %v1398_v48 = vsel %vm627_vm2, %v6087_v33, 0.0  ;;  %7580 = vst [vmem:[#allocation30_spill] sm:$0xff] %v6102_v20  ;;  %v811_v60 = vsel %vm627_vm2, %v6051_v56, 0.0  ;;  %v812_v52 = vsel %vm627_vm2, %v6061_v49, 0.0  ;;  %v6113_v46 = vpop.permute.xlu0 %2266 }
 0x239   :  { %v1395_v7 = vadd.f32 %v1394_v12, %v1393_v6  ;;  %v1399_v10 = vsel %vm627_vm2, %v6093_v45, 0.0  ;;  %v1317_v37 = vrot.slane %v1316_v16, 4  ;;  %v7581_v12 = vld [vmem:[#allocation18_spill] sm:$0xff]  ;;  %v6124_v20 = vadd.f32 %v771_v9, %v6005_v5 }
 0x23a   :  { %v6100_v23 = vpop.eup %4850  ;;  %v1310_v36 = vrot.slane %v1309_v38, 2  ;;  %2013 = vmatpush.msra.mxu3 %v7581_v12  ;;  %v1400_v1 = vadd.f32 %v1399_v10, %v1398_v48  ;;  %v1531_v59 = vmul.f32 %v5872_v44, %v1529_v30  ;;  %v813_v10 = vadd.f32 %v812_v52, %v811_v60 }
 0x23b   :  { %v1396_v6 = vrot.slane %v1395_v7, 1  ;;  %v6107_v18 = vpop.eup %4852  ;;  %v1443_v41 = vsel %vm627_vm2, %v6100_v23, 0.0  ;;  %v1318_v12 = vmax.f32 %v1316_v16, %v1317_v37  ;;  %v6136_v5 = vadd.f32 %v6002_v61, %v887_v4 }
 0x23c   :  { %v1444_v50 = vsel %vm627_vm2, %v6107_v18, 0.0  ;;  %v1311_v34 = vmax.f32 %v1309_v38, %v1310_v36  ;;  %v6121_v54 = vpop.eup %4854  ;;  %v1401_v42 = vrot.slane %v1400_v1, 4  ;;  %v742_v44 = vmul.f32 1.442695, %v713_v57 }
 0x23d   :  { %v6117_v22 = vadd.f32 %v1396_v6, %v1395_v7  ;;  %v1445_v21 = vadd.f32 %v1444_v50, %v1443_v41  ;;  %v6127_v48 = vpop.eup %4856  ;;  %v6131_v7 = vmul.f32 %v6041_v58, %v5978_v31  ;;  %v740_v6 = vmul.f32 1.442695, %v712_v15  ;;  %v6142_v41 = vpop.permute.xlu1 %3042 }
 0x23e   :  { %7582 = vst [vmem:[#allocation35_spill] sm:$0xff] %v6127_v48  ;;  %v1402_v38 = vadd.f32 %v1401_v42, %v1400_v1  ;;  %v1312_v36 = vrot.slane %v1311_v34, 1  ;;  %v1319_v37 = vrot.slane %v1318_v12, 2  ;;  %4537 = vmatmul.msk.f32.gmra.mxu3 %vm627_vm2, %v1531_v59  ;;  %v893_v52 = vand.u32 2147483647, %v5949_v43 }
 0x23f   :  { %4858 = vrcp.f32 %v6117_v22  ;;  %v1446_v16 = vrot.slane %v1445_v21, 4  ;;  %v895_v42 = vand.u32 2147483648, %v5949_v43  ;;  %v814_v1 = vrot.slane %v813_v10, 4  ;;  %7583 = vst [vmem:[#allocation36_spill] sm:$0xff] %v6142_v41 }
 0x240   :  { %v1403_v30 = vrot.slane %v1402_v38, 2  ;;  %v1313_v15 = vmax.f32 %v1311_v34, %v1312_v36  ;;  %v1320_v60 = vmax.f32 %v1318_v12, %v1319_v37  ;;  %4860 = vpow2.f32 %v740_v6  ;;  %v6158_v12 = vpop.permute.xlu2 %2149  ;;  %v6164_v43 = vpop.permute.xlu0 %2188 }
 0x241   :  { %v1447_v9 = vadd.f32 %v1446_v16, %v1445_v21  ;;  %v793_v57 = vsel %vm627_vm2, %v6121_v54, 0.0  ;;  %v794_v34 = vsel %vm627_vm2, %v6127_v48, 0.0  ;;  %4862 = vpow2.f32 %v742_v44  ;;  %7586 = vst [vmem:[#allocation20_spill] sm:$0xff] %v6158_v12 }
 0x242   :  { %v1404_v59 = vadd.f32 %v1403_v30, %v1402_v38  ;;  %v1342_v50 = vsub.f32 %v6000_v25, %v1313_v15  ;;  %v1343_v17 = vsub.f32 %v6055_v19, %v1313_v15  ;;  %v1321_v25 = vrot.slane %v1320_v60, 1  ;;  %7587 = vst [vmem:[#allocation18_spill] sm:$0xff] %v6164_v43 }
 0x243   :  { %v1448_v4 = vrot.slane %v1447_v9, 2  ;;  %v892_v19 = vsel %vm6150_vm7, %v6002_v61, %v6136_v5  ;;  %v815_v36 = vadd.f32 %v814_v1, %v813_v10  ;;  %v1477_v44 = vand.u32 2147483647, %v6117_v22 }
 0x244   :  { %v1405_v38 = vrot.slane %v1404_v59, 1  ;;  %v1368_v37 = vmul.f32 1.442695, %v1342_v50  ;;  %v1370_v30 = vmul.f32 1.442695, %v1343_v17  ;;  %v1322_v15 = vmax.f32 %v1320_v60, %v1321_v25  ;;  %v7588_v17 = vld [vmem:[#allocation34_spill] sm:$0xff] }
 0x245   :  { %v4859_v53 = vpop.eup %4858  ;;  %v1449_v16 = vadd.f32 %v1448_v4, %v1447_v9  ;;  %v1479_v5 = vand.u32 2147483648, %v6117_v22  ;;  %v896_v21 = vor.u32 1.1754944e-38, %v895_v42  ;;  %vm1473_vm9 = vweird.f32 %v6117_v22 }
 0x246   :  { %v1469_v6 = vmul.f32 %v4859_v53, %v6117_v22  ;;  %v6168_v12 = vadd.f32 %v1405_v38, %v1404_v59  ;;  %4544 = vmatmul.msk.f32.vlgmr.msrb.gmra.mxu3 %vm627_vm2, %v6073_v11  ;;  %v6172_v61 = vpop.eup %4860  ;;  %4864 = vpow2.f32 %v1368_v37  ;;  %v1344_v9 = vsub.f32 %v6031_v29, %v1322_v15 }
 0x247   :  { %v1450_v48 = vrot.slane %v1449_v16, 1  ;;  %v1345_v10 = vsub.f32 %v6075_v39, %v1322_v15  ;;  %4560 = vmatpush.xpose.msk.msrb.mxu3 %vm346_vm1, %v7588_v17  ;;  %vm1474_vm8 = vweird.f32 %v4859_v53  ;;  %v6182_v59 = vpop.eup %4862  ;;  %v816_v11 = vrot.slane %v815_v36, 2 }
 0x248   :  { %v1470_v41 = vsub.f32 1.0, %v1469_v6  ;;  %4866 = vrcp.f32 %v6168_v12  ;;  %7589 = vst [vmem:[#allocation34_spill] sm:$0xff] %v6182_v59  ;;  %v1372_v4 = vmul.f32 1.442695, %v1344_v9  ;;  %vm894_vm10 = vcmp.eq.f32.partialorder %v893_v52, 8.507059e+37  ;;  %vm1475_vm11 = vmor %vm1473_vm9, %vm1474_vm8 }
 0x249   :  { %v6180_v1 = vadd.f32 %v1450_v48, %v1449_v16  ;;  %4868 = vpow2.f32 %v1370_v30  ;;  %v1374_v50 = vmul.f32 1.442695, %v1345_v10  ;;  %v6186_v29 = vadd.f32 %v794_v34, %v793_v57  ;;  %v6200_v34 = vpop.permute.xlu2 %2348 }
 0x24a   :  { %v1471_v60 = vmul.f32 %v4859_v53, %v1470_v41  ;;  %v1480_v39 = vor.u32 1.1754944e-38, %v1479_v5  ;;  %v6188_v41 = vpop.permute.xlu1 %3040  ;;  %v6192_v48 = vsel %vm894_vm10, %v896_v21, %v892_v19  ;;  %vm1478_vm12 = vcmp.eq.f32.partialorder %v1477_v44, 8.507059e+37  ;;  %v6203_v19 = vpop.permute.xlu0 %2307 }
 0x24b   :  { %4870 = vrcp.f32 %v6180_v1  ;;  %7590 = vst [vmem:[#allocation44_spill] sm:$0xff] %v6188_v41  ;;  %4561 = vmatpush.xpose.msk.msrb.mxu3 %vm346_vm1, %v5787_v51  ;;  %v802_v22 = vsel %vm627_vm2, %v6172_v61, 0.0  ;;  %v803_v52 = vsel %vm627_vm2, %v6182_v59, 0.0  ;;  %v817_v57 = vadd.f32 %v816_v11, %v815_v36 }
 0x24c   :  { %v1472_v25 = vadd.f32 %v4859_v53, %v1471_v60  ;;  %4872 = vpow2.f32 %v1372_v4  ;;  %v6194_v42 = vpop.eup %4864  ;;  %v796_v9 = vrot.slane %v6186_v29, 4  ;;  %v6218_v10 = vadd.f32 %v803_v52, %v802_v22  ;;  %v7591_v4 = vld [vmem:[#allocation12_spill] sm:$0xff] }
 0x24d   :  { %4874 = vpow2.f32 %v1374_v50  ;;  %v818_v60 = vrot.slane %v817_v57, 1  ;;  %vm1489_vm14 = vweird.f32 %v6168_v12  ;;  %v1575_v15 = vand.u32 2147483648, %v6180_v1 }
 0x24e   :  { %v1476_v6 = vsel %vm1475_vm11, %v4859_v53, %v1472_v25  ;;  %v4867_v16 = vpop.eup %4866  ;;  %v1425_v53 = vsel %vm627_vm2, %v6194_v42, 0.0  ;;  %4545 = vmatmul.msk.f32.gmra.mxu3 %vm627_vm2, %v6079_v3  ;;  %vm1569_vm3 = vweird.f32 %v6180_v1  ;;  %vm874_vm7 = vweird.f32 %v6041_v58 }
 0x24f   :  { %v1481_v38 = vsel %vm1478_vm12, %v1480_v39, %v1476_v6  ;;  %v6209_v37 = vpop.eup %4868  ;;  %v1485_v44 = vmul.f32 %v4867_v16, %v6168_v12  ;;  %vm1490_vm13 = vweird.f32 %v4867_v16  ;;  %v1493_v39 = vand.u32 2147483647, %v6168_v12 }
 0x250   :  { %v1482_v51 = vmul.f32 %v6015_v32, %v1481_v38  ;;  %v898_v32 = vmul.f32 %v5779_v55, %v6192_v48  ;;  %v1426_v3 = vsel %vm627_vm2, %v6209_v37, 0.0  ;;  %v1495_v6 = vand.u32 2147483648, %v6168_v12  ;;  %vm1491_vm0 = vmor %vm1489_vm14, %vm1490_vm13 }
 0x251   :  { %v4871_v5 = vpop.eup %4870  ;;  %v1427_v11 = vadd.f32 %v1426_v3, %v1425_v53  ;;  %v1486_v50 = vsub.f32 1.0, %v1485_v44  ;;  %v6245_v12 = vpop.permute.xlu2 %2303  ;;  %vm1494_vm4 = vcmp.eq.f32.partialorder %v1493_v39, 8.507059e+37  ;;  %vm873_vm8 = vweird.f32 %v5978_v31 }
 0x252   :  { %4530 = vmatmul.msk.f32.vlgmr.msrb.gmra.mxu0 %vm627_vm2, %v1482_v51  ;;  %v6223_v17 = vpop.eup %4872  ;;  %v1565_v21 = vmul.f32 %v4871_v5, %v6180_v1  ;;  %v7592_v51 = vld [vmem:[#allocation11_spill] sm:$0xff]  ;;  %v6239_v30 = vpop.permute.xlu1 %3153  ;;  %vm1570_vm15 = vweird.f32 %v4871_v5  ;;  %vm6309_vm9 = vmor %vm873_vm8, %vm874_vm7 }
 0x253   :  { %1925 = vmatpush.msrb.mxu0 %v7591_v4  ;;  %v6227_v25 = vpop.eup %4874  ;;  %v1434_v55 = vsel %vm627_vm2, %v6223_v17, 0.0  ;;  %v1428_v22 = vrot.slane %v1427_v11, 4  ;;  %v1487_v53 = vmul.f32 %v4867_v16, %v1486_v50  ;;  %v1573_v4 = vand.u32 2147483647, %v6180_v1  ;;  %vm1571_vm5 = vmor %vm1569_vm3, %vm1570_vm15 }
 0x254   :  { %v1435_v52 = vsel %vm627_vm2, %v6227_v25, 0.0  ;;  %v1566_v44 = vsub.f32 1.0, %v1565_v21  ;;  %v1496_v50 = vor.u32 1.1754944e-38, %v1495_v6  ;;  %v1576_v1 = vor.u32 1.1754944e-38, %v1575_v15 }
 0x255   :  { %1926 = vmatpush.msrb.mxu0 %v7592_v51  ;;  %v1436_v3 = vadd.f32 %v1435_v52, %v1434_v55  ;;  %v1429_v36 = vadd.f32 %v1428_v22, %v1427_v11  ;;  %v1488_v41 = vadd.f32 %v4867_v16, %v1487_v53  ;;  %v1483_v51 = vmul.f32 %v6023_v24, %v1481_v38  ;;  %v6251_v52 = vpop.permute.xlu0 %2342 }
 0x256   :  { %v1567_v43 = vmul.f32 %v4871_v5, %v1566_v44  ;;  %4552 = vmatmul.msk.f32.vlgmr.msra.gmra.mxu3 %vm627_vm2, %v898_v32  ;;  %v6249_v22 = vadd.f32 %v818_v60, %v817_v57  ;;  %vm1574_vm6 = vcmp.eq.f32.partialorder %v1573_v4, 8.507059e+37  ;;  %v7597_v44 = vld [vmem:[#allocation13_spill] sm:$0xff] }
 0x257   :  { %v1437_v59 = vrot.slane %v1436_v3, 4  ;;  %v1430_v21 = vrot.slane %v1429_v36, 2  ;;  %4576 = vmatpush.xpose.msk.msra.mxu3 %vm346_vm1, %v5877_v13  ;;  %v1492_v11 = vsel %vm1491_vm0, %v4867_v16, %v1488_v41  ;;  %v7593_v16 = vrot.slane %v5998_v0, 1 }
 0x258   :  { %v1568_v55 = vadd.f32 %v4871_v5, %v1567_v43  ;;  %v1497_v24 = vsel %vm1494_vm4, %v1496_v50, %v1492_v11  ;;  %v797_v43 = vadd.f32 %v796_v9, %v6186_v29  ;;  %v899_v29 = vmul.f32 %v5784_v26, %v6192_v48  ;;  %v7598_v48 = vld [vmem:[#allocation28_spill] sm:$0xff]  ;;  %v7599_v50 = vld [vmem:[#allocation27_spill] sm:$0xff] }
 0x259   :  { %v1438_v32 = vadd.f32 %v1437_v59, %v1436_v3  ;;  %v1431_v38 = vadd.f32 %v1430_v21, %v1429_v36  ;;  %v1498_v6 = vmul.f32 %v6087_v33, %v1497_v24  ;;  %v6264_v36 = vadd.f32 %v7593_v16, %v5998_v0 }
 0x25a   :  { %4531 = vmatmul.msk.f32.gmra.mxu0 %vm627_vm2, %v1483_v51  ;;  %v1572_v53 = vsel %vm1571_vm5, %v4871_v5, %v1568_v55  ;;  %v805_v33 = vrot.slane %v6218_v10, 4  ;;  %v7594_v5 = vld [vmem:[#allocation14_spill] sm:$0xff]  ;;  %4876 = vrcp.f32 %v6249_v22  ;;  %v798_v26 = vrot.slane %v797_v43, 2  ;;  %v6295_v51 = vpop.permute.xlu2 %2344 }
 0x25b   :  { %v1439_v13 = vrot.slane %v1438_v32, 2  ;;  %v1577_v41 = vsel %vm1574_vm6, %v1576_v1, %v1572_v53  ;;  %v1432_v57 = vrot.slane %v1431_v38, 1  ;;  %4577 = vmatpush.xpose.msk.msra.mxu3 %vm346_vm1, %v5733_v47  ;;  %4532 = vmatmul.msk.f32.vlgmr.msrb.gmra.mxu1 %vm627_vm2, %v1498_v6  ;;  %v7595_v47 = vrot.slane %v6124_v20, 1 }
 0x25c   :  { %v1578_v59 = vmul.f32 %v6100_v23, %v1577_v41  ;;  %1954 = vmatpush.msrb.mxu1 %v7594_v5  ;;  %v7596_v23 = vsub.f32 1.0, %v6131_v7  ;;  %v806_v7 = vadd.f32 %v805_v33, %v6218_v10  ;;  %v1499_v21 = vmul.f32 %v6093_v45, %v1497_v24 }
 0x25d   :  { %v1440_v15 = vadd.f32 %v1439_v13, %v1438_v32  ;;  %v6273_v9 = vadd.f32 %v7595_v47, %v6124_v20  ;;  %v6279_v0 = vadd.f32 %v1432_v57, %v1431_v38  ;;  %v6285_v20 = vpop.permute.xlu1 %3038  ;;  %v879_v11 = vand.u32 2147483648, %v5978_v31  ;;  %v6300_v55 = vpop.permute.xlu0 %4713 }
 0x25e   :  { %v871_v60 = vmul.f32 %v6041_v58, %v7596_v23  ;;  %4542 = vmatmul.msk.f32.vlgmr.msra.gmra.mxu2 %vm627_vm2, %v1578_v59  ;;  %1955 = vmatpush.msrb.mxu1 %v7597_v44  ;;  %v877_v32 = vand.u32 2147483647, %v5978_v31  ;;  %v799_v1 = vadd.f32 %v798_v26, %v797_v43  ;;  %v1579_v38 = vmul.f32 %v6107_v18, %v1577_v41 }
 0x25f   :  { %v1441_v39 = vrot.slane %v1440_v15, 1  ;;  %4553 = vmatmul.msk.f32.gmra.mxu3 %vm627_vm2, %v899_v29  ;;  %4878 = vrcp.f32 %v6279_v0  ;;  %2099 = vmatpush.msra.mxu2 %v7598_v48  ;;  %v807_v45 = vrot.slane %v806_v7, 2  ;;  %v4715_v13 = vunpack.i.l.bf16 %v6300_v55 }
 0x260   :  { %4880 = vrcp.f32 %v6264_v36  ;;  %v872_v4 = vadd.f32 %v6041_v58, %v871_v60  ;;  %v6303_v10 = vpop.eup %4876  ;;  %v880_v43 = vor.u32 1.1754944e-38, %v879_v11  ;;  %vm878_vm10 = vcmp.eq.f32.partialorder %v877_v32, 8.507059e+37 }
 0x261   :  { %v6290_v3 = vadd.f32 %v1441_v39, %v1440_v15  ;;  %4882 = vrcp.f32 %v6273_v9  ;;  %2100 = vmatpush.msra.mxu2 %v7599_v50  ;;  %v933_v18 = vmul.f32 %v6303_v10, %v6249_v22  ;;  %v800_v59 = vrot.slane %v799_v1, 1 }
 0x262   :  { %v876_v53 = vsel %vm6309_vm9, %v6041_v58, %v872_v4  ;;  %v4720_v58 = vunpack.i.l.bf16 %v6090_v63  ;;  %v808_v15 = vadd.f32 %v807_v45, %v806_v7  ;;  %v1543_v47 = vand.u32 2147483648, %v6279_v0  ;;  %v6340_v4 = vpop.permute.xlu2 %4723 }
 0x263   :  { %4884 = vrcp.f32 %v6290_v3  ;;  %4533 = vmatmul.msk.f32.gmra.mxu1 %vm627_vm2, %v1499_v21  ;;  %v881_v33 = vsel %vm878_vm10, %v880_v43, %v876_v53  ;;  %v934_v60 = vsub.f32 1.0, %v933_v18  ;;  %v1541_v44 = vand.u32 2147483647, %v6279_v0 }
 0x264   :  { %v882_v48 = vmul.f32 %v5790_v2, %v881_v33  ;;  %v6338_v7 = vadd.f32 %v800_v59, %v799_v1  ;;  %v809_v21 = vrot.slane %v808_v15, 1  ;;  %vm1537_vm12 = vweird.f32 %v6279_v0  ;;  %v7602_v1 = vld [vmem:[#allocation38_spill] sm:$0xff] }
 0x265   :  { %v4879_v24 = vpop.eup %4878  ;;  %v6328_v29 = vpop.permute.xlu1 %3118  ;;  %v1559_v32 = vand.u32 2147483648, %v6290_v3  ;;  %v1557_v45 = vand.u32 2147483647, %v6290_v3  ;;  %v935_v2 = vmul.f32 %v6303_v10, %v934_v60  ;;  %vm1542_vm15 = vcmp.eq.f32.partialorder %v1541_v44, 8.507059e+37 }
 0x266   :  { %4543 = vmatmul.msk.f32.gmra.mxu2 %vm627_vm2, %v1579_v38  ;;  %v6318_v31 = vpop.eup %4880  ;;  %v1533_v41 = vmul.f32 %v4879_v24, %v6279_v0  ;;  %vm1538_vm11 = vweird.f32 %v4879_v24  ;;  %v1544_v38 = vor.u32 1.1754944e-38, %v1543_v47  ;;  %vm1553_vm0 = vweird.f32 %v6290_v3 }
 0x267   :  { %4562 = vmatmul.msk.f32.vlgmr.msrb.gmra.mxu3 %vm346_vm1, %v5828_v8  ;;  %v6325_v57 = vpop.eup %4882  ;;  %v837_v23 = vmul.f32 %v6318_v31, %v6264_v36  ;;  %vm1539_vm13 = vmor %vm1537_vm12, %vm1538_vm11  ;;  %v6352_v18 = vadd.f32 %v809_v21, %v808_v15  ;;  %v1560_v59 = vor.u32 1.1754944e-38, %v1559_v32  ;;  %4886 = vrcp.f32 %v6338_v7  ;;  %v7609_v32 = vld [vmem:[#allocation24_spill] sm:$0xff] }
 0x268   :  { %2766 = vmatpush.msrb.mxu3 %v4715_v13  ;;  %v1534_v5 = vsub.f32 1.0, %v1533_v41  ;;  %v853_v26 = vmul.f32 %v6325_v57, %v6273_v9  ;;  %vm1558_vm4 = vcmp.eq.f32.partialorder %v1557_v45, 8.507059e+37  ;;  %vm938_vm5 = vweird.f32 %v6303_v10 }
 0x269   :  { %v4885_v16 = vpop.eup %4884  ;;  %v838_v0 = vsub.f32 1.0, %v837_v23  ;;  %4888 = vrcp.f32 %v6352_v18  ;;  %vm937_vm6 = vweird.f32 %v6249_v22  ;;  %v941_v23 = vand.u32 2147483647, %v6249_v22 }
 0x26a   :  { %2767 = vmatpush.msrb.mxu3 %v4720_v58  ;;  %v1549_v8 = vmul.f32 %v4885_v16, %v6290_v3  ;;  %v1535_v39 = vmul.f32 %v4879_v24, %v1534_v5  ;;  %vm1554_vm14 = vweird.f32 %v4885_v16  ;;  %v854_v58 = vsub.f32 1.0, %v853_v26  ;;  %vm6372_vm7 = vmor %vm937_vm6, %vm938_vm5  ;;  %v6376_v26 = vpop.permute.xlu2 %4733 }
 0x26b   :  { %vm1555_vm3 = vmor %vm1553_vm0, %vm1554_vm14  ;;  %v839_v15 = vmul.f32 %v6318_v31, %v838_v0  ;;  %v883_v60 = vmul.f32 %v5793_v40, %v881_v33  ;;  %vm842_vm8 = vweird.f32 %v6318_v31  ;;  %vm841_vm9 = vweird.f32 %v6264_v36 }
 0x26c   :  { %v1550_v50 = vsub.f32 1.0, %v1549_v8  ;;  %v1536_v11 = vadd.f32 %v4879_v24, %v1535_v39  ;;  %v7604_v8 = vld [vmem:[#allocation23_spill] sm:$0xff]  ;;  %v855_v39 = vmul.f32 %v6325_v57, %v854_v58  ;;  %vm942_vm10 = vcmp.eq.f32.partialorder %v941_v23, 8.507059e+37  ;;  %vm6402_vm12 = vmor %vm841_vm9, %vm842_vm8 }
 0x26d   :  { %v6363_v47 = vpop.permute.xlu1 %4748  ;;  %v840_v40 = vadd.f32 %v6318_v31, %v839_v15  ;;  %v6388_v33 = vpop.eup %4886  ;;  %vm858_vm11 = vweird.f32 %v6325_v57  ;;  %v861_v0 = vand.u32 2147483647, %v6273_v9  ;;  %v927_v44 = vand.u32 2147483648, %v6352_v18 }
 0x26e   :  { %4550 = vmatmul.msk.f32.vlgmr.msrb.gmra.mxu2 %vm627_vm2, %v882_v48  ;;  %v1551_v6 = vmul.f32 %v4885_v16, %v1550_v50  ;;  %v1540_v53 = vsel %vm1539_vm13, %v4879_v24, %v1536_v11  ;;  %v7603_v24 = vld [vmem:[#allocation37_spill] sm:$0xff]  ;;  %v7608_v50 = vld [vmem:[#allocation26_spill] sm:$0xff]  ;;  %v4735_v11 = vunpack.i.l.bf16 %v6376_v26  ;;  %v856_v45 = vadd.f32 %v6325_v57, %v855_v39 }
 0x26f   :  { %4563 = vmatmul.msk.f32.gmra.mxu3 %vm346_vm1, %v7602_v1  ;;  %4572 = vmatpush.xpose.msk.msrb.mxu2 %vm346_vm1, %v5781_v28  ;;  %v1545_v13 = vsel %vm1542_vm15, %v1544_v38, %v1540_v53  ;;  %v936_v28 = vadd.f32 %v6303_v10, %v935_v2  ;;  %v7607_v48 = vld [vmem:[#allocation21_spill] sm:$0xff]  ;;  %v6406_v1 = vpop.eup %4888  ;;  %v863_v53 = vand.u32 2147483648, %v6273_v9  ;;  %vm857_vm13 = vweird.f32 %v6273_v9 }
 0x270   :  { %v1552_v43 = vadd.f32 %v4885_v16, %v1551_v6  ;;  %v1546_v41 = vmul.f32 %v6194_v42, %v1545_v13  ;;  %v943_v42 = vand.u32 2147483648, %v6249_v22  ;;  %v4750_v22 = vunpack.i.l.bf16 %v6363_v47  ;;  %vm859_vm14 = vmor %vm857_vm13, %vm858_vm11 }
 0x271   :  { %v1547_v38 = vmul.f32 %v6209_v37, %v1545_v13  ;;  %v845_v6 = vand.u32 2147483647, %v6264_v36  ;;  %v901_v37 = vmul.f32 %v6388_v33, %v6338_v7  ;;  %v917_v58 = vmul.f32 %v6406_v1, %v6352_v18 }
 0x272   :  { %v1556_v5 = vsel %vm1555_vm3, %v4885_v16, %v1552_v43  ;;  %4538 = vmatmul.msk.f32.vlgmr.msra.gmra.mxu0 %vm627_vm2, %v1546_v41  ;;  %v944_v21 = vor.u32 1.1754944e-38, %v943_v42  ;;  %vm862_vm0 = vcmp.eq.f32.partialorder %v861_v0, 8.507059e+37  ;;  %vm906_vm3 = vweird.f32 %v6388_v33 }
 0x273   :  { %4573 = vmatpush.xpose.msk.msrb.mxu2 %vm346_vm1, %v7603_v24  ;;  %v1561_v3 = vsel %vm1558_vm4, %v1560_v59, %v1556_v5  ;;  %2041 = vmatpush.msra.mxu0 %v7604_v8  ;;  %vm846_vm15 = vcmp.eq.f32.partialorder %v845_v6, 8.507059e+37  ;;  %v860_v59 = vsel %vm859_vm14, %v6325_v57, %v856_v45  ;;  %v918_v57 = vsub.f32 1.0, %v917_v58  ;;  %v7614_v8 = vld [vmem:[#allocation17_spill] sm:$0xff]  ;;  %v7630_v58 = vld [vmem:[#allocation20_spill] sm:$0xff] }
 0x274   :  { %v1562_v16 = vmul.f32 %v6223_v17, %v1561_v3  ;;  %v940_v17 = vsel %vm6372_vm7, %v6303_v10, %v936_v28  ;;  %v847_v10 = vand.u32 2147483648, %v6264_v36  ;;  %v844_v36 = vsel %vm6402_vm12, %v6318_v31, %v840_v40  ;;  %v7620_v45 = vld [vmem:[#allocation33_spill] sm:$0xff] }
 0x275   :  { %2042 = vmatpush.msra.mxu0 %v7607_v48  ;;  %v945_v2 = vsel %vm942_vm10, %v944_v21, %v940_v17  ;;  %v1563_v13 = vmul.f32 %v6227_v25, %v1561_v3  ;;  %v864_v31 = vor.u32 1.1754944e-38, %v863_v53  ;;  %v902_v28 = vsub.f32 1.0, %v901_v37  ;;  %v7612_v25 = vld [vmem:[#allocation39_spill] sm:$0xff]  ;;  %v7613_v3 = vld [vmem:[#allocation25_spill] sm:$0xff] }
 0x276   :  { %4540 = vmatmul.msk.f32.vlgmr.msra.gmra.mxu1 %vm627_vm2, %v1562_v16  ;;  %4551 = vmatmul.msk.f32.gmra.mxu2 %vm627_vm2, %v883_v60  ;;  %v848_v43 = vor.u32 1.1754944e-38, %v847_v10  ;;  %v946_v41 = vmul.f32 %v6051_v56, %v945_v2  ;;  %v7615_v16 = vld [vmem:[#allocation16_spill] sm:$0xff]  ;;  %vm905_vm4 = vweird.f32 %v6338_v7  ;;  %vm922_vm6 = vweird.f32 %v6406_v1  ;;  %v7617_v48 = vld [vmem:[#allocation41_spill] sm:$0xff] }
 0x277   :  { %2070 = vmatpush.msra.mxu1 %v7608_v50  ;;  %4578 = vmatmul.msk.f32.vlgmr.msra.gmra.mxu3 %vm346_vm1, %v6038_v27  ;;  %v865_v56 = vsel %vm862_vm0, %v864_v31, %v860_v59  ;;  %v903_v24 = vmul.f32 %v6388_v33, %v902_v28  ;;  %vm907_vm5 = vmor %vm905_vm4, %vm906_vm3  ;;  %vm921_vm7 = vweird.f32 %v6352_v18  ;;  %v928_v10 = vor.u32 1.1754944e-38, %v927_v44  ;;  %v7628_v59 = vld [vmem:[#allocation19_spill] sm:$0xff] }
 0x278   :  { %2906 = vmatpush.msra.mxu3 %v4750_v22  ;;  %v849_v5 = vsel %vm846_vm15, %v848_v43, %v844_v36  ;;  %v866_v15 = vmul.f32 %v7613_v3, %v865_v56  ;;  %v7618_v22 = vld [vmem:[#allocation43_spill] sm:$0xff]  ;;  %vm923_vm9 = vmor %vm921_vm7, %vm922_vm6  ;;  %v4751_v53 = vunpack.i.h.bf16 %v6363_v47  ;;  %v4736_v37 = vunpack.i.h.bf16 %v6376_v26  ;;  %v7626_v36 = vld [vmem:[#allocation42_spill] sm:$0xff] }
 0x279   :  { %2071 = vmatpush.msra.mxu1 %v7609_v32  ;;  %v850_v9 = vmul.f32 %v7612_v25, %v849_v5  ;;  %v904_v42 = vadd.f32 %v6388_v33, %v903_v24  ;;  %v867_v50 = vmul.f32 %v7618_v22, %v865_v56  ;;  %v4721_v32 = vunpack.i.h.bf16 %v6090_v63  ;;  %v7627_v47 = vld [vmem:[#allocation30_spill] sm:$0xff]  ;;  %v7632_v24 = vld [vmem:[#allocation15_spill] sm:$0xff] }
 0x27a   :  { %4539 = vmatmul.msk.f32.gmra.mxu0 %vm627_vm2, %v1547_v38  ;;  %2907 = vmatpush.msra.mxu3 %v4735_v11  ;;  %v7619_v11 = vld [vmem:[#allocation31_spill] sm:$0xff] }
 0x27b   :  { %v908_v39 = vsel %vm907_vm5, %v6388_v33, %v904_v42  ;;  %v4716_v33 = vunpack.i.h.bf16 %v6300_v55  ;;  %v7621_v55 = vld [vmem:[#allocation32_spill] sm:$0xff] }
 0x27e   :  { %4541 = vmatmul.msk.f32.gmra.mxu1 %vm627_vm2, %v1563_v13  ;;  %4558 = vmatmul.msk.f32.vlgmr.msra.gmra.mxu2 %vm627_vm2, %v946_v41  ;;  %v4726_v13 = vunpack.i.h.bf16 %v6340_v4  ;;  %v6496_v26 = vpop.f32.mrf.mxu3 }
 0x27f   :  { %4579 = vmatmul.msk.f32.gmra.mxu3 %vm346_vm1, %v6113_v46  ;;  %4588 = vmatpush.xpose.msk.msra.mxu2 %vm346_vm1, %v5713_v14  ;;  %v947_v46 = vmul.f32 %v6061_v49, %v945_v2  ;;  %v919_v14 = vmul.f32 %v6406_v1, %v918_v57  ;;  %v7616_v49 = vld [vmem:[#allocation40_spill] sm:$0xff]  ;;  %v7623_v2 = vld [vmem:[#allocation22_spill] sm:$0xff]  ;;  %7629 = vst [vmem:[#allocation12_spill] sm:$0xff] %v6496_v26 }
 0x280   :  { %v851_v23 = vmul.f32 %v7616_v49, %v849_v5  ;;  %v7631_v5 = vld [vmem:[#allocation18_spill] sm:$0xff] }
 0x281   :  { %v920_v60 = vadd.f32 %v6406_v1, %v919_v14 }
 0x282   :  { %4546 = vmatmul.msk.f32.vlgmr.msrb.gmra.mxu0 %vm627_vm2, %v850_v9 }
 0x283   :  { %4564 = vmatpush.xpose.msk.msrb.mxu0 %vm346_vm1, %v5925_v62  ;;  %4589 = vmatpush.xpose.msk.msra.mxu2 %vm346_vm1, %v5980_v35  ;;  %v911_v62 = vand.u32 2147483648, %v6338_v7  ;;  %v909_v35 = vand.u32 2147483647, %v6338_v7  ;;  %v925_v7 = vand.u32 2147483647, %v6352_v18  ;;  %v924_v21 = vsel %vm923_vm9, %v6406_v1, %v920_v60  ;;  %v4729_v1 = vpop.permute.xlu0 %4728 }
 0x284   :  { %v4730_v0 = vunpack.i.l.bf16 %v4729_v1  ;;  %v4731_v43 = vunpack.i.h.bf16 %v4729_v1 }
 0x285   :  { %v912_v17 = vor.u32 1.1754944e-38, %v911_v62  ;;  %vm910_vm8 = vcmp.eq.f32.partialorder %v909_v35, 8.507059e+37  ;;  %vm926_vm10 = vcmp.eq.f32.partialorder %v925_v7, 8.507059e+37 }
 0x286   :  { %4548 = vmatmul.msk.f32.vlgmr.msrb.gmra.mxu1 %vm627_vm2, %v866_v15  ;;  %4559 = vmatmul.msk.f32.gmra.mxu2 %vm627_vm2, %v947_v46  ;;  %v929_v38 = vsel %vm926_vm10, %v928_v10, %v924_v21  ;;  %v1614_v28 = vpop.f32.mrf.mxu3 }
 0x287   :  { %4568 = vmatpush.xpose.msk.msrb.mxu1 %vm346_vm1, %v7614_v8  ;;  %4565 = vmatpush.xpose.msk.msrb.mxu0 %vm346_vm1, %v7615_v16  ;;  %v913_v40 = vsel %vm910_vm8, %v912_v17, %v908_v39  ;;  %v930_v6 = vmul.f32 %v6172_v61, %v929_v38  ;;  %v7624_v61 = vld [vmem:[#allocation34_spill] sm:$0xff] }
 0x288   :  { %v914_v18 = vmul.f32 %v6121_v54, %v913_v40  ;;  %v7622_v54 = vld [vmem:[#allocation35_spill] sm:$0xff]  ;;  %v931_v27 = vmul.f32 %v7624_v61, %v929_v38 }
 0x289   :  { %v915_v63 = vmul.f32 %v7622_v54, %v913_v40 }
 0x28a   :  { %4547 = vmatmul.msk.f32.gmra.mxu0 %vm627_vm2, %v851_v23 }
 0x28b   :  { %4569 = vmatpush.xpose.msk.msrb.mxu1 %vm346_vm1, %v7617_v48  ;;  %v4739_v41 = vpop.permute.xlu0 %4738 }
 0x28c   :  { %v4740_v31 = vunpack.i.l.bf16 %v4739_v41  ;;  %v4741_v25 = vunpack.i.h.bf16 %v4739_v41 }
 0x28e   :  { %4549 = vmatmul.msk.f32.gmra.mxu1 %vm627_vm2, %v867_v50  ;;  %4574 = vmatmul.msk.f32.vlgmr.msrb.gmra.mxu2 %vm346_vm1, %v7619_v11 }
 0x28f   :  { %2871 = vmatpush.msrb.mxu2 %v4716_v33 }
 0x291   :  { %2872 = vmatpush.msrb.mxu2 %v4721_v32 }
 0x292   :  { %4554 = vmatmul.msk.f32.vlgmr.msra.gmra.mxu0 %vm627_vm2, %v914_v18 }
 0x293   :  { %4580 = vmatpush.xpose.msk.msra.mxu0 %vm346_vm1, %v7620_v45 }
 0x296   :  { %4556 = vmatmul.msk.f32.vlgmr.msra.gmra.mxu1 %vm627_vm2, %v930_v6  ;;  %4575 = vmatmul.msk.f32.gmra.mxu2 %vm346_vm1, %v7621_v55 }
 0x297   :  { %4584 = vmatpush.xpose.msk.msra.mxu1 %vm346_vm1, %v6200_v34  ;;  %4581 = vmatpush.xpose.msk.msra.mxu0 %vm346_vm1, %v6203_v19  ;;  %v7625_v34 = vld [vmem:[#allocation29_spill] sm:$0xff]  ;;  %v4725_v19 = vunpack.i.l.bf16 %v6340_v4  ;;  %v4744_v4 = vpop.permute.xlu0 %4743 }
 0x298   :  { %v4745_v56 = vunpack.i.l.bf16 %v4744_v4  ;;  %v4746_v9 = vunpack.i.h.bf16 %v4744_v4 }
 0x29a   :  { %4555 = vmatmul.msk.f32.gmra.mxu0 %vm627_vm2, %v915_v63 }
 0x29b   :  { %4585 = vmatpush.xpose.msk.msra.mxu1 %vm346_vm1, %v7623_v2 }
 0x29e   :  { %4557 = vmatmul.msk.f32.gmra.mxu1 %vm627_vm2, %v931_v27  ;;  %4590 = vmatmul.msk.f32.vlgmr.msra.gmra.mxu2 %vm346_vm1, %v7625_v34 }
 0x29f   :  { %3011 = vmatpush.msra.mxu2 %v4751_v53  ;;  %v6524_v7 = vpop.permute.xlu0 %3036 }
 0x2a1   :  { %3012 = vmatpush.msra.mxu2 %v4736_v37 }
 0x2a2   :  { %4566 = vmatmul.msk.f32.vlgmr.msrb.gmra.mxu0 %vm346_vm1, %v7626_v36 }
 0x2a3   :  { %2801 = vmatpush.msrb.mxu0 %v4725_v19 }
 0x2a5   :  { %2802 = vmatpush.msrb.mxu0 %v4730_v0 }
 0x2a6   :  { %4570 = vmatmul.msk.f32.vlgmr.msrb.gmra.mxu1 %vm346_vm1, %v7627_v47  ;;  %4591 = vmatmul.msk.f32.gmra.mxu2 %vm346_vm1, %v7628_v59 }
 0x2a7   :  { %2836 = vmatpush.msrb.mxu1 %v4726_v13  ;;  %v6534_v18 = vpop.permute.xlu0 %3120 }
 0x2a9   :  { %2837 = vmatpush.msrb.mxu1 %v4731_v43 }
 0x2aa   :  { %4567 = vmatmul.msk.f32.gmra.mxu0 %vm346_vm1, %v7630_v58 }
 0x2ae   :  { %4571 = vmatmul.msk.f32.gmra.mxu1 %vm346_vm1, %v7631_v5 }
 0x2af   :  { %v6544_v34 = vpop.permute.xlu0 %3079 }
 0x2b2   :  { %4582 = vmatmul.msk.f32.vlgmr.msra.gmra.mxu0 %vm346_vm1, %v6245_v12  ;;  %v6512_v12 = vpop.f32.mrf.mxu2 }
 0x2b3   :  { %2941 = vmatpush.msra.mxu0 %v4740_v31  ;;  %7634 = vst [vmem:[#allocation14_spill] sm:$0xff] %v6512_v12 }
 0x2b5   :  { %2942 = vmatpush.msra.mxu0 %v4745_v56 }
 0x2b6   :  { %4586 = vmatmul.msk.f32.vlgmr.msra.gmra.mxu1 %vm346_vm1, %v6251_v52  ;;  %v6516_v52 = vpop.permute.xlu2 %3159 }
 0x2b7   :  { %2976 = vmatpush.msra.mxu1 %v4741_v25 }
 0x2b9   :  { %2977 = vmatpush.msra.mxu1 %v4746_v9  ;;  %v1759_v57 = vpop.f32.mrf.mxu3 }
 0x2ba   :  { %4583 = vmatmul.msk.f32.gmra.mxu0 %vm346_vm1, %v7632_v24  ;;  %v1725_v42 = vpop.f32.mrf.mxu2 }
 0x2be   :  { %4587 = vmatmul.msk.f32.gmra.mxu1 %vm346_vm1, %v6295_v51  ;;  %v6522_v51 = vpop.permute.xlu2 %3157 }
 0x2c1   :  { %v1762_v3 = vpop.f32.mrf.mxu3 }
 0x2c6   :  { %v6526_v22 = vpop.permute.xlu2 %3081 }
 0x2c9   :  { %v6510_v15 = vpop.f32.mrf.mxu3 }
 0x2ca   :  { %7633 = vst [vmem:[#allocation11_spill] sm:$0xff] %v6510_v15 }
 0x2ce   :  { %v6536_v6 = vpop.permute.xlu2 %3155 }
 0x2cf   :  { %v1648_v16 = vpop.f32.mrf.mxu0 }
 0x2d1   :  { %v1902_v46 = vpop.f32.mrf.mxu3 }
 0x2d2   :  { %v6514_v14 = vadd.f32 %v1902_v46, %v1614_v28  ;;  %v6558_v46 = vpop.permute.xlu0 %3315 }
 0x2d4   :  { %7635 = vst [vmem:[#allocation13_spill] sm:$0xff] %v6514_v14 }
 0x2d6   :  { %v6548_v0 = vpop.permute.xlu2 %3198 }
 0x2d7   :  { %v1651_v39 = vpop.f32.mrf.mxu0 }
 0x2d8   :  { %v1685_v35 = vpop.f32.mrf.mxu1 }
 0x2d9   :  { %v2015_v8 = vpop.f32.mrf.mxu3 }
 0x2da   :  { %v6518_v62 = vadd.f32 %v2015_v8, %v1759_v57 }
 0x2dc   :  { %7636 = vst [vmem:[#allocation28_spill] sm:$0xff] %v6518_v62 }
 0x2e0   :  { %v1688_v17 = vpop.f32.mrf.mxu1 }
 0x2e1   :  { %v1870_v49 = vpop.f32.mrf.mxu2 }
 0x2e2   :  { %v2018_v23 = vpop.f32.mrf.mxu3 }
 0x2e3   :  { %v6520_v60 = vadd.f32 %v2018_v23, %v1762_v3 }
 0x2e5   :  { %7637 = vst [vmem:[#allocation27_spill] sm:$0xff] %v6520_v60 }
 0x2e9   :  { %v1873_v44 = vpop.f32.mrf.mxu2 }
 0x2ea   :  { %v2141_v48 = vpop.f32.mrf.mxu3 }
 0x2eb   :  { %v2420_v33 = vsel %vm627_vm2, %v2141_v48, -inf }
 0x2ef   :  { %v1796_v50 = vpop.f32.mrf.mxu0 }
 0x2f1   :  { %v6528_v40 = vpop.f32.mrf.mxu2 }
 0x2f2   :  { %7638 = vst [vmem:[#allocation38_spill] sm:$0xff] %v6528_v40  ;;  %v2144_v21 = vpop.f32.mrf.mxu3 }
 0x2f3   :  { %v6531_v10 = vpop.f32.mrf.mxu1  ;;  %v2421_v11 = vsel %vm627_vm2, %v2144_v21, -inf }
 0x2f4   :  { %v2422_v32 = vmax.f32 %v2420_v33, %v2421_v11  ;;  %v6570_v33 = vpop.permute.xlu1 %3075 }
 0x2f6   :  { %v2423_v38 = vrot.slane %v2422_v32, 4 }
 0x2f7   :  { %v6538_v55 = vpop.f32.mrf.mxu0 }
 0x2f8   :  { %v2424_v45 = vmax.f32 %v2422_v32, %v2423_v38 }
 0x2f9   :  { %v1989_v63 = vpop.f32.mrf.mxu2 }
 0x2fa   :  { %v2425_v54 = vrot.slane %v2424_v45, 2  ;;  %v6542_v61 = vadd.f32 %v1989_v63, %v1725_v42  ;;  %v2297_v27 = vpop.f32.mrf.mxu3 }
 0x2fb   :  { %v6540_v2 = vpop.f32.mrf.mxu1  ;;  %v2456_v41 = vsel %vm627_vm2, %v2297_v27, -inf }
 0x2fc   :  { %7639 = vst [vmem:[#allocation37_spill] sm:$0xff] %v6542_v61  ;;  %v2426_v1 = vmax.f32 %v2424_v45, %v2425_v54 }
 0x2fe   :  { %v2427_v53 = vrot.slane %v2426_v1, 1 }
 0x2ff   :  { %v1928_v19 = vpop.f32.mrf.mxu0 }
 0x300   :  { %v2428_v37 = vmax.f32 %v2426_v1, %v2427_v53  ;;  %v6546_v36 = vadd.f32 %v1928_v19, %v1648_v16 }
 0x301   :  { %v2102_v43 = vpop.f32.mrf.mxu2 }
 0x302   :  { %7640 = vst [vmem:[#allocation23_spill] sm:$0xff] %v6546_v36  ;;  %v2492_v13 = vsub.f32 %v2141_v48, %v2428_v37  ;;  %v2493_v47 = vsub.f32 %v2144_v21, %v2428_v37  ;;  %v6551_v58 = vadd.f32 %v2102_v43, %v1870_v49  ;;  %v2300_v5 = vpop.f32.mrf.mxu3 }
 0x303   :  { %v1957_v59 = vpop.f32.mrf.mxu1  ;;  %v2457_v56 = vsel %vm627_vm2, %v2300_v5, -inf }
 0x304   :  { %7641 = vst [vmem:[#allocation21_spill] sm:$0xff] %v6551_v58  ;;  %v2508_v4 = vmul.f32 1.442695, %v2492_v13  ;;  %v2510_v31 = vmul.f32 1.442695, %v2493_v47  ;;  %v6553_v28 = vadd.f32 %v1957_v59, %v1685_v35  ;;  %v2458_v25 = vmax.f32 %v2456_v41, %v2457_v56  ;;  %v6564_v35 = vpop.permute.xlu2 %3114  ;;  %v6580_v47 = vpop.permute.xlu0 %3196 }
 0x305   :  { %7645 = vst [vmem:[#allocation25_spill] sm:$0xff] %v6564_v35  ;;  %v6587_v56 = vpop.permute.xlu1 %3313 }
 0x306   :  { %7642 = vst [vmem:[#allocation26_spill] sm:$0xff] %v6553_v28  ;;  %4890 = vpow2.f32 %v2508_v4  ;;  %v2459_v9 = vrot.slane %v2458_v25, 4 }
 0x307   :  { %4892 = vpow2.f32 %v2510_v31  ;;  %v1931_v57 = vpop.f32.mrf.mxu0 }
 0x308   :  { %v2460_v24 = vmax.f32 %v2458_v25, %v2459_v9  ;;  %v6556_v3 = vadd.f32 %v1931_v57, %v1651_v39 }
 0x309   :  { %v2105_v42 = vpop.f32.mrf.mxu2 }
 0x30a   :  { %7643 = vst [vmem:[#allocation24_spill] sm:$0xff] %v6556_v3  ;;  %v2461_v8 = vrot.slane %v2460_v24, 2  ;;  %v6560_v49 = vadd.f32 %v2105_v42, %v1873_v44 }
 0x30b   :  { %v1960_v16 = vpop.f32.mrf.mxu1 }
 0x30c   :  { %7644 = vst [vmem:[#allocation39_spill] sm:$0xff] %v6560_v49  ;;  %v6562_v23 = vpop.eup %4890  ;;  %v6566_v48 = vadd.f32 %v1960_v16, %v1688_v17  ;;  %v2462_v11 = vmax.f32 %v2460_v24, %v2461_v8  ;;  %v6585_v31 = vpop.permute.xlu2 %3192 }
 0x30d   :  { %v6568_v21 = vpop.eup %4892  ;;  %v2540_v39 = vsel %vm627_vm2, %v6562_v23, 0.0 }
 0x30e   :  { %7646 = vst [vmem:[#allocation17_spill] sm:$0xff] %v6566_v48  ;;  %v2541_v32 = vsel %vm627_vm2, %v6568_v21, 0.0  ;;  %v2463_v44 = vrot.slane %v2462_v11, 1 }
 0x30f   :  { %v2542_v38 = vadd.f32 %v2541_v32, %v2540_v39  ;;  %v2044_v45 = vpop.f32.mrf.mxu0  ;;  %v6602_v32 = vpop.permute.xlu0 %3309 }
 0x310   :  { %v2464_v63 = vmax.f32 %v2462_v11, %v2463_v44  ;;  %v6576_v1 = vadd.f32 %v2044_v45, %v1796_v50  ;;  %7651 = vst [vmem:[#allocation31_spill] sm:$0xff] %v6602_v32 }
 0x311   :  { %v2543_v54 = vrot.slane %v2542_v38, 4  ;;  %v6578_v17 = vpop.f32.mrf.mxu2 }
 0x312   :  { %7647 = vst [vmem:[#allocation16_spill] sm:$0xff] %v6576_v1  ;;  %v2500_v37 = vsub.f32 %v2297_v27, %v2464_v63  ;;  %v2501_v19 = vsub.f32 %v2300_v5, %v2464_v63 }
 0x313   :  { %v2544_v53 = vadd.f32 %v2543_v54, %v2542_v38  ;;  %v2073_v13 = vpop.f32.mrf.mxu1 }
 0x314   :  { %v6583_v43 = vadd.f32 %v2073_v13, %v6531_v10  ;;  %v2524_v59 = vmul.f32 1.442695, %v2500_v37  ;;  %v2526_v4 = vmul.f32 1.442695, %v2501_v19  ;;  %v2447_v10 = vsel %vm627_vm2, %v6578_v17, -inf  ;;  %v6608_v45 = vpop.permute.xlu2 %3116 }
 0x315   :  { %v2545_v41 = vrot.slane %v2544_v53, 2  ;;  %7652 = vst [vmem:[#allocation33_spill] sm:$0xff] %v6608_v45 }
 0x316   :  { %7648 = vst [vmem:[#allocation40_spill] sm:$0xff] %v6583_v43  ;;  %4894 = vpow2.f32 %v2524_v59 }
 0x317   :  { %v2546_v50 = vadd.f32 %v2545_v41, %v2544_v53  ;;  %4896 = vpow2.f32 %v2526_v4  ;;  %v2047_v25 = vpop.f32.mrf.mxu0  ;;  %v6612_v53 = vpop.permute.xlu1 %3077 }
 0x318   :  { %v6590_v27 = vadd.f32 %v2047_v25, %v6538_v55  ;;  %7653 = vst [vmem:[#allocation32_spill] sm:$0xff] %v6612_v53 }
 0x319   :  { %v2547_v9 = vrot.slane %v2546_v50, 1  ;;  %v2261_v5 = vpop.f32.mrf.mxu2 }
 0x31a   :  { %7649 = vst [vmem:[#allocation41_spill] sm:$0xff] %v6590_v27  ;;  %v2448_v42 = vsel %vm627_vm2, %v2261_v5, -inf }
 0x31b   :  { %v2548_v57 = vadd.f32 %v2547_v9, %v2546_v50  ;;  %v2076_v24 = vpop.f32.mrf.mxu1  ;;  %v2449_v16 = vmax.f32 %v2447_v10, %v2448_v42 }
 0x31c   :  { %v6596_v8 = vadd.f32 %v2076_v24, %v6540_v2  ;;  %v6598_v39 = vpop.eup %4894 }
 0x31d   :  { %4898 = vrcp.f32 %v2548_v57  ;;  %v6600_v11 = vpop.eup %4896  ;;  %v2576_v55 = vsel %vm627_vm2, %v6598_v39, 0.0  ;;  %v2450_v38 = vrot.slane %v2449_v16, 4  ;;  %v2621_v9 = vand.u32 2147483647, %v2548_v57 }
 0x31e   :  { %7650 = vst [vmem:[#allocation43_spill] sm:$0xff] %v6596_v8  ;;  %v2577_v44 = vsel %vm627_vm2, %v6600_v11, 0.0  ;;  %vm2617_vm12 = vweird.f32 %v2548_v57 }
 0x31f   :  { %v2578_v54 = vadd.f32 %v2577_v44, %v2576_v55  ;;  %v2451_v2 = vmax.f32 %v2449_v16, %v2450_v38  ;;  %v6610_v63 = vpop.f32.mrf.mxu0  ;;  %v2623_v55 = vand.u32 2147483648, %v2548_v57  ;;  %v6618_v16 = vpop.permute.xlu0 %3237  ;;  %vm6622_vm13 = vcmp.eq.f32.partialorder %v2621_v9, 8.507059e+37 }
 0x321   :  { %v2579_v37 = vrot.slane %v2578_v54, 4  ;;  %v2452_v19 = vrot.slane %v2451_v2, 2  ;;  %v6614_v13 = vpop.f32.mrf.mxu2  ;;  %v2624_v9 = vor.u32 1.1754944e-38, %v2623_v55 }
 0x323   :  { %v4899_v41 = vpop.eup %4898  ;;  %v6616_v59 = vpop.f32.mrf.mxu1  ;;  %v2580_v50 = vadd.f32 %v2579_v37, %v2578_v54  ;;  %v2453_v25 = vmax.f32 %v2451_v2, %v2452_v19  ;;  %v2429_v54 = vsel %vm627_vm2, %v6610_v63, -inf }
 0x324   :  { %v2613_v4 = vmul.f32 %v4899_v41, %v2548_v57  ;;  %vm2618_vm11 = vweird.f32 %v4899_v41  ;;  %v6630_v37 = vpop.permute.xlu2 %3194  ;;  %v6635_v57 = vpop.permute.xlu1 %3276 }
 0x325   :  { %v2581_v24 = vrot.slane %v2580_v50, 2  ;;  %v2454_v42 = vrot.slane %v2453_v25, 1  ;;  %vm2619_vm14 = vmor %vm2617_vm12, %vm2618_vm11 }
 0x326   :  { %v2614_v10 = vsub.f32 1.0, %v2613_v4 }
 0x327   :  { %v2582_v44 = vadd.f32 %v2581_v24, %v2580_v50  ;;  %v2455_v8 = vmax.f32 %v2453_v25, %v2454_v42  ;;  %v6620_v27 = vpop.f32.mrf.mxu0  ;;  %v2483_v24 = vsel %vm627_vm2, %v6614_v13, -inf }
 0x328   :  { %v2615_v38 = vmul.f32 %v4899_v41, %v2614_v10  ;;  %v2430_v2 = vsel %vm627_vm2, %v6620_v27, -inf }
 0x329   :  { %v2583_v4 = vrot.slane %v2582_v44, 1  ;;  %v2498_v50 = vsub.f32 %v6578_v17, %v2455_v8  ;;  %v2499_v25 = vsub.f32 %v2261_v5, %v2455_v8  ;;  %v6633_v10 = vpop.f32.mrf.mxu2  ;;  %v2431_v42 = vmax.f32 %v2429_v54, %v2430_v2 }
 0x32a   :  { %v2616_v19 = vadd.f32 %v4899_v41, %v2615_v38  ;;  %v2484_v38 = vsel %vm627_vm2, %v6633_v10, -inf  ;;  %v2438_v2 = vsel %vm627_vm2, %v6616_v59, -inf }
 0x32b   :  { %v6640_v1 = vpop.f32.mrf.mxu1  ;;  %v6644_v58 = vadd.f32 %v2583_v4, %v2582_v44  ;;  %v2520_v17 = vmul.f32 1.442695, %v2498_v50  ;;  %v2522_v5 = vmul.f32 1.442695, %v2499_v25  ;;  %v2432_v48 = vrot.slane %v2431_v42, 4  ;;  %v7656_v25 = vld [vmem:[#allocation36_spill] sm:$0xff] }
 0x32c   :  { %v2620_v49 = vsel %vm2619_vm14, %v4899_v41, %v2616_v19  ;;  %v2439_v55 = vsel %vm627_vm2, %v6640_v1, -inf  ;;  %v2485_v3 = vmax.f32 %v2483_v24, %v2484_v38 }
 0x32d   :  { %v2625_v8 = vsel %vm6622_vm13, %v2624_v9, %v2620_v49  ;;  %4900 = vrcp.f32 %v6644_v58  ;;  %v2433_v41 = vmax.f32 %v2431_v42, %v2432_v48  ;;  %v2440_v44 = vmax.f32 %v2438_v2, %v2439_v55  ;;  %v6670_v2 = vpop.permute.xlu1 %3235 }
 0x32e   :  { %v2626_v54 = vmul.f32 %v6562_v23, %v2625_v8  ;;  %4902 = vpow2.f32 %v2520_v17  ;;  %v2486_v19 = vrot.slane %v2485_v3, 4  ;;  %v2685_v49 = vand.u32 2147483647, %v6644_v58  ;;  %v6660_v23 = vpop.permute.xlu0 %3311 }
 0x32f   :  { %4904 = vpow2.f32 %v2522_v5  ;;  %v6654_v4 = vpop.f32.mrf.mxu0  ;;  %v2434_v43 = vrot.slane %v2433_v41, 2  ;;  %v2441_v50 = vrot.slane %v2440_v44, 4  ;;  %7657 = vst [vmem:[#allocation35_spill] sm:$0xff] %v6660_v23  ;;  %v2687_v9 = vand.u32 2147483648, %v6644_v58 }
 0x330   :  { %4592 = vmatmul.msk.f32.vlgmr.msrb.gmra.mxu3 %vm627_vm2, %v2626_v54  ;;  %v2487_v24 = vmax.f32 %v2485_v3, %v2486_v19  ;;  %vm2681_vm15 = vweird.f32 %v6644_v58  ;;  %v6668_v54 = vpop.permute.xlu2 %3274  ;;  %vm6673_vm0 = vcmp.eq.f32.partialorder %v2685_v49, 8.507059e+37  ;;  %v2627_v61 = vmul.f32 %v6568_v21, %v2625_v8 }
 0x331   :  { %4608 = vmatpush.xpose.msk.msrb.mxu3 %vm346_vm1, %v7656_v25  ;;  %v2435_v48 = vmax.f32 %v2433_v41, %v2434_v43  ;;  %v2442_v42 = vmax.f32 %v2440_v44, %v2441_v50  ;;  %v7660_v44 = vld [vmem:[#allocation44_spill] sm:$0xff]  ;;  %v2688_v43 = vor.u32 1.1754944e-38, %v2687_v9 }
 0x332   :  { %v2488_v5 = vrot.slane %v2487_v24, 2 }
 0x333   :  { %v6663_v38 = vpop.f32.mrf.mxu1  ;;  %v4901_v17 = vpop.eup %4900  ;;  %v2436_v3 = vrot.slane %v2435_v48, 1  ;;  %v2443_v41 = vrot.slane %v2442_v42, 2 }
 0x334   :  { %v6666_v55 = vpop.eup %4902  ;;  %v2677_v25 = vmul.f32 %v4901_v17, %v6644_v58  ;;  %v2489_v36 = vmax.f32 %v2487_v24, %v2488_v5  ;;  %vm2682_vm3 = vweird.f32 %v4901_v17 }
 0x335   :  { %4609 = vmatpush.xpose.msk.msrb.mxu3 %vm346_vm1, %v7660_v44  ;;  %v6679_v19 = vpop.eup %4904  ;;  %v2567_v50 = vsel %vm627_vm2, %v6666_v55, 0.0  ;;  %v2437_v12 = vmax.f32 %v2435_v48, %v2436_v3  ;;  %v2444_v60 = vmax.f32 %v2442_v42, %v2443_v41  ;;  %v2465_v44 = vsel %vm627_vm2, %v6654_v4, -inf  ;;  %vm2683_vm4 = vmor %vm2681_vm15, %vm2682_vm3 }
 0x336   :  { %v2678_v40 = vsub.f32 1.0, %v2677_v25  ;;  %v2568_v49 = vsel %vm627_vm2, %v6679_v19, 0.0  ;;  %v2490_v14 = vrot.slane %v2489_v36, 1  ;;  %v2474_v48 = vsel %vm627_vm2, %v6663_v38, -inf  ;;  %v6697_v26 = vpop.permute.xlu0 %3231 }
 0x337   :  { %v2569_v62 = vadd.f32 %v2568_v49, %v2567_v50  ;;  %v6688_v15 = vpop.f32.mrf.mxu0  ;;  %v2494_v24 = vsub.f32 %v6610_v63, %v2437_v12  ;;  %v2495_v21 = vsub.f32 %v6620_v27, %v2437_v12  ;;  %v2445_v8 = vrot.slane %v2444_v60, 1  ;;  %7661 = vst [vmem:[#allocation22_spill] sm:$0xff] %v6697_v26 }
 0x338   :  { %4593 = vmatmul.msk.f32.gmra.mxu3 %vm627_vm2, %v2627_v61  ;;  %v2679_v9 = vmul.f32 %v4901_v17, %v2678_v40  ;;  %v2491_v25 = vmax.f32 %v2489_v36, %v2490_v14  ;;  %v2466_v42 = vsel %vm627_vm2, %v6688_v15, -inf }
 0x339   :  { %v2570_v5 = vrot.slane %v2569_v62, 4  ;;  %v2512_v41 = vmul.f32 1.442695, %v2494_v24  ;;  %v2514_v50 = vmul.f32 1.442695, %v2495_v21  ;;  %v2446_v49 = vmax.f32 %v2444_v60, %v2445_v8 }
 0x33a   :  { %v2680_v3 = vadd.f32 %v4901_v17, %v2679_v9  ;;  %v2506_v40 = vsub.f32 %v6614_v13, %v2491_v25  ;;  %v2507_v14 = vsub.f32 %v6633_v10, %v2491_v25  ;;  %v2467_v61 = vmax.f32 %v2465_v44, %v2466_v42  ;;  %v6712_v13 = vpop.permute.xlu1 %3270 }
 0x33b   :  { %v2571_v12 = vadd.f32 %v2570_v5, %v2569_v62  ;;  %4906 = vpow2.f32 %v2512_v41  ;;  %v2496_v27 = vsub.f32 %v6616_v59, %v2446_v49  ;;  %v2497_v63 = vsub.f32 %v6640_v1, %v2446_v49  ;;  %v6706_v9 = vpop.f32.mrf.mxu1  ;;  %v6710_v62 = vpop.permute.xlu2 %3233  ;;  %7663 = vst [vmem:[#allocation29_spill] sm:$0xff] %v6712_v13 }
 0x33c   :  { %v2684_v36 = vsel %vm2683_vm4, %v4901_v17, %v2680_v3  ;;  %4908 = vpow2.f32 %v2514_v50  ;;  %v2536_v58 = vmul.f32 1.442695, %v2506_v40  ;;  %7662 = vst [vmem:[#allocation34_spill] sm:$0xff] %v6710_v62  ;;  %v2538_v21 = vmul.f32 1.442695, %v2507_v14 }
 0x33d   :  { %v2689_v60 = vsel %vm6673_vm0, %v2688_v43, %v2684_v36  ;;  %v2572_v24 = vrot.slane %v2571_v12, 2  ;;  %v2516_v17 = vmul.f32 1.442695, %v2496_v27  ;;  %v2518_v44 = vmul.f32 1.442695, %v2497_v63 }
 0x33e   :  { %v2690_v10 = vmul.f32 %v6598_v39, %v2689_v60  ;;  %4910 = vpow2.f32 %v2536_v58  ;;  %v2468_v1 = vrot.slane %v2467_v61, 4  ;;  %v2475_v8 = vsel %vm627_vm2, %v6706_v9, -inf  ;;  %v6732_v40 = vpop.permute.xlu0 %3272 }
 0x33f   :  { %v2573_v59 = vadd.f32 %v2572_v24, %v2571_v12  ;;  %4912 = vpow2.f32 %v2516_v17  ;;  %v2476_v28 = vmax.f32 %v2474_v48, %v2475_v8  ;;  %7664 = vst [vmem:[#allocation42_spill] sm:$0xff] %v6732_v40  ;;  %v2691_v27 = vmul.f32 %v6600_v11, %v2689_v60 }
 0x340   :  { %4600 = vmatmul.msk.f32.vlgmr.msra.gmra.mxu3 %vm627_vm2, %v2690_v10  ;;  %4914 = vpow2.f32 %v2518_v44  ;;  %v2469_v5 = vmax.f32 %v2467_v61, %v2468_v1 }
 0x341   :  { %v2574_v43 = vrot.slane %v2573_v59, 1  ;;  %4624 = vmatpush.xpose.msk.msra.mxu3 %vm346_vm1, %v6548_v0  ;;  %v6720_v39 = vpop.eup %4906  ;;  %4916 = vpow2.f32 %v2538_v21  ;;  %v2477_v25 = vrot.slane %v2476_v28, 4 }
 0x342   :  { %v6722_v42 = vpop.eup %4908  ;;  %v2549_v41 = vsel %vm627_vm2, %v6720_v39, 0.0  ;;  %v2470_v48 = vrot.slane %v2469_v5, 2 }
 0x343   :  { %v6724_v3 = vadd.f32 %v2574_v43, %v2573_v59  ;;  %v2550_v50 = vsel %vm627_vm2, %v6722_v42, 0.0  ;;  %v2478_v49 = vmax.f32 %v2476_v28, %v2477_v25  ;;  %v6748_v17 = vpop.permute.xlu2 %4758 }
 0x344   :  { %v6730_v12 = vpop.eup %4910  ;;  %v2551_v14 = vadd.f32 %v2550_v50, %v2549_v41  ;;  %v2471_v61 = vmax.f32 %v2469_v5, %v2470_v48  ;;  %v4760_v41 = vunpack.i.l.bf16 %v6748_v17 }
 0x345   :  { %4918 = vrcp.f32 %v6724_v3  ;;  %4625 = vmatpush.xpose.msk.msra.mxu3 %vm346_vm1, %v6580_v47  ;;  %v6737_v0 = vpop.eup %4912  ;;  %v2479_v36 = vrot.slane %v2478_v49, 2  ;;  %v2603_v58 = vsel %vm627_vm2, %v6730_v12, 0.0  ;;  %v6750_v47 = vpop.permute.xlu1 %4753  ;;  %v2669_v50 = vand.u32 2147483647, %v6724_v3 }
 0x346   :  { %v6740_v63 = vpop.eup %4914  ;;  %v2558_v24 = vsel %vm627_vm2, %v6737_v0, 0.0  ;;  %v2552_v44 = vrot.slane %v2551_v14, 4  ;;  %v2472_v59 = vrot.slane %v2471_v61, 1  ;;  %v4755_v48 = vunpack.i.l.bf16 %v6750_v47  ;;  %v6764_v62 = vpop.permute.xlu0 %4763 }
 0x347   :  { %v6746_v10 = vpop.eup %4916  ;;  %v2559_v21 = vsel %vm627_vm2, %v6740_v63, 0.0  ;;  %v2480_v11 = vmax.f32 %v2478_v49, %v2479_v36  ;;  %v2671_v36 = vand.u32 2147483648, %v6724_v3  ;;  %vm2665_vm6 = vweird.f32 %v6724_v3 }
 0x348   :  { %4601 = vmatmul.msk.f32.gmra.mxu3 %vm627_vm2, %v2691_v27  ;;  %v2560_v60 = vadd.f32 %v2559_v21, %v2558_v24  ;;  %v2604_v1 = vsel %vm627_vm2, %v6746_v10, 0.0  ;;  %v2553_v8 = vadd.f32 %v2552_v44, %v2551_v14  ;;  %v2473_v43 = vmax.f32 %v2471_v61, %v2472_v59 }
 0x349   :  { %v2605_v28 = vadd.f32 %v2604_v1, %v2603_v58  ;;  %v2481_v5 = vrot.slane %v2480_v11, 1  ;;  %vm2670_vm8 = vcmp.eq.f32.partialorder %v2669_v50, 8.507059e+37 }
 0x34a   :  { %v2561_v40 = vrot.slane %v2560_v60, 4  ;;  %v2554_v27 = vrot.slane %v2553_v8, 2  ;;  %v2502_v14 = vsub.f32 %v6654_v4, %v2473_v43  ;;  %v2503_v61 = vsub.f32 %v6688_v15, %v2473_v43 }
 0x34b   :  { %v4919_v25 = vpop.eup %4918  ;;  %v2606_v24 = vrot.slane %v2605_v28, 4  ;;  %v2482_v58 = vmax.f32 %v2480_v11, %v2481_v5 }
 0x34c   :  { %v2661_v49 = vmul.f32 %v4919_v25, %v6724_v3  ;;  %v2562_v21 = vadd.f32 %v2561_v40, %v2560_v60  ;;  %vm2666_vm5 = vweird.f32 %v4919_v25  ;;  %v2555_v59 = vadd.f32 %v2554_v27, %v2553_v8 }
 0x34d   :  { %v2607_v1 = vadd.f32 %v2606_v24, %v2605_v28  ;;  %v2528_v26 = vmul.f32 1.442695, %v2502_v14  ;;  %v2530_v45 = vmul.f32 1.442695, %v2503_v61  ;;  %v2504_v23 = vsub.f32 %v6663_v38, %v2482_v58  ;;  %vm2667_vm7 = vmor %vm2665_vm6, %vm2666_vm5 }
 0x34e   :  { %v2662_v44 = vsub.f32 1.0, %v2661_v49  ;;  %v2563_v13 = vrot.slane %v2562_v21, 2  ;;  %v2556_v35 = vrot.slane %v2555_v59, 1  ;;  %v2505_v40 = vsub.f32 %v6706_v9, %v2482_v58  ;;  %v6794_v5 = vpop.permute.xlu0 %4778 }
 0x34f   :  { %v2608_v32 = vrot.slane %v2607_v1, 2  ;;  %4920 = vpow2.f32 %v2528_v26  ;;  %v2532_v4 = vmul.f32 1.442695, %v2504_v23  ;;  %v2672_v38 = vor.u32 1.1754944e-38, %v2671_v36 }
 0x350   :  { %v2663_v53 = vmul.f32 %v4919_v25, %v2662_v44  ;;  %4610 = vmatmul.msk.f32.vlgmr.msrb.gmra.mxu3 %vm346_vm1, %v6524_v7  ;;  %v2564_v15 = vadd.f32 %v2563_v13, %v2562_v21  ;;  %v6771_v60 = vadd.f32 %v2556_v35, %v2555_v59  ;;  %4922 = vpow2.f32 %v2530_v45 }
 0x351   :  { %3694 = vmatpush.msrb.mxu3 %v4755_v48  ;;  %v2609_v8 = vadd.f32 %v2608_v32, %v2607_v1  ;;  %4924 = vpow2.f32 %v2532_v4  ;;  %v2534_v9 = vmul.f32 1.442695, %v2505_v40  ;;  %v4780_v27 = vunpack.i.l.bf16 %v6794_v5 }
 0x352   :  { %v2664_v11 = vadd.f32 %v4919_v25, %v2663_v53  ;;  %v2565_v28 = vrot.slane %v2564_v15, 1  ;;  %4926 = vrcp.f32 %v6771_v60  ;;  %v2637_v50 = vand.u32 2147483647, %v6771_v60 }
 0x353   :  { %3695 = vmatpush.msrb.mxu3 %v4760_v41  ;;  %v2610_v23 = vrot.slane %v2609_v8, 1  ;;  %4928 = vpow2.f32 %v2534_v9  ;;  %v2639_v24 = vand.u32 2147483648, %v6771_v60  ;;  %vm2633_vm9 = vweird.f32 %v6771_v60 }
 0x354   :  { %v2668_v43 = vsel %vm2667_vm7, %v4919_v25, %v2664_v11  ;;  %v6775_v26 = vadd.f32 %v2565_v28, %v2564_v15  ;;  %vm6818_vm11 = vcmp.eq.f32.partialorder %v2637_v50, 8.507059e+37 }
 0x355   :  { %v2673_v7 = vsel %vm2670_vm8, %v2672_v38, %v2668_v43  ;;  %v6778_v32 = vpop.eup %4920  ;;  %v6783_v53 = vadd.f32 %v2610_v23, %v2609_v8  ;;  %v2640_v38 = vor.u32 1.1754944e-38, %v2639_v24 }
 0x356   :  { %v2674_v35 = vmul.f32 %v6666_v55, %v2673_v7  ;;  %4930 = vrcp.f32 %v6775_v26  ;;  %v6781_v45 = vpop.eup %4922  ;;  %v2585_v13 = vsel %vm627_vm2, %v6778_v32, 0.0  ;;  %v6792_v55 = vpop.permute.xlu2 %4773  ;;  %v2655_v59 = vand.u32 2147483648, %v6775_v26 }
 0x357   :  { %v6790_v3 = vpop.eup %4924  ;;  %v2586_v25 = vsel %vm627_vm2, %v6781_v45, 0.0  ;;  %4932 = vrcp.f32 %v6783_v53  ;;  %v4775_v36 = vunpack.i.l.bf16 %v6792_v55  ;;  %v2675_v40 = vmul.f32 %v6679_v19, %v2673_v7 }
 0x358   :  { %4598 = vmatmul.msk.f32.vlgmr.msrb.gmra.mxu2 %vm627_vm2, %v2674_v35  ;;  %4611 = vmatmul.msk.f32.gmra.mxu3 %vm346_vm1, %v6285_v20  ;;  %v4927_v41 = vpop.eup %4926  ;;  %v2587_v20 = vadd.f32 %v2586_v25, %v2585_v13  ;;  %v2594_v21 = vsel %vm627_vm2, %v6790_v3, 0.0  ;;  %vm2649_vm12 = vweird.f32 %v6775_v26  ;;  %v2653_v19 = vand.u32 2147483647, %v6775_v26 }
 0x359   :  { %4620 = vmatpush.xpose.msk.msrb.mxu2 %vm346_vm1, %v6516_v52  ;;  %v2629_v48 = vmul.f32 %v4927_v41, %v6771_v60  ;;  %v6803_v49 = vpop.eup %4928  ;;  %vm2634_vm10 = vweird.f32 %v4927_v41  ;;  %v2656_v35 = vor.u32 1.1754944e-38, %v2655_v59  ;;  %v2733_v50 = vand.u32 2147483647, %v6783_v53 }
 0x35a   :  { %v2588_v61 = vrot.slane %v2587_v20, 4  ;;  %v2595_v58 = vsel %vm627_vm2, %v6803_v49, 0.0  ;;  %vm2635_vm13 = vmor %vm2633_vm9, %vm2634_vm10  ;;  %vm2654_vm3 = vcmp.eq.f32.partialorder %v2653_v19, 8.507059e+37  ;;  %vm2729_vm4 = vweird.f32 %v6783_v53 }
 0x35b   :  { %v2630_v14 = vsub.f32 1.0, %v2629_v48  ;;  %v2596_v1 = vadd.f32 %v2595_v58, %v2594_v21  ;;  %vm2734_vm6 = vcmp.eq.f32.partialorder %v2733_v50, 8.507059e+37 }
 0x35c   :  { %v4931_v52 = vpop.eup %4930  ;;  %v2589_v11 = vadd.f32 %v2588_v61, %v2587_v20 }
 0x35d   :  { %4621 = vmatpush.xpose.msk.msrb.mxu2 %vm346_vm1, %v6522_v51  ;;  %v2645_v44 = vmul.f32 %v4931_v52, %v6775_v26  ;;  %v2631_v15 = vmul.f32 %v4927_v41, %v2630_v14  ;;  %v4933_v8 = vpop.eup %4932  ;;  %v2597_v51 = vrot.slane %v2596_v1, 4  ;;  %vm2650_vm14 = vweird.f32 %v4931_v52 }
 0x35e   :  { %v2725_v43 = vmul.f32 %v4933_v8, %v6783_v53  ;;  %v2590_v7 = vrot.slane %v2589_v11, 2  ;;  %vm2651_vm15 = vmor %vm2649_vm12, %vm2650_vm14  ;;  %vm2730_vm0 = vweird.f32 %v4933_v8 }
 0x35f   :  { %v2646_v28 = vsub.f32 1.0, %v2645_v44  ;;  %v2632_v9 = vadd.f32 %v4927_v41, %v2631_v15  ;;  %v2598_v13 = vadd.f32 %v2597_v51, %v2596_v1  ;;  %vm2731_vm5 = vmor %vm2729_vm4, %vm2730_vm0 }
 0x360   :  { %4599 = vmatmul.msk.f32.gmra.mxu2 %vm627_vm2, %v2675_v40  ;;  %4626 = vmatmul.msk.f32.vlgmr.msra.gmra.mxu3 %vm346_vm1, %v6585_v31  ;;  %v2726_v48 = vsub.f32 1.0, %v2725_v43  ;;  %v2591_v31 = vadd.f32 %v2590_v7, %v2589_v11 }
 0x361   :  { %3834 = vmatpush.msra.mxu3 %v4775_v36  ;;  %v2647_v23 = vmul.f32 %v4931_v52, %v2646_v28  ;;  %v2636_v25 = vsel %vm2635_vm13, %v4927_v41, %v2632_v9  ;;  %v2735_v36 = vand.u32 2147483648, %v6783_v53  ;;  %v2599_v21 = vrot.slane %v2598_v13, 2 }
 0x362   :  { %v2641_v20 = vsel %vm6818_vm11, %v2640_v38, %v2636_v25  ;;  %v2727_v14 = vmul.f32 %v4933_v8, %v2726_v48  ;;  %v2592_v41 = vrot.slane %v2591_v31, 1  ;;  %v4761_v48 = vunpack.i.h.bf16 %v6748_v17 }
 0x363   :  { %3835 = vmatpush.msra.mxu3 %v4780_v27  ;;  %v2648_v24 = vadd.f32 %v4931_v52, %v2647_v23  ;;  %v2642_v60 = vmul.f32 %v6720_v39, %v2641_v20  ;;  %v2600_v58 = vadd.f32 %v2599_v21, %v2598_v13  ;;  %v2736_v39 = vor.u32 1.1754944e-38, %v2735_v36  ;;  %v7673_v36 = vld [vmem:[#allocation29_spill] sm:$0xff] }
 0x364   :  { %v2728_v27 = vadd.f32 %v4933_v8, %v2727_v14  ;;  %v2593_v59 = vadd.f32 %v2592_v41, %v2591_v31  ;;  %v4776_v17 = vunpack.i.h.bf16 %v6792_v55  ;;  %v7669_v55 = vld [vmem:[#allocation32_spill] sm:$0xff]  ;;  %v7672_v31 = vld [vmem:[#allocation22_spill] sm:$0xff] }
 0x365   :  { %v2652_v61 = vsel %vm2651_vm15, %v4931_v52, %v2648_v24  ;;  %4594 = vmatmul.msk.f32.vlgmr.msrb.gmra.mxu0 %vm627_vm2, %v2642_v60  ;;  %v2601_v40 = vrot.slane %v2600_v58, 1  ;;  %v7674_v60 = vld [vmem:[#allocation34_spill] sm:$0xff]  ;;  %v7676_v41 = vld [vmem:[#allocation12_spill] sm:$0xff] }
 0x366   :  { %v2657_v44 = vsel %vm2654_vm3, %v2656_v35, %v2652_v61  ;;  %4612 = vmatpush.xpose.msk.msrb.mxu0 %vm346_vm1, %v6526_v22  ;;  %v2732_v26 = vsel %vm2731_vm5, %v4933_v8, %v2728_v27  ;;  %4934 = vrcp.f32 %v2593_v59  ;;  %v2643_v22 = vmul.f32 %v6722_v42, %v2641_v20  ;;  %v7675_v14 = vld [vmem:[#allocation42_spill] sm:$0xff]  ;;  %v7677_v61 = vld [vmem:[#allocation11_spill] sm:$0xff] }
 0x367   :  { %v2658_v1 = vmul.f32 %v6737_v0, %v2657_v44  ;;  %v2737_v52 = vsel %vm2734_vm6, %v2736_v39, %v2732_v26  ;;  %v2602_v15 = vadd.f32 %v2601_v40, %v2600_v58  ;;  %v2701_v8 = vand.u32 2147483647, %v2593_v59  ;;  %v7679_v26 = vld [vmem:[#allocation28_spill] sm:$0xff] }
 0x368   :  { %4627 = vmatmul.msk.f32.gmra.mxu3 %vm346_vm1, %v6630_v37  ;;  %v2738_v53 = vmul.f32 %v6730_v12, %v2737_v52  ;;  %vm2697_vm8 = vweird.f32 %v2593_v59  ;;  %v4756_v35 = vunpack.i.h.bf16 %v6750_v47  ;;  %v1900_v58 = vadd.f32 %v7677_v61, %v7676_v41 }
 0x369   :  { %4596 = vmatmul.msk.f32.vlgmr.msrb.gmra.mxu1 %vm627_vm2, %v2658_v1  ;;  %4936 = vrcp.f32 %v2602_v15  ;;  %vm2702_vm11 = vcmp.eq.f32.partialorder %v2701_v8, 8.507059e+37  ;;  %vm2713_vm12 = vweird.f32 %v2602_v15  ;;  %v7678_v1 = vld [vmem:[#allocation13_spill] sm:$0xff] }
 0x36a   :  { %4616 = vmatpush.xpose.msk.msrb.mxu1 %vm346_vm1, %v6534_v18  ;;  %4613 = vmatpush.xpose.msk.msrb.mxu0 %vm346_vm1, %v6544_v34  ;;  %v2659_v18 = vmul.f32 %v6740_v63, %v2657_v44  ;;  %v2703_v34 = vand.u32 2147483648, %v2593_v59  ;;  %v2719_v63 = vand.u32 2147483648, %v2602_v15 }
 0x36b   :  { %4606 = vmatmul.msk.f32.vlgmr.msra.gmra.mxu2 %vm627_vm2, %v2738_v53  ;;  %v7680_v53 = vld [vmem:[#allocation27_spill] sm:$0xff] }
 0x36c   :  { %4636 = vmatpush.xpose.msk.msra.mxu2 %vm346_vm1, %v6558_v46  ;;  %v4935_v37 = vpop.eup %4934  ;;  %v2739_v46 = vmul.f32 %v6746_v10, %v2737_v52  ;;  %v2704_v28 = vor.u32 1.1754944e-38, %v2703_v34  ;;  %v2720_v7 = vor.u32 1.1754944e-38, %v2719_v63 }
 0x36d   :  { %4595 = vmatmul.msk.f32.gmra.mxu0 %vm627_vm2, %v2643_v22  ;;  %v2693_v12 = vmul.f32 %v4935_v37, %v2593_v59  ;;  %vm2698_vm7 = vweird.f32 %v4935_v37 }
 0x36e   :  { %4617 = vmatpush.xpose.msk.msrb.mxu1 %vm346_vm1, %v6328_v29  ;;  %vm2699_vm9 = vmor %vm2697_vm8, %vm2698_vm7 }
 0x36f   :  { %v4937_v0 = vpop.eup %4936  ;;  %v2694_v4 = vsub.f32 1.0, %v2693_v12  ;;  %v7681_v12 = vld [vmem:[#allocation14_spill] sm:$0xff] }
 0x370   :  { %4637 = vmatpush.xpose.msk.msra.mxu2 %vm346_vm1, %v6587_v56  ;;  %v2709_v42 = vmul.f32 %v4937_v0, %v2602_v15  ;;  %vm2714_vm10 = vweird.f32 %v4937_v0  ;;  %v2717_v56 = vand.u32 2147483647, %v2602_v15 }
 0x371   :  { %4597 = vmatmul.msk.f32.gmra.mxu1 %vm627_vm2, %v2659_v18  ;;  %v2695_v11 = vmul.f32 %v4935_v37, %v2694_v4  ;;  %vm2715_vm13 = vmor %vm2713_vm12, %vm2714_vm10  ;;  %v7682_v18 = vld [vmem:[#allocation38_spill] sm:$0xff] }
 0x372   :  { %v2710_v29 = vsub.f32 1.0, %v2709_v42  ;;  %vm2718_vm14 = vcmp.eq.f32.partialorder %v2717_v56, 8.507059e+37 }
 0x373   :  { %4607 = vmatmul.msk.f32.gmra.mxu2 %vm627_vm2, %v2739_v46  ;;  %v2696_v38 = vadd.f32 %v4935_v37, %v2695_v11 }
 0x374   :  { %v2711_v51 = vmul.f32 %v4937_v0, %v2710_v29 }
 0x375   :  { %v2700_v9 = vsel %vm2699_vm9, %v4935_v37, %v2696_v38 }
 0x376   :  { %v2705_v19 = vsel %vm2702_vm11, %v2704_v28, %v2700_v9  ;;  %v2712_v43 = vadd.f32 %v4937_v0, %v2711_v51  ;;  %v7683_v9 = vld [vmem:[#allocation37_spill] sm:$0xff] }
 0x377   :  { %v2706_v10 = vmul.f32 %v6778_v32, %v2705_v19  ;;  %v2707_v47 = vmul.f32 %v6781_v45, %v2705_v19  ;;  %v4766_v32 = vunpack.i.h.bf16 %v6764_v62  ;;  %v4781_v45 = vunpack.i.h.bf16 %v6794_v5  ;;  %v4789_v5 = vpop.permute.xlu2 %4788 }
 0x378   :  { %v2716_v23 = vsel %vm2715_vm13, %v4937_v0, %v2712_v43  ;;  %v4790_v20 = vunpack.i.l.bf16 %v4789_v5  ;;  %v4791_v21 = vunpack.i.h.bf16 %v4789_v5  ;;  %v1987_v0 = vadd.f32 %v7682_v18, %v7681_v12 }
 0x379   :  { %v2721_v13 = vsel %vm2718_vm14, %v2720_v7, %v2716_v23  ;;  %4602 = vmatmul.msk.f32.vlgmr.msra.gmra.mxu0 %vm627_vm2, %v2706_v10  ;;  %v7684_v10 = vld [vmem:[#allocation23_spill] sm:$0xff] }
 0x37a   :  { %v2722_v25 = vmul.f32 %v6790_v3, %v2721_v13  ;;  %4628 = vmatpush.xpose.msk.msra.mxu0 %vm346_vm1, %v6618_v16  ;;  %v4769_v16 = vpop.permute.xlu1 %4768 }
 0x37b   :  { %4622 = vmatmul.msk.f32.vlgmr.msrb.gmra.mxu2 %vm346_vm1, %v6239_v30  ;;  %v2723_v30 = vmul.f32 %v6803_v49, %v2721_v13  ;;  %v4771_v3 = vunpack.i.h.bf16 %v4769_v16  ;;  %v7671_v49 = vld [vmem:[#allocation33_spill] sm:$0xff]  ;;  %v7685_v13 = vld [vmem:[#allocation26_spill] sm:$0xff] }
 0x37c   :  { %3799 = vmatpush.msrb.mxu2 %v4756_v35  ;;  %4604 = vmatmul.msk.f32.vlgmr.msra.gmra.mxu1 %vm627_vm2, %v2722_v25 }
 0x37d   :  { %4632 = vmatpush.xpose.msk.msra.mxu1 %vm346_vm1, %v6635_v57  ;;  %v4765_v57 = vunpack.i.l.bf16 %v6764_v62 }
 0x37e   :  { %3800 = vmatpush.msrb.mxu2 %v4761_v48  ;;  %4629 = vmatpush.xpose.msk.msra.mxu0 %vm346_vm1, %v6670_v2  ;;  %v4770_v2 = vunpack.i.l.bf16 %v4769_v16 }
 0x381   :  { %4633 = vmatpush.xpose.msk.msra.mxu1 %vm346_vm1, %v6668_v54  ;;  %4603 = vmatmul.msk.f32.gmra.mxu0 %vm627_vm2, %v2707_v47  ;;  %v7667_v54 = vld [vmem:[#allocation31_spill] sm:$0xff] }
 0x382   :  { %v4784_v62 = vpop.permute.xlu1 %4783 }
 0x383   :  { %4623 = vmatmul.msk.f32.gmra.mxu2 %vm346_vm1, %v6536_v6  ;;  %v7668_v6 = vld [vmem:[#allocation25_spill] sm:$0xff]  ;;  %v4785_v50 = vunpack.i.l.bf16 %v4784_v62  ;;  %v4786_v24 = vunpack.i.h.bf16 %v4784_v62 }
 0x384   :  { %4605 = vmatmul.msk.f32.gmra.mxu1 %vm627_vm2, %v2723_v30  ;;  %v7687_v62 = vld [vmem:[#allocation17_spill] sm:$0xff] }
 0x389   :  { %4614 = vmatmul.msk.f32.vlgmr.msrb.gmra.mxu0 %vm346_vm1, %v6570_v33  ;;  %v7670_v33 = vld [vmem:[#allocation35_spill] sm:$0xff] }
 0x38a   :  { %3729 = vmatpush.msrb.mxu0 %v4765_v57 }
 0x38b   :  { %4638 = vmatmul.msk.f32.vlgmr.msra.gmra.mxu2 %vm346_vm1, %v7667_v54 }
 0x38c   :  { %3939 = vmatpush.msra.mxu2 %v4776_v17  ;;  %3730 = vmatpush.msrb.mxu0 %v4770_v2 }
 0x38d   :  { %4618 = vmatmul.msk.f32.vlgmr.msrb.gmra.mxu1 %vm346_vm1, %v7668_v6 }
 0x38e   :  { %3764 = vmatpush.msrb.mxu1 %v4766_v32  ;;  %3940 = vmatpush.msra.mxu2 %v4781_v45  ;;  %v7686_v45 = vld [vmem:[#allocation24_spill] sm:$0xff] }
 0x390   :  { %3765 = vmatpush.msrb.mxu1 %v4771_v3 }
 0x391   :  { %4615 = vmatmul.msk.f32.gmra.mxu0 %vm346_vm1, %v7669_v55 }
 0x393   :  { %4639 = vmatmul.msk.f32.gmra.mxu2 %vm346_vm1, %v7670_v33 }
 0x395   :  { %4619 = vmatmul.msk.f32.gmra.mxu1 %vm346_vm1, %v7671_v49 }
 0x399   :  { %4630 = vmatmul.msk.f32.vlgmr.msra.gmra.mxu0 %vm346_vm1, %v7672_v31 }
 0x39a   :  { %3869 = vmatpush.msra.mxu0 %v4785_v50  ;;  %v7688_v50 = vld [vmem:[#allocation21_spill] sm:$0xff] }
 0x39c   :  { %3870 = vmatpush.msra.mxu0 %v4790_v20 }
 0x39d   :  { %4634 = vmatmul.msk.f32.vlgmr.msra.gmra.mxu1 %vm346_vm1, %v7673_v36 }
 0x39e   :  { %3904 = vmatpush.msra.mxu1 %v4786_v24 }
 0x3a0   :  { %3905 = vmatpush.msra.mxu1 %v4791_v21 }
 0x3a1   :  { %4631 = vmatmul.msk.f32.gmra.mxu0 %vm346_vm1, %v7674_v60 }
 0x3a5   :  { %4635 = vmatmul.msk.f32.gmra.mxu1 %vm346_vm1, %v7675_v14 }
 0x3b3   :  { %v2769_v44 = vpop.f32.mrf.mxu3 }
 0x3b4   :  { %v6912_v27 = vadd.f32 %v2769_v44, %v1900_v58 }
 0x3bb   :  { %v2772_v59 = vpop.f32.mrf.mxu3 }
 0x3bc   :  { %v6915_v39 = vadd.f32 %v2772_v59, %v7678_v1 }
 0x3c3   :  { %v2909_v40 = vpop.f32.mrf.mxu3 }
 0x3c4   :  { %v6918_v52 = vadd.f32 %v2909_v40, %v7679_v26  ;;  %v7689_v40 = vld [vmem:[#allocation39_spill] sm:$0xff] }
 0x3cb   :  { %v2912_v15 = vpop.f32.mrf.mxu3 }
 0x3cc   :  { %v6921_v22 = vadd.f32 %v2912_v15, %v7680_v53  ;;  %v7690_v53 = vld [vmem:[#allocation16_spill] sm:$0xff] }
 0x3d3   :  { %v3069_v37 = vpop.f32.mrf.mxu3 }
 0x3d4   :  { %v3348_v42 = vsel %vm627_vm2, %v3069_v37, -inf }
 0x3db   :  { %v2874_v4 = vpop.f32.mrf.mxu2  ;;  %v3072_v34 = vpop.f32.mrf.mxu3 }
 0x3dc   :  { %v6926_v46 = vadd.f32 %v2874_v4, %v1987_v0  ;;  %v3349_v11 = vsel %vm627_vm2, %v3072_v34, -inf }
 0x3dd   :  { %v3350_v8 = vmax.f32 %v3348_v42, %v3349_v11  ;;  %v7691_v11 = vld [vmem:[#allocation40_spill] sm:$0xff] }
 0x3df   :  { %v3351_v29 = vrot.slane %v3350_v8, 4 }
 0x3e1   :  { %v3352_v38 = vmax.f32 %v3350_v8, %v3351_v29 }
 0x3e2   :  { %v2804_v56 = vpop.f32.mrf.mxu0 }
 0x3e3   :  { %v3353_v63 = vrot.slane %v3352_v38, 2  ;;  %v2877_v28 = vpop.f32.mrf.mxu2  ;;  %v3225_v51 = vpop.f32.mrf.mxu3  ;;  %v6933_v7 = vadd.f32 %v2804_v56, %v7684_v10 }
 0x3e4   :  { %v6930_v19 = vadd.f32 %v2877_v28, %v7683_v9  ;;  %v3384_v57 = vsel %vm627_vm2, %v3225_v51, -inf  ;;  %v7692_v9 = vld [vmem:[#allocation41_spill] sm:$0xff] }
 0x3e5   :  { %v3354_v43 = vmax.f32 %v3352_v38, %v3353_v63 }
 0x3e6   :  { %v2839_v35 = vpop.f32.mrf.mxu1 }
 0x3e7   :  { %v3355_v23 = vrot.slane %v3354_v43, 1  ;;  %v6936_v25 = vadd.f32 %v2839_v35, %v7685_v13  ;;  %v7693_v35 = vld [vmem:[#allocation43_spill] sm:$0xff] }
 0x3e9   :  { %v3356_v48 = vmax.f32 %v3354_v43, %v3355_v23 }
 0x3ea   :  { %v2807_v17 = vpop.f32.mrf.mxu0 }
 0x3eb   :  { %v3420_v47 = vsub.f32 %v3069_v37, %v3356_v48  ;;  %v3421_v30 = vsub.f32 %v3072_v34, %v3356_v48  ;;  %v3228_v16 = vpop.f32.mrf.mxu3  ;;  %v6941_v6 = vadd.f32 %v2807_v17, %v7686_v45 }
 0x3ec   :  { %v3385_v2 = vsel %vm627_vm2, %v3228_v16, -inf }
 0x3ed   :  { %v3436_v54 = vmul.f32 1.442695, %v3420_v47  ;;  %v3438_v32 = vmul.f32 1.442695, %v3421_v30  ;;  %v3386_v3 = vmax.f32 %v3384_v57, %v3385_v2 }
 0x3ee   :  { %v2842_v33 = vpop.f32.mrf.mxu1  ;;  %v3014_v49 = vpop.f32.mrf.mxu2 }
 0x3ef   :  { %4938 = vpow2.f32 %v3436_v54  ;;  %v3387_v55 = vrot.slane %v3386_v3, 4  ;;  %v6944_v5 = vadd.f32 %v2842_v33, %v7687_v62  ;;  %v6947_v31 = vadd.f32 %v3014_v49, %v7688_v50 }
 0x3f0   :  { %4940 = vpow2.f32 %v3438_v32 }
 0x3f1   :  { %v3388_v20 = vmax.f32 %v3386_v3, %v3387_v55 }
 0x3f3   :  { %v3389_v24 = vrot.slane %v3388_v20, 2 }
 0x3f5   :  { %v6949_v36 = vpop.eup %4938  ;;  %v3390_v21 = vmax.f32 %v3388_v20, %v3389_v24 }
 0x3f6   :  { %v6951_v60 = vpop.eup %4940  ;;  %v3468_v14 = vsel %vm627_vm2, %v6949_v36, 0.0  ;;  %v3017_v44 = vpop.f32.mrf.mxu2 }
 0x3f7   :  { %v3469_v41 = vsel %vm627_vm2, %v6951_v60, 0.0  ;;  %v3391_v61 = vrot.slane %v3390_v21, 1  ;;  %v2944_v1 = vpop.f32.mrf.mxu0  ;;  %v6958_v26 = vadd.f32 %v3017_v44, %v7689_v40 }
 0x3f8   :  { %v3470_v58 = vadd.f32 %v3469_v41, %v3468_v14  ;;  %v6961_v37 = vadd.f32 %v2944_v1, %v7690_v53 }
 0x3f9   :  { %v3392_v59 = vmax.f32 %v3390_v21, %v3391_v61  ;;  %v2979_v4 = vpop.f32.mrf.mxu1 }
 0x3fa   :  { %v3471_v15 = vrot.slane %v3470_v58, 4  ;;  %v6964_v8 = vadd.f32 %v2979_v4, %v7691_v11 }
 0x3fb   :  { %v3428_v12 = vsub.f32 %v3225_v51, %v3392_v59  ;;  %v3429_v18 = vsub.f32 %v3228_v16, %v3392_v59 }
 0x3fc   :  { %v3472_v0 = vadd.f32 %v3471_v15, %v3470_v58 }
 0x3fd   :  { %v3452_v34 = vmul.f32 1.442695, %v3428_v12  ;;  %v3454_v42 = vmul.f32 1.442695, %v3429_v18 }
 0x3fe   :  { %v3473_v29 = vrot.slane %v3472_v0, 2  ;;  %v6966_v63 = vpop.f32.mrf.mxu2 }
 0x3ff   :  { %4942 = vpow2.f32 %v3452_v34  ;;  %v2947_v28 = vpop.f32.mrf.mxu0  ;;  %v3375_v17 = vsel %vm627_vm2, %v6966_v63, -inf }
 0x400   :  { %v3474_v38 = vadd.f32 %v3473_v29, %v3472_v0  ;;  %4944 = vpow2.f32 %v3454_v42  ;;  %v6969_v43 = vadd.f32 %v2947_v28, %v7692_v9 }
 0x401   :  { %v2982_v10 = vpop.f32.mrf.mxu1 }
 0x402   :  { %v3475_v56 = vrot.slane %v3474_v38, 1  ;;  %v6974_v13 = vadd.f32 %v2982_v10, %v7693_v35 }
 0x404   :  { %v3476_v51 = vadd.f32 %v3475_v56, %v3474_v38 }
 0x405   :  { %v6971_v23 = vpop.eup %4942 }
 0x406   :  { %v6976_v48 = vpop.eup %4944  ;;  %4946 = vrcp.f32 %v3476_v51  ;;  %v3504_v47 = vsel %vm627_vm2, %v6971_v23, 0.0  ;;  %v3189_v57 = vpop.f32.mrf.mxu2  ;;  %v3551_v21 = vand.u32 2147483648, %v3476_v51  ;;  %v3549_v44 = vand.u32 2147483647, %v3476_v51 }
 0x407   :  { %v3505_v30 = vsel %vm627_vm2, %v6976_v48, 0.0  ;;  %v6984_v2 = vpop.f32.mrf.mxu0  ;;  %v3376_v54 = vsel %vm627_vm2, %v3189_v57, -inf  ;;  %vm3545_vm15 = vweird.f32 %v3476_v51 }
 0x408   :  { %v3506_v16 = vadd.f32 %v3505_v30, %v3504_v47  ;;  %v3377_v45 = vmax.f32 %v3375_v17, %v3376_v54  ;;  %v3357_v40 = vsel %vm627_vm2, %v6984_v2, -inf  ;;  %v3552_v0 = vor.u32 1.1754944e-38, %v3551_v21 }
 0x409   :  { %vm3550_vm3 = vcmp.eq.f32.partialorder %v3549_v44, 8.507059e+37 }
 0x40a   :  { %v3507_v32 = vrot.slane %v3506_v16, 4  ;;  %v3378_v33 = vrot.slane %v3377_v45, 4  ;;  %v6987_v49 = vpop.f32.mrf.mxu1 }
 0x40c   :  { %v4947_v3 = vpop.eup %4946  ;;  %v3508_v55 = vadd.f32 %v3507_v32, %v3506_v16  ;;  %v3379_v20 = vmax.f32 %v3377_v45, %v3378_v33 }
 0x40d   :  { %v3541_v62 = vmul.f32 %v4947_v3, %v3476_v51  ;;  %vm3546_vm1 = vweird.f32 %v4947_v3  ;;  %v3366_v51 = vsel %vm627_vm2, %v6987_v49, -inf }
 0x40e   :  { %v3509_v50 = vrot.slane %v3508_v55, 2  ;;  %v3380_v41 = vrot.slane %v3379_v20, 2  ;;  %v6989_v61 = vpop.f32.mrf.mxu2  ;;  %vm3547_vm0 = vmor %vm3545_vm15, %vm3546_vm1 }
 0x40f   :  { %v3542_v24 = vsub.f32 1.0, %v3541_v62  ;;  %v6991_v59 = vpop.f32.mrf.mxu0  ;;  %v3411_v32 = vsel %vm627_vm2, %v6989_v61, -inf }
 0x410   :  { %v3510_v14 = vadd.f32 %v3509_v50, %v3508_v55  ;;  %v3381_v15 = vmax.f32 %v3379_v20, %v3380_v41  ;;  %v3358_v53 = vsel %vm627_vm2, %v6991_v59, -inf }
 0x411   :  { %v3543_v58 = vmul.f32 %v4947_v3, %v3542_v24  ;;  %v3359_v18 = vmax.f32 %v3357_v40, %v3358_v53 }
 0x412   :  { %v3511_v1 = vrot.slane %v3510_v14, 1  ;;  %v3382_v34 = vrot.slane %v3381_v15, 1  ;;  %v6997_v42 = vpop.f32.mrf.mxu1 }
 0x413   :  { %v3544_v12 = vadd.f32 %v4947_v3, %v3543_v58  ;;  %v3360_v29 = vrot.slane %v3359_v18, 4  ;;  %v3367_v38 = vsel %vm627_vm2, %v6997_v42, -inf }
 0x414   :  { %v3512_v4 = vadd.f32 %v3511_v1, %v3510_v14  ;;  %v3383_v9 = vmax.f32 %v3381_v15, %v3382_v34  ;;  %v3368_v35 = vmax.f32 %v3366_v51, %v3367_v38 }
 0x415   :  { %v3548_v11 = vsel %vm3547_vm0, %v4947_v3, %v3544_v12  ;;  %v3361_v10 = vmax.f32 %v3359_v18, %v3360_v29 }
 0x416   :  { %v3553_v28 = vsel %vm3550_vm3, %v3552_v0, %v3548_v11  ;;  %4948 = vrcp.f32 %v3512_v4  ;;  %v7004_v47 = vpop.f32.mrf.mxu2  ;;  %v3426_v30 = vsub.f32 %v6966_v63, %v3383_v9  ;;  %v3427_v16 = vsub.f32 %v3189_v57, %v3383_v9 }
 0x417   :  { %v3554_v56 = vmul.f32 %v6949_v36, %v3553_v28  ;;  %v3362_v17 = vrot.slane %v3361_v10, 2  ;;  %v7007_v54 = vpop.f32.mrf.mxu0  ;;  %v3369_v36 = vrot.slane %v3368_v35, 4  ;;  %v3412_v45 = vsel %vm627_vm2, %v7004_v47, -inf }
 0x418   :  { %v3448_v3 = vmul.f32 1.442695, %v3426_v30  ;;  %v3450_v55 = vmul.f32 1.442695, %v3427_v16  ;;  %v3413_v62 = vmax.f32 %v3411_v32, %v3412_v45  ;;  %v3613_v20 = vand.u32 2147483647, %v3512_v4 }
 0x419   :  { %4640 = vmatmul.msk.f32.vlgmr.msrb.gmra.mxu3 %vm627_vm2, %v3554_v56  ;;  %v3363_v33 = vmax.f32 %v3361_v10, %v3362_v17  ;;  %v3370_v63 = vmax.f32 %v3368_v35, %v3369_v36  ;;  %vm3609_vm4 = vweird.f32 %v3512_v4  ;;  %v3555_v1 = vmul.f32 %v6951_v60, %v3553_v28 }
 0x41a   :  { %v7014_v57 = vpop.f32.mrf.mxu1  ;;  %4950 = vpow2.f32 %v3448_v3  ;;  %v3414_v41 = vrot.slane %v3413_v62, 4  ;;  %vm7017_vm5 = vcmp.eq.f32.partialorder %v3613_v20, 8.507059e+37  ;;  %v3615_v15 = vand.u32 2147483648, %v3512_v4 }
 0x41b   :  { %v3364_v21 = vrot.slane %v3363_v33, 1  ;;  %4952 = vpow2.f32 %v3450_v55  ;;  %v3371_v14 = vrot.slane %v3370_v63, 2  ;;  %v3393_v60 = vsel %vm627_vm2, %v7007_v54, -inf }
 0x41c   :  { %v4949_v50 = vpop.eup %4948  ;;  %v3415_v12 = vmax.f32 %v3413_v62, %v3414_v41 }
 0x41d   :  { %v3605_v24 = vmul.f32 %v4949_v50, %v3512_v4  ;;  %v3365_v44 = vmax.f32 %v3363_v33, %v3364_v21  ;;  %v3372_v53 = vmax.f32 %v3370_v63, %v3371_v14  ;;  %vm3610_vm6 = vweird.f32 %v4949_v50 }
 0x41e   :  { %v3416_v38 = vrot.slane %v3415_v12, 2  ;;  %vm3611_vm7 = vmor %vm3609_vm4, %vm3610_vm6  ;;  %v3402_v14 = vsel %vm627_vm2, %v7014_v57, -inf }
 0x41f   :  { %v3606_v58 = vsub.f32 1.0, %v3605_v24  ;;  %v3422_v0 = vsub.f32 %v6984_v2, %v3365_v44  ;;  %v3423_v34 = vsub.f32 %v6991_v59, %v3365_v44  ;;  %v7023_v11 = vpop.f32.mrf.mxu0  ;;  %v3373_v29 = vrot.slane %v3372_v53, 1 }
 0x420   :  { %v3394_v28 = vsel %vm627_vm2, %v7023_v11, -inf  ;;  %v7030_v56 = vpop.eup %4950  ;;  %v3616_v59 = vor.u32 1.1754944e-38, %v3615_v15  ;;  %v3417_v17 = vmax.f32 %v3415_v12, %v3416_v38 }
 0x421   :  { %v3607_v18 = vmul.f32 %v4949_v50, %v3606_v58  ;;  %4641 = vmatmul.msk.f32.gmra.mxu3 %vm627_vm2, %v3555_v1  ;;  %v3440_v51 = vmul.f32 1.442695, %v3422_v0  ;;  %v3442_v10 = vmul.f32 1.442695, %v3423_v34  ;;  %v3395_v2 = vmax.f32 %v3393_v60, %v3394_v28  ;;  %v7032_v35 = vpop.eup %4952 }
 0x422   :  { %v3495_v30 = vsel %vm627_vm2, %v7030_v56, 0.0  ;;  %v3374_v16 = vmax.f32 %v3372_v53, %v3373_v29  ;;  %v3496_v36 = vsel %vm627_vm2, %v7032_v35, 0.0  ;;  %v7040_v3 = vpop.f32.mrf.mxu1  ;;  %v3418_v63 = vrot.slane %v3417_v17, 1 }
 0x423   :  { %v3608_v9 = vadd.f32 %v4949_v50, %v3607_v18  ;;  %4954 = vpow2.f32 %v3440_v51  ;;  %v3396_v45 = vrot.slane %v3395_v2, 4  ;;  %v3497_v33 = vadd.f32 %v3496_v36, %v3495_v30 }
 0x424   :  { %4956 = vpow2.f32 %v3442_v10  ;;  %v3424_v4 = vsub.f32 %v6987_v49, %v3374_v16  ;;  %v3425_v20 = vsub.f32 %v6997_v42, %v3374_v16  ;;  %v3403_v41 = vsel %vm627_vm2, %v7040_v3, -inf }
 0x425   :  { %v3612_v32 = vsel %vm3611_vm7, %v4949_v50, %v3608_v9  ;;  %v3397_v50 = vmax.f32 %v3395_v2, %v3396_v45  ;;  %v3498_v24 = vrot.slane %v3497_v33, 4  ;;  %v3419_v44 = vmax.f32 %v3417_v17, %v3418_v63 }
 0x426   :  { %v3617_v55 = vsel %vm7017_vm5, %v3616_v59, %v3612_v32  ;;  %v3444_v21 = vmul.f32 1.442695, %v3424_v4  ;;  %v3446_v58 = vmul.f32 1.442695, %v3425_v20  ;;  %v3404_v40 = vmax.f32 %v3402_v14, %v3403_v41 }
 0x427   :  { %v3618_v62 = vmul.f32 %v6971_v23, %v3617_v55  ;;  %v3398_v1 = vrot.slane %v3397_v50, 2  ;;  %v3499_v49 = vadd.f32 %v3498_v24, %v3497_v33  ;;  %v3434_v42 = vsub.f32 %v6989_v61, %v3419_v44 }
 0x428   :  { %4958 = vpow2.f32 %v3444_v21  ;;  %v3435_v15 = vsub.f32 %v7004_v47, %v3419_v44  ;;  %v3405_v34 = vrot.slane %v3404_v40, 4  ;;  %v3619_v47 = vmul.f32 %v6976_v48, %v3617_v55 }
 0x429   :  { %4648 = vmatmul.msk.f32.vlgmr.msra.gmra.mxu3 %vm627_vm2, %v3618_v62  ;;  %v7052_v23 = vpop.eup %4954  ;;  %4960 = vpow2.f32 %v3446_v58  ;;  %v3399_v53 = vmax.f32 %v3397_v50, %v3398_v1  ;;  %v3500_v18 = vrot.slane %v3499_v49, 2  ;;  %v3464_v60 = vmul.f32 1.442695, %v3434_v42 }
 0x42a   :  { %v7056_v12 = vpop.eup %4956  ;;  %v3477_v0 = vsel %vm627_vm2, %v7052_v23, 0.0  ;;  %v3466_v38 = vmul.f32 1.442695, %v3435_v15  ;;  %v3406_v10 = vmax.f32 %v3404_v40, %v3405_v34 }
 0x42b   :  { %v3478_v29 = vsel %vm627_vm2, %v7056_v12, 0.0  ;;  %v3400_v28 = vrot.slane %v3399_v53, 1  ;;  %v3501_v9 = vadd.f32 %v3500_v18, %v3499_v49  ;;  %4962 = vpow2.f32 %v3464_v60 }
 0x42c   :  { %v3479_v51 = vadd.f32 %v3478_v29, %v3477_v0  ;;  %4964 = vpow2.f32 %v3466_v38  ;;  %v3407_v16 = vrot.slane %v3406_v10, 2 }
 0x42d   :  { %v3401_v61 = vmax.f32 %v3399_v53, %v3400_v28  ;;  %v3502_v59 = vrot.slane %v3501_v9, 1 }
 0x42e   :  { %v7063_v2 = vpop.eup %4958  ;;  %v3480_v30 = vrot.slane %v3479_v51, 4  ;;  %v3408_v55 = vmax.f32 %v3406_v10, %v3407_v16 }
 0x42f   :  { %v7065_v17 = vpop.eup %4960  ;;  %v3486_v32 = vsel %vm627_vm2, %v7063_v2, 0.0  ;;  %v3430_v36 = vsub.f32 %v7007_v54, %v3401_v61  ;;  %v3431_v45 = vsub.f32 %v7023_v11, %v3401_v61  ;;  %v3503_v33 = vadd.f32 %v3502_v59, %v3501_v9 }
 0x430   :  { %v3481_v4 = vadd.f32 %v3480_v30, %v3479_v51  ;;  %v3487_v48 = vsel %vm627_vm2, %v7065_v17, 0.0  ;;  %v3409_v54 = vrot.slane %v3408_v55, 1 }
 0x431   :  { %4649 = vmatmul.msk.f32.gmra.mxu3 %vm627_vm2, %v3619_v47  ;;  %v3488_v62 = vadd.f32 %v3487_v48, %v3486_v32  ;;  %v3456_v20 = vmul.f32 1.442695, %v3430_v36  ;;  %v3458_v63 = vmul.f32 1.442695, %v3431_v45  ;;  %4966 = vrcp.f32 %v3503_v33  ;;  %v7074_v50 = vpop.eup %4962 }
 0x432   :  { %v3482_v24 = vrot.slane %v3481_v4, 2  ;;  %v7076_v14 = vpop.eup %4964  ;;  %v3531_v11 = vsel %vm627_vm2, %v7074_v50, 0.0  ;;  %v3410_v1 = vmax.f32 %v3408_v55, %v3409_v54  ;;  %v3597_v59 = vand.u32 2147483647, %v3503_v33 }
 0x433   :  { %v3489_v21 = vrot.slane %v3488_v62, 4  ;;  %4968 = vpow2.f32 %v3456_v20  ;;  %v3532_v44 = vsel %vm627_vm2, %v7076_v14, 0.0  ;;  %vm3593_vm9 = vweird.f32 %v3503_v33 }
 0x434   :  { %4970 = vpow2.f32 %v3458_v63  ;;  %v3483_v41 = vadd.f32 %v3482_v24, %v3481_v4  ;;  %v3533_v40 = vadd.f32 %v3532_v44, %v3531_v11  ;;  %v3432_v15 = vsub.f32 %v7014_v57, %v3410_v1 }
 0x435   :  { %v3490_v58 = vadd.f32 %v3489_v21, %v3488_v62  ;;  %v3433_v53 = vsub.f32 %v7040_v3, %v3410_v1  ;;  %v3599_v57 = vand.u32 2147483648, %v3503_v33  ;;  %vm3598_vm11 = vcmp.eq.f32.partialorder %v3597_v59, 8.507059e+37 }
 0x436   :  { %v3484_v49 = vrot.slane %v3483_v41, 1  ;;  %v3534_v0 = vrot.slane %v3533_v40, 4  ;;  %v3460_v10 = vmul.f32 1.442695, %v3432_v15 }
 0x437   :  { %v3491_v42 = vrot.slane %v3490_v58, 2  ;;  %v4967_v18 = vpop.eup %4966  ;;  %v3462_v61 = vmul.f32 1.442695, %v3433_v53  ;;  %v3600_v62 = vor.u32 1.1754944e-38, %v3599_v57 }
 0x438   :  { %v3589_v29 = vmul.f32 %v4967_v18, %v3503_v33  ;;  %v3485_v60 = vadd.f32 %v3484_v49, %v3483_v41  ;;  %v3535_v9 = vadd.f32 %v3534_v0, %v3533_v40  ;;  %vm3594_vm8 = vweird.f32 %v4967_v18 }
 0x439   :  { %v7084_v34 = vpop.eup %4968  ;;  %v3492_v38 = vadd.f32 %v3491_v42, %v3490_v58  ;;  %vm3595_vm10 = vmor %vm3593_vm9, %vm3594_vm8 }
 0x43a   :  { %v7086_v28 = vpop.eup %4970  ;;  %v3513_v51 = vsel %vm627_vm2, %v7084_v34, 0.0  ;;  %v3590_v47 = vsub.f32 1.0, %v3589_v29  ;;  %4972 = vrcp.f32 %v3485_v60  ;;  %v3536_v30 = vrot.slane %v3535_v9, 2 }
 0x43b   :  { %v3493_v3 = vrot.slane %v3492_v38, 1  ;;  %v3514_v16 = vsel %vm627_vm2, %v7086_v28, 0.0  ;;  %4974 = vpow2.f32 %v3460_v10  ;;  %v3565_v49 = vand.u32 2147483647, %v3485_v60 }
 0x43c   :  { %v3591_v32 = vmul.f32 %v4967_v18, %v3590_v47  ;;  %v3515_v36 = vadd.f32 %v3514_v16, %v3513_v51  ;;  %v3537_v4 = vadd.f32 %v3536_v30, %v3535_v9  ;;  %4976 = vpow2.f32 %v3462_v61 }
 0x43d   :  { %v7092_v45 = vadd.f32 %v3493_v3, %v3492_v38  ;;  %v3567_v42 = vand.u32 2147483648, %v3485_v60  ;;  %vm3561_vm13 = vweird.f32 %v3485_v60  ;;  %vm3566_vm1 = vcmp.eq.f32.partialorder %v3565_v49, 8.507059e+37 }
 0x43e   :  { %v3592_v48 = vadd.f32 %v4967_v18, %v3591_v32  ;;  %v3516_v55 = vrot.slane %v3515_v36, 4  ;;  %v3538_v24 = vrot.slane %v3537_v4, 1 }
 0x43f   :  { %4978 = vrcp.f32 %v7092_v45  ;;  %v3568_v10 = vor.u32 1.1754944e-38, %v3567_v42  ;;  %v3581_v47 = vand.u32 2147483647, %v7092_v45  ;;  %v3583_v57 = vand.u32 2147483648, %v7092_v45 }
 0x440   :  { %v4973_v20 = vpop.eup %4972  ;;  %v3596_v63 = vsel %vm3595_vm10, %v4967_v18, %v3592_v48  ;;  %v3517_v21 = vadd.f32 %v3516_v55, %v3515_v36  ;;  %v7098_v44 = vadd.f32 %v3538_v24, %v3537_v4  ;;  %vm3577_vm0 = vweird.f32 %v7092_v45 }
 0x441   :  { %v3601_v54 = vsel %vm3598_vm11, %v3600_v62, %v3596_v63  ;;  %v3557_v11 = vmul.f32 %v4973_v20, %v3485_v60  ;;  %v7095_v41 = vpop.eup %4974  ;;  %vm3562_vm12 = vweird.f32 %v4973_v20  ;;  %v3584_v62 = vor.u32 1.1754944e-38, %v3583_v57 }
 0x442   :  { %v3602_v58 = vmul.f32 %v7030_v56, %v3601_v54  ;;  %v3518_v1 = vrot.slane %v3517_v21, 2  ;;  %v7100_v33 = vpop.eup %4976  ;;  %4980 = vrcp.f32 %v7098_v44  ;;  %v3522_v15 = vsel %vm627_vm2, %v7095_v41, 0.0  ;;  %vm3563_vm14 = vmor %vm3561_vm13, %vm3562_vm12 }
 0x443   :  { %v3558_v40 = vsub.f32 1.0, %v3557_v11  ;;  %v3523_v56 = vsel %vm627_vm2, %v7100_v33, 0.0  ;;  %v3603_v4 = vmul.f32 %v7032_v35, %v3601_v54  ;;  %vm3582_vm4 = vcmp.eq.f32.partialorder %v3581_v47, 8.507059e+37 }
 0x444   :  { %4646 = vmatmul.msk.f32.vlgmr.msrb.gmra.mxu2 %vm627_vm2, %v3602_v58  ;;  %v3519_v0 = vadd.f32 %v3518_v1, %v3517_v21  ;;  %v3524_v51 = vadd.f32 %v3523_v56, %v3522_v15  ;;  %v3661_v35 = vand.u32 2147483647, %v7098_v44  ;;  %vm3657_vm6 = vweird.f32 %v7098_v44 }
 0x445   :  { %v4979_v53 = vpop.eup %4978  ;;  %v3559_v18 = vmul.f32 %v4973_v20, %v3558_v40 }
 0x446   :  { %v3573_v29 = vmul.f32 %v4979_v53, %v7092_v45  ;;  %v3520_v9 = vrot.slane %v3519_v0, 1  ;;  %v3525_v30 = vrot.slane %v3524_v51, 4  ;;  %vm3578_vm15 = vweird.f32 %v4979_v53 }
 0x447   :  { %v3560_v38 = vadd.f32 %v4973_v20, %v3559_v18  ;;  %vm3579_vm3 = vmor %vm3577_vm0, %vm3578_vm15  ;;  %vm3662_vm8 = vcmp.eq.f32.partialorder %v3661_v35, 8.507059e+37  ;;  %vm3980_vm0 = vcmask 261120  }
 0x448   :  { %v3574_v61 = vsub.f32 1.0, %v3573_v29  ;;  %v3521_v3 = vadd.f32 %v3520_v9, %v3519_v0  ;;  %v4981_v16 = vpop.eup %4980  ;;  %v3526_v63 = vadd.f32 %v3525_v30, %v3524_v51 }
 0x449   :  { %v3564_v59 = vsel %vm3563_vm14, %v4973_v20, %v3560_v38  ;;  %v3653_v48 = vmul.f32 %v4981_v16, %v7098_v44  ;;  %vm3658_vm5 = vweird.f32 %v4981_v16 }
 0x44a   :  { %v3569_v32 = vsel %vm3566_vm1, %v3568_v10, %v3564_v59  ;;  %v3575_v36 = vmul.f32 %v4979_v53, %v3574_v61  ;;  %4982 = vrcp.f32 %v3521_v3  ;;  %v3527_v11 = vrot.slane %v3526_v63, 2  ;;  %vm3659_vm7 = vmor %vm3657_vm6, %vm3658_vm5 }
 0x44b   :  { %v3570_v60 = vmul.f32 %v7052_v23, %v3569_v32  ;;  %v3654_v20 = vsub.f32 1.0, %v3653_v48  ;;  %v3663_v23 = vand.u32 2147483648, %v7098_v44  ;;  %v3571_v18 = vmul.f32 %v7056_v12, %v3569_v32 }
 0x44c   :  { %v3576_v55 = vadd.f32 %v4979_v53, %v3575_v36  ;;  %4647 = vmatmul.msk.f32.gmra.mxu2 %vm627_vm2, %v3603_v4  ;;  %v3528_v40 = vadd.f32 %v3527_v11, %v3526_v63  ;;  %v3629_v9 = vand.u32 2147483647, %v3521_v3  ;;  %vm3625_vm10 = vweird.f32 %v3521_v3 }
 0x44d   :  { %4642 = vmatmul.msk.f32.vlgmr.msrb.gmra.mxu0 %vm627_vm2, %v3570_v60  ;;  %v3655_v54 = vmul.f32 %v4981_v16, %v3654_v20  ;;  %v3664_v49 = vor.u32 1.1754944e-38, %v3663_v23  ;;  %v5021_v23 = vld [vmem:[#allocation2 + $0x8] sm:$0xff] }
 0x44e   :  { %v3580_v24 = vsel %vm3579_vm3, %v4979_v53, %v3576_v55  ;;  %v3529_v53 = vrot.slane %v3528_v40, 1  ;;  %vm3630_vm12 = vcmp.eq.f32.partialorder %v3629_v9, 8.507059e+37  ;;  %v5025_v9 = vld [vmem:[#allocation2 + $0x28] sm:$0xff] }
 0x44f   :  { %v3585_v21 = vsel %vm3582_vm4, %v3584_v62, %v3580_v24  ;;  %v3656_v1 = vadd.f32 %v4981_v16, %v3655_v54 }
 0x450   :  { %v3586_v45 = vmul.f32 %v7063_v2, %v3585_v21  ;;  %v4983_v58 = vpop.eup %4982  ;;  %v3631_v2 = vand.u32 2147483648, %v3521_v3  ;;  %v3530_v38 = vadd.f32 %v3529_v53, %v3528_v40  ;;  %v3587_v10 = vmul.f32 %v7065_v17, %v3585_v21 }
 0x451   :  { %v3621_v42 = vmul.f32 %v4983_v58, %v3521_v3  ;;  %v3660_v15 = vsel %vm3659_vm7, %v4981_v16, %v3656_v1  ;;  %vm3626_vm9 = vweird.f32 %v4983_v58 }
 0x452   :  { %4644 = vmatmul.msk.f32.vlgmr.msrb.gmra.mxu1 %vm627_vm2, %v3586_v45  ;;  %v3665_v0 = vsel %vm3662_vm8, %v3664_v49, %v3660_v15  ;;  %4984 = vrcp.f32 %v3530_v38  ;;  %vm3627_vm11 = vmor %vm3625_vm10, %vm3626_vm9  ;;  %v3632_v12 = vor.u32 1.1754944e-38, %v3631_v2  ;;  %v3647_v16 = vand.u32 2147483648, %v3530_v38  ;;  %v5022_v45 = vld [vmem:[#allocation2 + $0x10] sm:$0xff] }
 0x453   :  { %v3622_v56 = vsub.f32 1.0, %v3621_v42  ;;  %v3666_v29 = vmul.f32 %v7074_v50, %v3665_v0  ;;  %v3667_v57 = vmul.f32 %v7076_v14, %v3665_v0  ;;  %v3645_v32 = vand.u32 2147483647, %v3530_v38  ;;  %v5023_v42 = vld [vmem:[#allocation2 + $0x20] sm:$0xff] }
 0x454   :  { %vm3641_vm14 = vweird.f32 %v3530_v38  ;;  %v3648_v60 = vor.u32 1.1754944e-38, %v3647_v16 }
 0x455   :  { %4643 = vmatmul.msk.f32.gmra.mxu0 %vm627_vm2, %v3571_v18  ;;  %v3623_v44 = vmul.f32 %v4983_v58, %v3622_v56  ;;  %4654 = vmatmul.msk.f32.vlgmr.msra.gmra.mxu2 %vm627_vm2, %v3666_v29  ;;  %vm3646_vm15 = vcmp.eq.f32.partialorder %v3645_v32, 8.507059e+37  ;;  %v5024_v56 = vld [vmem:[#allocation2 + $0x18] sm:$0xff] }
 0x457   :  { %v3624_v51 = vadd.f32 %v4983_v58, %v3623_v44 }
 0x458   :  { %v4985_v59 = vpop.eup %4984 }
 0x459   :  { %v3628_v61 = vsel %vm3627_vm11, %v4983_v58, %v3624_v51  ;;  %v3637_v30 = vmul.f32 %v4985_v59, %v3530_v38  ;;  %vm3642_vm13 = vweird.f32 %v4985_v59 }
 0x45a   :  { %4645 = vmatmul.msk.f32.gmra.mxu1 %vm627_vm2, %v3587_v10  ;;  %v3633_v50 = vsel %vm3630_vm12, %v3632_v12, %v3628_v61  ;;  %vm3643_vm1 = vmor %vm3641_vm14, %vm3642_vm13  ;;  %v5026_v10 = vld [vmem:[#allocation2 + $0x48] sm:$0xff] }
 0x45b   :  { %v3634_v47 = vmul.f32 %v7084_v34, %v3633_v50  ;;  %v3638_v3 = vsub.f32 1.0, %v3637_v30  ;;  %v3635_v4 = vmul.f32 %v7086_v28, %v3633_v50  ;;  %v5020_v28 = vld [vmem:[#allocation2] sm:$0xff] }
 0x45d   :  { %4650 = vmatmul.msk.f32.vlgmr.msra.gmra.mxu0 %vm627_vm2, %v3634_v47  ;;  %4655 = vmatmul.msk.f32.gmra.mxu2 %vm627_vm2, %v3667_v57  ;;  %v3639_v17 = vmul.f32 %v4985_v59, %v3638_v3  ;;  %v5028_v3 = vld [vmem:[#allocation2 + $0x40] sm:$0xff] }
 0x45f   :  { %v3640_v36 = vadd.f32 %v4985_v59, %v3639_v17 }
 0x461   :  { %v3644_v34 = vsel %vm3643_vm1, %v4985_v59, %v3640_v36  ;;  %v5027_v59 = vld [vmem:[#allocation2 + $0x50] sm:$0xff] }
 0x462   :  { %v3649_v14 = vsel %vm3646_vm15, %v3648_v60, %v3644_v34  ;;  %v5029_v60 = vld [vmem:[#allocation2 + $0x58] sm:$0xff] }
 0x463   :  { %v3650_v48 = vmul.f32 %v7095_v41, %v3649_v14  ;;  %v3651_v55 = vmul.f32 %v7100_v33, %v3649_v14  ;;  %v5030_v14 = vld [vmem:[#allocation2 + $0x60] sm:$0xff] }
 0x465   :  { %4651 = vmatmul.msk.f32.gmra.mxu0 %vm627_vm2, %v3635_v4  ;;  %4652 = vmatmul.msk.f32.vlgmr.msra.gmra.mxu1 %vm627_vm2, %v3650_v48 }
 0x46d   :  { %4653 = vmatmul.msk.f32.gmra.mxu1 %vm627_vm2, %v3651_v55 }
 0x49c   :  { %v3697_v62 = vpop.f32.mrf.mxu3 }
 0x49d   :  { %v3948_v20 = vadd.f32 %v3697_v62, %v6912_v27 }
 0x49f   :  { %v7139_v63 = vadd.f32 %v5020_v28, %v3948_v20 }
 0x4a1   :  { %v3981_v24 = vsel %vm3980_vm0, %v7139_v63, 0.0 }
 0x4a2   :  { %3982 = vadd.xlane.f32.xlu0 %v3981_v24 }
 0x4a4   :  { %v3700_v35 = vpop.f32.mrf.mxu3 }
 0x4a5   :  { %v3949_v41 = vadd.f32 %v3700_v35, %v6915_v39 }
 0x4a7   :  { %v7144_v21 = vadd.f32 %v5021_v23, %v3949_v41  ;;  %v5032_v23 = vld [vmem:[#allocation2 + $0x70] sm:$0xff] }
 0x4a9   :  { %v3984_v33 = vsel %vm3980_vm0, %v7144_v21, 0.0 }
 0x4aa   :  { %3985 = vadd.xlane.f32.xlu1 %v3984_v33 }
 0x4ac   :  { %v3837_v54 = vpop.f32.mrf.mxu3 }
 0x4ad   :  { %v3956_v61 = vadd.f32 %v3837_v54, %v6918_v52 }
 0x4af   :  { %v7179_v16 = vadd.f32 %v5028_v3, %v3956_v61 }
 0x4b1   :  { %v4005_v17 = vsel %vm3980_vm0, %v7179_v16, 0.0 }
 0x4b4   :  { %v3840_v0 = vpop.f32.mrf.mxu3 }
 0x4b5   :  { %v3957_v2 = vadd.f32 %v3840_v0, %v6921_v22 }
 0x4b7   :  { %v7167_v12 = vadd.f32 %v5026_v10, %v3957_v2 }
 0x4c7   :  { %v3802_v53 = vpop.f32.mrf.mxu2 }
 0x4c8   :  { %v3954_v55 = vadd.f32 %v3802_v53, %v6926_v46  ;;  %v5033_v46 = vld [vmem:[#allocation2 + $0x68] sm:$0xff] }
 0x4ca   :  { %v3732_v27 = vpop.f32.mrf.mxu0 }
 0x4cb   :  { %v3950_v11 = vadd.f32 %v3732_v27, %v6933_v7 }
 0x4cd   :  { %v7149_v58 = vadd.f32 %v5022_v45, %v3950_v11 }
 0x4cf   :  { %v3767_v1 = vpop.f32.mrf.mxu1  ;;  %v3987_v40 = vsel %vm3980_vm0, %v7149_v58, 0.0  ;;  %v3805_v47 = vpop.f32.mrf.mxu2 }
 0x4d0   :  { %v3952_v39 = vadd.f32 %v3767_v1, %v6936_v25  ;;  %3988 = vadd.xlane.f32.xlu2 %v3987_v40  ;;  %v5126_v1 = vmov 32.0   ;;  %v5034_v40 = vld [vmem:[#allocation2 + $0x38] sm:$0xff] }
 0x4d1   :  { %4986 = vrcp.f32 %v5126_v1 }
 0x4d2   :  { %v3735_v49 = vpop.f32.mrf.mxu0  ;;  %v7154_v15 = vadd.f32 %v5023_v42, %v3952_v39 }
 0x4d3   :  { %v3951_v18 = vadd.f32 %v3735_v49, %v6941_v6  ;;  %v5035_v49 = vld [vmem:[#allocation2 + $0x78] sm:$0xff] }
 0x4d4   :  { %v3993_v7 = vsel %vm3980_vm0, %v7154_v15, 0.0 }
 0x4d5   :  { %3994 = vadd.xlane.f32.xlu0 %v3993_v7  ;;  %v7159_v29 = vadd.f32 %v5024_v56, %v3951_v18 }
 0x4d7   :  { %v3770_v38 = vpop.f32.mrf.mxu1  ;;  %v3990_v25 = vsel %vm3980_vm0, %v7159_v29, 0.0  ;;  %v4987_v53 = vpop.eup %4986 }
 0x4d8   :  { %v3953_v44 = vadd.f32 %v3770_v38, %v6944_v5  ;;  %3991 = vadd.xlane.f32.xlu2 %v3990_v25  ;;  %v4008_v5 = vsel %vm3980_vm0, %v7167_v12, 0.0  ;;  %v3942_v32 = vpop.f32.mrf.mxu2  ;;  %v4030_v18 = vmul.f32 32.0, %v4987_v53  ;;  %vm4034_vm2 = vweird.f32 %v4987_v53 }
 0x4d9   :  { %v3962_v20 = vadd.f32 %v3942_v32, %v6947_v31  ;;  %v3955_v31 = vadd.f32 %v3805_v47, %v6930_v19 }
 0x4da   :  { %v7165_v51 = vadd.f32 %v5025_v9, %v3953_v44  ;;  %v3872_v6 = vpop.f32.mrf.mxu0  ;;  %v4031_v0 = vsub.f32 1.0, %v4030_v18 }
 0x4db   :  { %v3958_v50 = vadd.f32 %v3872_v6, %v6961_v37  ;;  %v7198_v33 = vadd.f32 %v5032_v23, %v3962_v20  ;;  %v7210_v39 = vadd.f32 %v5034_v40, %v3955_v31 }
 0x4dc   :  { %v3996_v22 = vsel %vm3980_vm0, %v7165_v51, 0.0  ;;  %v4032_v7 = vmul.f32 %v4987_v53, %v4031_v0 }
 0x4dd   :  { %3997 = vadd.xlane.f32.xlu1 %v3996_v22  ;;  %v7173_v57 = vadd.f32 %v5027_v59, %v3958_v50  ;;  %v4002_v19 = vsel %vm3980_vm0, %v7210_v39, 0.0 }
 0x4de   :  { %v4033_v56 = vadd.f32 %v4987_v53, %v4032_v7 }
 0x4df   :  { %v4011_v30 = vsel %vm3980_vm0, %v7173_v57, 0.0 }
 0x4e0   :  { %4009 = vadd.xlane.f32.xlu2 %v4008_v5  ;;  %4012 = vadd.xlane.f32.xlu0 %v4011_v30  ;;  %v3945_v41 = vpop.f32.mrf.mxu2  ;;  %v7218_v2 = vsel %vm4034_vm2, %v4987_v53, %v4033_v56 }
 0x4e1   :  { %v3963_v11 = vadd.f32 %v3945_v41, %v6958_v26 }
 0x4e2   :  { %v3875_v52 = vpop.f32.mrf.mxu0  ;;  %v3907_v36 = vpop.f32.mrf.mxu1 }
 0x4e3   :  { %v3959_v37 = vadd.f32 %v3875_v52, %v6969_v43  ;;  %v3960_v4 = vadd.f32 %v3907_v36, %v6964_v8  ;;  %v5031_v8 = vld [vmem:[#allocation2 + $0x30] sm:$0xff]  ;;  %v7212_v42 = vadd.f32 %v5035_v49, %v3963_v11 }
 0x4e4   :  { %v7195_v24 = vadd.f32 %v5031_v8, %v3954_v55 }
 0x4e5   :  { %4006 = vadd.xlane.f32.xlu1 %v4005_v17  ;;  %v7185_v34 = vadd.f32 %v5029_v60, %v3959_v37  ;;  %v7187_v48 = vadd.f32 %v5030_v14, %v3960_v4  ;;  %v4026_v26 = vsel %vm3980_vm0, %v7212_v42, 0.0 }
 0x4e6   :  { %v3999_v27 = vsel %vm3980_vm0, %v7195_v24, 0.0 }
 0x4e7   :  { %v4017_v62 = vsel %vm3980_vm0, %v7187_v48, 0.0  ;;  %v4014_v43 = vsel %vm3980_vm0, %v7185_v34, 0.0 }
 0x4e8   :  { %4018 = vadd.xlane.f32.xlu2 %v4017_v62 }
 0x4ea   :  { %v3910_v28 = vpop.f32.mrf.mxu1 }
 0x4eb   :  { %v3961_v35 = vadd.f32 %v3910_v28, %v6974_v13  ;;  %v4023_v13 = vsel %vm3980_vm0, %v7198_v33, 0.0 }
 0x4ed   :  { %4015 = vadd.xlane.f32.xlu1 %v4014_v43  ;;  %v7200_v54 = vadd.f32 %v5033_v46, %v3961_v35 }
 0x4ef   :  { %v4020_v45 = vsel %vm3980_vm0, %v7200_v54, 0.0 }
 0x4f0   :  { %4021 = vadd.xlane.f32.xlu0 %v4020_v45  ;;  %4000 = vadd.xlane.f32.xlu2 %v3999_v27 }
 0x4f5   :  { %4024 = vadd.xlane.f32.xlu1 %v4023_v13 }
 0x4f8   :  { %4003 = vadd.xlane.f32.xlu0 %v4002_v19  ;;  %4027 = vadd.xlane.f32.xlu2 %v4026_v26 }
 0x515   :  { %v3983_v38 = vpop.xlane.xlu0 %3982 }
 0x516   :  { %v4036_v25 = vmul.f32 %v7218_v2, %v3983_v38 }
 0x518   :  { %v7222_v44 = vsub.f32 %v7139_v63, %v4036_v25 }
 0x51a   :  { %v4068_v9 = vmul.f32 %v7222_v44, %v7222_v44 }
 0x51c   :  { %v4084_v6 = vsel %vm3980_vm0, %v4068_v9, 0.0 }
 0x51d   :  { %v3986_v10 = vpop.xlane.xlu1 %3985  ;;  %4085 = vadd.xlane.f32.xlu0 %v4084_v6 }
 0x51e   :  { %v4037_v61 = vmul.f32 %v7218_v2, %v3986_v10 }
 0x520   :  { %v7229_v50 = vsub.f32 %v7144_v21, %v4037_v61 }
 0x522   :  { %v4069_v22 = vmul.f32 %v7229_v50, %v7229_v50 }
 0x524   :  { %v4087_v47 = vsel %vm3980_vm0, %v4069_v22, 0.0 }
 0x525   :  { %4088 = vadd.xlane.f32.xlu1 %v4087_v47 }
 0x543   :  { %v3989_v63 = vpop.xlane.xlu2 %3988 }
 0x544   :  { %v4038_v59 = vmul.f32 %v7218_v2, %v3989_v63 }
 0x546   :  { %v7236_v5 = vsub.f32 %v7149_v58, %v4038_v59 }
 0x548   :  { %v3995_v30 = vpop.xlane.xlu0 %3994  ;;  %v4070_v3 = vmul.f32 %v7236_v5, %v7236_v5 }
 0x549   :  { %v4040_v52 = vmul.f32 %v7218_v2, %v3995_v30 }
 0x54a   :  { %v4090_v21 = vsel %vm3980_vm0, %v4070_v3, 0.0 }
 0x54b   :  { %v7243_v37 = vsub.f32 %v7154_v15, %v4040_v52  ;;  %v3992_v17 = vpop.xlane.xlu2 %3991  ;;  %4091 = vadd.xlane.f32.xlu2 %v4090_v21 }
 0x54c   :  { %v4039_v32 = vmul.f32 %v7218_v2, %v3992_v17 }
 0x54d   :  { %v4072_v36 = vmul.f32 %v7243_v37, %v7243_v37 }
 0x54e   :  { %v7249_v58 = vsub.f32 %v7159_v29, %v4039_v32 }
 0x54f   :  { %v4096_v4 = vsel %vm3980_vm0, %v4072_v36, 0.0 }
 0x550   :  { %v3998_v60 = vpop.xlane.xlu1 %3997  ;;  %4097 = vadd.xlane.f32.xlu1 %v4096_v4  ;;  %v4071_v14 = vmul.f32 %v7249_v58, %v7249_v58 }
 0x551   :  { %v4041_v15 = vmul.f32 %v7218_v2, %v3998_v60 }
 0x552   :  { %v4093_v55 = vsel %vm3980_vm0, %v4071_v14, 0.0 }
 0x553   :  { %v7257_v62 = vsub.f32 %v7165_v51, %v4041_v15  ;;  %v4010_v43 = vpop.xlane.xlu2 %4009  ;;  %4094 = vadd.xlane.f32.xlu0 %v4093_v55  ;;  %v4013_v29 = vpop.xlane.xlu0 %4012 }
 0x554   :  { %v4045_v20 = vmul.f32 %v7218_v2, %v4010_v43  ;;  %v4046_v28 = vmul.f32 %v7218_v2, %v4013_v29 }
 0x555   :  { %v4073_v8 = vmul.f32 %v7257_v62, %v7257_v62 }
 0x556   :  { %v7264_v35 = vsub.f32 %v7167_v12, %v4045_v20  ;;  %v7267_v41 = vsub.f32 %v7173_v57, %v4046_v28 }
 0x557   :  { %v4099_v23 = vsel %vm3980_vm0, %v4073_v8, 0.0 }
 0x558   :  { %v4007_v51 = vpop.xlane.xlu1 %4006  ;;  %4100 = vadd.xlane.f32.xlu2 %v4099_v23  ;;  %v4077_v46 = vmul.f32 %v7264_v35, %v7264_v35  ;;  %v4078_v31 = vmul.f32 %v7267_v41, %v7267_v41 }
 0x559   :  { %v4044_v27 = vmul.f32 %v7218_v2, %v4007_v51 }
 0x55a   :  { %v4111_v11 = vsel %vm3980_vm0, %v4077_v46, 0.0  ;;  %v4114_v57 = vsel %vm3980_vm0, %v4078_v31, 0.0  ;;  %v7337_v31 = vld [vmem:[%s7482_s2] ss:$0 sm:$0xff]  ;;  %s5127_s2 = smov [#allocation7]  }
 0x55b   :  { %v7277_v12 = vsub.f32 %v7179_v16, %v4044_v27  ;;  %4112 = vadd.xlane.f32.xlu0 %v4111_v11  ;;  %4115 = vadd.xlane.f32.xlu1 %v4114_v57  ;;  %v4019_v1 = vpop.xlane.xlu2 %4018 }
 0x55c   :  { %v4048_v49 = vmul.f32 %v7218_v2, %v4019_v1 }
 0x55d   :  { %v4076_v45 = vmul.f32 %v7277_v12, %v7277_v12 }
 0x55e   :  { %v7286_v26 = vsub.f32 %v7187_v48, %v4048_v49 }
 0x55f   :  { %v4108_v13 = vsel %vm3980_vm0, %v4076_v45, 0.0  ;;  %v7342_v45 = vld [vmem:[%s7483_s3] ss:$0 sm:$0xff]  ;;  %s4400_s3 = sshll.u32 %s5127_s2, 4  ;;  %s4401_s3 = int_to_ptr.vmem [resolvable:$true] %s4400_s3 }
 0x560   :  { %v4016_v40 = vpop.xlane.xlu1 %4015  ;;  %4109 = vadd.xlane.f32.xlu2 %v4108_v13  ;;  %v4080_v53 = vmul.f32 %v7286_v26, %v7286_v26 }
 0x561   :  { %v4047_v19 = vmul.f32 %v7218_v2, %v4016_v40 }
 0x562   :  { %v4120_v0 = vsel %vm3980_vm0, %v4080_v53, 0.0 }
 0x563   :  { %v7289_v16 = vsub.f32 %v7185_v34, %v4047_v19  ;;  %v4022_v56 = vpop.xlane.xlu0 %4021  ;;  %v4001_v38 = vpop.xlane.xlu2 %4000  ;;  %4121 = vadd.xlane.f32.xlu0 %v4120_v0 }
 0x564   :  { %v4042_v48 = vmul.f32 %v7218_v2, %v4001_v38 }
 0x565   :  { %v4079_v18 = vmul.f32 %v7289_v16, %v7289_v16 }
 0x566   :  { %v7300_v9 = vsub.f32 %v7195_v24, %v4042_v48 }
 0x567   :  { %v4117_v7 = vsel %vm3980_vm0, %v4079_v18, 0.0 }
 0x568   :  { %4118 = vadd.xlane.f32.xlu2 %v4117_v7  ;;  %v4025_v25 = vpop.xlane.xlu1 %4024  ;;  %v4074_v10 = vmul.f32 %v7300_v9, %v7300_v9 }
 0x569   :  { %v4050_v34 = vmul.f32 %v7218_v2, %v4025_v25 }
 0x56a   :  { %v4102_v22 = vsel %vm3980_vm0, %v4074_v10, 0.0 }
 0x56b   :  { %v7303_v6 = vsub.f32 %v7198_v33, %v4050_v34  ;;  %v4004_v47 = vpop.xlane.xlu0 %4003  ;;  %4103 = vadd.xlane.f32.xlu0 %v4102_v22  ;;  %v4028_v63 = vpop.xlane.xlu2 %4027  ;;  %v4049_v33 = vmul.f32 %v7218_v2, %v4022_v56 }
 0x56c   :  { %v4043_v30 = vmul.f32 %v7218_v2, %v4004_v47  ;;  %v4051_v24 = vmul.f32 %v7218_v2, %v4028_v63 }
 0x56d   :  { %v4082_v61 = vmul.f32 %v7303_v6, %v7303_v6  ;;  %v7325_v32 = vsub.f32 %v7200_v54, %v4049_v33 }
 0x56e   :  { %v7315_v3 = vsub.f32 %v7210_v39, %v4043_v30  ;;  %v7318_v52 = vsub.f32 %v7212_v42, %v4051_v24 }
 0x56f   :  { %v4126_v59 = vsel %vm3980_vm0, %v4082_v61, 0.0  ;;  %v4081_v39 = vmul.f32 %v7325_v32, %v7325_v32 }
 0x570   :  { %4127 = vadd.xlane.f32.xlu2 %v4126_v59  ;;  %v4075_v21 = vmul.f32 %v7315_v3, %v7315_v3  ;;  %v4083_v17 = vmul.f32 %v7318_v52, %v7318_v52 }
 0x571   :  { %v4123_v42 = vsel %vm3980_vm0, %v4081_v39, 0.0 }
 0x572   :  { %v4105_v36 = vsel %vm3980_vm0, %v4075_v21, 0.0  ;;  %v4129_v4 = vsel %vm3980_vm0, %v4083_v17, 0.0 }
 0x573   :  { %4106 = vadd.xlane.f32.xlu1 %v4105_v36  ;;  %4130 = vadd.xlane.f32.xlu0 %v4129_v4 }
 0x57b   :  { %4124 = vadd.xlane.f32.xlu1 %v4123_v42 }
 0x590   :  { %v4086_v60 = vpop.xlane.xlu0 %4085 }
 0x591   :  { %v4132_v14 = vmul.f32 %v4086_v60, %v7218_v2 }
 0x593   :  { %v4148_v15 = vadd.f32 1e-05, %v4132_v14 }
 0x595   :  { %4988 = vrsqrt.f32 %v4148_v15  ;;  %vm4170_vm4 = vweird.f32 %v4148_v15 }
 0x598   :  { %v4089_v55 = vpop.xlane.xlu1 %4088 }
 0x599   :  { %v4133_v54 = vmul.f32 %v4089_v55, %v7218_v2 }
 0x59b   :  { %v4989_v43 = vpop.eup %4988  ;;  %v4149_v20 = vadd.f32 1e-05, %v4133_v54 }
 0x59c   :  { %v4165_v29 = vmul.f32 %v4989_v43, %v4148_v15  ;;  %vm4171_vm3 = vweird.f32 %v4989_v43 }
 0x59d   :  { %4990 = vrsqrt.f32 %v4149_v20  ;;  %vm4172_vm5 = vmor %vm4170_vm4, %vm4171_vm3  ;;  %vm4180_vm7 = vweird.f32 %v4149_v20 }
 0x59e   :  { %v4166_v28 = vmul.f32 %v4989_v43, %v4165_v29 }
 0x5a0   :  { %v4167_v8 = vmul.f32 0.5, %v4166_v28 }
 0x5a2   :  { %v4168_v23 = vsub.f32 1.5, %v4167_v8 }
 0x5a3   :  { %v4991_v51 = vpop.eup %4990 }
 0x5a4   :  { %v4169_v46 = vmul.f32 %v4989_v43, %v4168_v23  ;;  %v4175_v27 = vmul.f32 %v4991_v51, %v4149_v20  ;;  %vm4181_vm6 = vweird.f32 %v4991_v51 }
 0x5a5   :  { %vm4182_vm8 = vmor %vm4180_vm7, %vm4181_vm6 }
 0x5a6   :  { %v4173_v11 = vsel %vm4172_vm5, %v4989_v43, %v4169_v46  ;;  %v4176_v57 = vmul.f32 %v4991_v51, %v4175_v27 }
 0x5a7   :  { %v4324_v13 = vmul.f32 %v4173_v11, %v7222_v44 }
 0x5a8   :  { %v4177_v1 = vmul.f32 0.5, %v4176_v57 }
 0x5a9   :  { %v4344_v40 = vmul.f32 %v7337_v31, %v4324_v13 }
 0x5aa   :  { %v4178_v49 = vsub.f32 1.5, %v4177_v1 }
 0x5ab   :  { %v4364_v19 = vadd.f32 %v7342_v45, %v4344_v40 }
 0x5ac   :  { %v4179_v53 = vmul.f32 %v4991_v51, %v4178_v49 }
 0x5ad   :  { %4380 = vst.msk [vmem:[#allocation7] sm:$0xff] %vm3980_vm0, %v4364_v19 }
 0x5ae   :  { %v4183_v18 = vsel %vm4182_vm8, %v4991_v51, %v4179_v53 }
 0x5af   :  { %v4325_v0 = vmul.f32 %v4183_v18, %v7229_v50 }
 0x5b1   :  { %v4345_v7 = vmul.f32 %v7337_v31, %v4325_v0 }
 0x5b3   :  { %v4365_v56 = vadd.f32 %v7342_v45, %v4345_v7 }
 0x5b5   :  { %4381 = vst.msk [vmem:[#allocation7 + $0x8] sm:$0xff] %vm3980_vm0, %v4365_v56 }
 0x5be   :  { %v4092_v44 = vpop.xlane.xlu2 %4091 }
 0x5bf   :  { %v4134_v38 = vmul.f32 %v4092_v44, %v7218_v2 }
 0x5c1   :  { %v4150_v48 = vadd.f32 1e-05, %v4134_v38 }
 0x5c3   :  { %4992 = vrsqrt.f32 %v4150_v48  ;;  %v4098_v25 = vpop.xlane.xlu1 %4097  ;;  %vm4190_vm10 = vweird.f32 %v4150_v48 }
 0x5c4   :  { %v4136_v34 = vmul.f32 %v4098_v25, %v7218_v2 }
 0x5c6   :  { %v4152_v10 = vadd.f32 1e-05, %v4136_v34  ;;  %v4095_v61 = vpop.xlane.xlu0 %4094 }
 0x5c7   :  { %v4135_v22 = vmul.f32 %v4095_v61, %v7218_v2 }
 0x5c8   :  { %4994 = vrsqrt.f32 %v4152_v10  ;;  %vm4210_vm13 = vweird.f32 %v4152_v10 }
 0x5c9   :  { %v4993_v50 = vpop.eup %4992  ;;  %v4151_v47 = vadd.f32 1e-05, %v4135_v22 }
 0x5ca   :  { %v4185_v63 = vmul.f32 %v4993_v50, %v4150_v48  ;;  %vm4191_vm9 = vweird.f32 %v4993_v50 }
 0x5cb   :  { %4996 = vrsqrt.f32 %v4151_v47  ;;  %v4101_v59 = vpop.xlane.xlu2 %4100  ;;  %vm4192_vm11 = vmor %vm4190_vm10, %vm4191_vm9  ;;  %vm4200_vm15 = vweird.f32 %v4151_v47 }
 0x5cc   :  { %v4186_v30 = vmul.f32 %v4993_v50, %v4185_v63  ;;  %v4137_v24 = vmul.f32 %v4101_v59, %v7218_v2 }
 0x5ce   :  { %v4995_v33 = vpop.eup %4994  ;;  %v4187_v21 = vmul.f32 0.5, %v4186_v30  ;;  %v7356_v17 = vadd.f32 1e-05, %v4137_v24  ;;  %v4113_v36 = vpop.xlane.xlu0 %4112 }
 0x5cf   :  { %v4205_v4 = vmul.f32 %v4995_v33, %v4152_v10  ;;  %v4141_v39 = vmul.f32 %v4113_v36, %v7218_v2  ;;  %v4116_v42 = vpop.xlane.xlu1 %4115  ;;  %vm4211_vm12 = vweird.f32 %v4995_v33 }
 0x5d0   :  { %v4188_v60 = vsub.f32 1.5, %v4187_v21  ;;  %4998 = vrsqrt.f32 %v7356_v17  ;;  %v4142_v14 = vmul.f32 %v4116_v42, %v7218_v2  ;;  %vm4212_vm14 = vmor %vm4210_vm13, %vm4211_vm12  ;;  %vm4220_vm4 = vweird.f32 %v7356_v17 }
 0x5d1   :  { %v4997_v15 = vpop.eup %4996  ;;  %v4206_v55 = vmul.f32 %v4995_v33, %v4205_v4  ;;  %v7361_v54 = vadd.f32 1e-05, %v4141_v39 }
 0x5d2   :  { %v4189_v43 = vmul.f32 %v4993_v50, %v4188_v60  ;;  %v4195_v20 = vmul.f32 %v4997_v15, %v4151_v47  ;;  %v7363_v29 = vadd.f32 1e-05, %v4142_v14  ;;  %vm4201_vm1 = vweird.f32 %v4997_v15 }
 0x5d3   :  { %v4207_v28 = vmul.f32 0.5, %v4206_v55  ;;  %5000 = vrsqrt.f32 %v7361_v54  ;;  %v4110_v8 = vpop.xlane.xlu2 %4109  ;;  %vm4202_vm2 = vmor %vm4200_vm15, %vm4201_vm1  ;;  %vm4260_vm8 = vweird.f32 %v7361_v54 }
 0x5d4   :  { %v4193_v23 = vsel %vm4192_vm11, %v4993_v50, %v4189_v43  ;;  %v4196_v51 = vmul.f32 %v4997_v15, %v4195_v20  ;;  %5002 = vrsqrt.f32 %v7363_v29  ;;  %v4140_v11 = vmul.f32 %v4110_v8, %v7218_v2 }
 0x5d5   :  { %v4326_v46 = vmul.f32 %v4193_v23, %v7236_v5  ;;  %v4208_v27 = vsub.f32 1.5, %v4207_v28  ;;  %vm4270_vm10 = vweird.f32 %v7363_v29 }
 0x5d6   :  { %v4999_v57 = vpop.eup %4998  ;;  %v4197_v13 = vmul.f32 0.5, %v4196_v51  ;;  %v7371_v53 = vadd.f32 1e-05, %v4140_v11  ;;  %v4122_v10 = vpop.xlane.xlu0 %4121 }
 0x5d7   :  { %v4346_v1 = vmul.f32 %v7337_v31, %v4326_v46  ;;  %v4209_v40 = vmul.f32 %v4995_v33, %v4208_v27  ;;  %v4215_v49 = vmul.f32 %v4999_v57, %v7356_v17  ;;  %vm4221_vm3 = vweird.f32 %v4999_v57 }
 0x5d8   :  { %v4198_v19 = vsub.f32 1.5, %v4197_v13  ;;  %5004 = vrsqrt.f32 %v7371_v53  ;;  %v4144_v30 = vmul.f32 %v4122_v10, %v7218_v2  ;;  %vm4222_vm5 = vmor %vm4220_vm4, %vm4221_vm3  ;;  %vm4250_vm13 = vweird.f32 %v7371_v53 }
 0x5d9   :  { %v5001_v18 = vpop.eup %5000  ;;  %v4366_v5 = vadd.f32 %v7342_v45, %v4346_v1  ;;  %v4213_v0 = vsel %vm4212_vm14, %v4995_v33, %v4209_v40  ;;  %v4216_v7 = vmul.f32 %v4999_v57, %v4215_v49 }
 0x5da   :  { %v5003_v56 = vpop.eup %5002  ;;  %v4328_v44 = vmul.f32 %v4213_v0, %v7243_v37  ;;  %v4199_v38 = vmul.f32 %v4997_v15, %v4198_v19  ;;  %v4255_v48 = vmul.f32 %v5001_v18, %v7361_v54  ;;  %v7386_v42 = vadd.f32 1e-05, %v4144_v30 }
 0x5db   :  { %4382 = vst.msk [vmem:[#allocation7 + $0x10] sm:$0xff] %vm3980_vm0, %v4366_v5  ;;  %v4217_v25 = vmul.f32 0.5, %v4216_v7  ;;  %v4265_v34 = vmul.f32 %v5003_v56, %v7363_v29  ;;  %v4119_v61 = vpop.xlane.xlu2 %4118  ;;  %vm4261_vm6 = vweird.f32 %v5001_v18  ;;  %vm4271_vm7 = vweird.f32 %v5003_v56 }
 0x5dc   :  { %v4348_v22 = vmul.f32 %v7337_v31, %v4328_v44  ;;  %v4203_v50 = vsel %vm4202_vm2, %v4997_v15, %v4199_v38  ;;  %v4256_v63 = vmul.f32 %v5001_v18, %v4255_v48  ;;  %v4143_v21 = vmul.f32 %v4119_v61, %v7218_v2  ;;  %vm4262_vm9 = vmor %vm4260_vm8, %vm4261_vm6 }
 0x5dd   :  { %v4327_v37 = vmul.f32 %v4203_v50, %v7249_v58  ;;  %v4218_v47 = vsub.f32 1.5, %v4217_v25  ;;  %v4266_v59 = vmul.f32 %v5003_v56, %v4265_v34  ;;  %5006 = vrsqrt.f32 %v7386_v42  ;;  %vm4272_vm11 = vmor %vm4270_vm10, %vm4271_vm7 }
 0x5de   :  { %v4368_v24 = vadd.f32 %v7342_v45, %v4348_v22  ;;  %v4257_v33 = vmul.f32 0.5, %v4256_v63  ;;  %v7390_v60 = vadd.f32 1e-05, %v4143_v21  ;;  %v5005_v14 = vpop.eup %5004  ;;  %v4104_v23 = vpop.xlane.xlu0 %4103  ;;  %vm4290_vm15 = vweird.f32 %v7386_v42 }
 0x5df   :  { %v4347_v36 = vmul.f32 %v7337_v31, %v4327_v37  ;;  %v4219_v4 = vmul.f32 %v4999_v57, %v4218_v47  ;;  %v4267_v39 = vmul.f32 0.5, %v4266_v59  ;;  %v4245_v28 = vmul.f32 %v5005_v14, %v7371_v53 }
 0x5e0   :  { %4384 = vst.msk [vmem:[#allocation7 + $0x20] sm:$0xff] %vm3980_vm0, %v4368_v24  ;;  %v4258_v58 = vsub.f32 1.5, %v4257_v33  ;;  %5008 = vrsqrt.f32 %v7390_v60  ;;  %v4138_v27 = vmul.f32 %v4104_v23, %v7218_v2  ;;  %vm4251_vm12 = vweird.f32 %v5005_v14 }
 0x5e1   :  { %v4367_v17 = vadd.f32 %v7342_v45, %v4347_v36  ;;  %v4223_v15 = vsel %vm4222_vm5, %v4999_v57, %v4219_v4  ;;  %v4268_v55 = vsub.f32 1.5, %v4267_v39  ;;  %vm4252_vm14 = vmor %vm4250_vm13, %vm4251_vm12  ;;  %vm4280_vm4 = vweird.f32 %v7390_v60 }
 0x5e2   :  { %v4329_v43 = vmul.f32 %v4223_v15, %v7257_v62  ;;  %v4259_v20 = vmul.f32 %v5001_v18, %v4258_v58  ;;  %v4246_v62 = vmul.f32 %v5005_v14, %v4245_v28  ;;  %v7407_v49 = vadd.f32 1e-05, %v4138_v27 }
 0x5e3   :  { %4383 = vst.msk [vmem:[#allocation7 + $0x18] sm:$0xff] %vm3980_vm0, %v4367_v17  ;;  %v4269_v8 = vmul.f32 %v5003_v56, %v4268_v55  ;;  %v4128_v54 = vpop.xlane.xlu2 %4127  ;;  %v5007_v19 = vpop.eup %5006 }
 0x5e4   :  { %v4349_v51 = vmul.f32 %v7337_v31, %v4329_v43  ;;  %v4263_v46 = vsel %vm4262_vm9, %v5001_v18, %v4259_v20  ;;  %v4146_v13 = vmul.f32 %v4128_v54, %v7218_v2  ;;  %v4247_v40 = vmul.f32 0.5, %v4246_v62 }
 0x5e5   :  { %v4333_v11 = vmul.f32 %v4263_v46, %v7264_v35  ;;  %v4273_v57 = vsel %vm4272_vm11, %v5003_v56, %v4269_v8  ;;  %v4285_v7 = vmul.f32 %v5007_v19, %v7386_v42  ;;  %5010 = vrsqrt.f32 %v7407_v49 }
 0x5e6   :  { %v4369_v1 = vadd.f32 %v7342_v45, %v4349_v51  ;;  %v4334_v29 = vmul.f32 %v4273_v57, %v7267_v41  ;;  %v7410_v5 = vadd.f32 1e-05, %v4146_v13  ;;  %v4248_v35 = vsub.f32 1.5, %v4247_v40  ;;  %v5009_v56 = vpop.eup %5008  ;;  %v4107_v34 = vpop.xlane.xlu1 %4106 }
 0x5e7   :  { %v4353_v18 = vmul.f32 %v7337_v31, %v4333_v11  ;;  %v4286_v48 = vmul.f32 %v5007_v19, %v4285_v7  ;;  %v4275_v25 = vmul.f32 %v5009_v56, %v7390_v60  ;;  %v4131_v10 = vpop.xlane.xlu0 %4130  ;;  %v4139_v50 = vmul.f32 %v4107_v34, %v7218_v2 }
 0x5e8   :  { %4385 = vst.msk [vmem:[#allocation7 + $0x28] sm:$0xff] %vm3980_vm0, %v4369_v1  ;;  %v4354_v0 = vmul.f32 %v7337_v31, %v4334_v29  ;;  %v4249_v38 = vmul.f32 %v5005_v14, %v4248_v35  ;;  %5012 = vrsqrt.f32 %v7410_v5  ;;  %v4147_v37 = vmul.f32 %v4131_v10, %v7218_v2 }
 0x5e9   :  { %v4373_v44 = vadd.f32 %v7342_v45, %v4353_v18  ;;  %v4287_v22 = vmul.f32 0.5, %v4286_v48  ;;  %v4276_v53 = vmul.f32 %v5009_v56, %v4275_v25  ;;  %vm4291_vm1 = vweird.f32 %v5007_v19 }
 0x5ea   :  { %v4374_v41 = vadd.f32 %v7342_v45, %v4354_v0  ;;  %v4253_v61 = vsel %vm4252_vm14, %v5005_v14, %v4249_v38  ;;  %v7426_v30 = vadd.f32 1e-05, %v4139_v50  ;;  %v7430_v21 = vadd.f32 1e-05, %v4147_v37  ;;  %vm4292_vm3 = vmor %vm4290_vm15, %vm4291_vm1 }
 0x5eb   :  { %4389 = vst.msk [vmem:[#allocation7 + $0x48] sm:$0xff] %vm3980_vm0, %v4373_v44  ;;  %v4332_v63 = vmul.f32 %v4253_v61, %v7277_v12  ;;  %v4288_v47 = vsub.f32 1.5, %v4287_v22  ;;  %v4277_v59 = vmul.f32 0.5, %v4276_v53  ;;  %v5011_v24 = vpop.eup %5010  ;;  %vm4281_vm2 = vweird.f32 %v5009_v56 }
 0x5ec   :  { %4390 = vst.msk [vmem:[#allocation7 + $0x50] sm:$0xff] %vm3980_vm0, %v4374_v41  ;;  %v4225_v39 = vmul.f32 %v5011_v24, %v7407_v49  ;;  %5014 = vrsqrt.f32 %v7426_v30  ;;  %vm4282_vm5 = vmor %vm4280_vm4, %vm4281_vm2  ;;  %vm4231_vm6 = vweird.f32 %v5011_v24  ;;  %vm4230_vm7 = vweird.f32 %v7407_v49 }
 0x5ed   :  { %v4352_v33 = vmul.f32 %v7337_v31, %v4332_v63  ;;  %v4289_v36 = vmul.f32 %v5007_v19, %v4288_v47  ;;  %v4278_v4 = vsub.f32 1.5, %v4277_v59  ;;  %5016 = vrsqrt.f32 %v7430_v21  ;;  %vm4232_vm9 = vmor %vm4230_vm7, %vm4231_vm6 }
 0x5ee   :  { %v5013_v12 = vpop.eup %5012  ;;  %v4226_v15 = vmul.f32 %v5011_v24, %v4225_v39  ;;  %v4125_v43 = vpop.xlane.xlu1 %4124  ;;  %vm4310_vm10 = vweird.f32 %v7410_v5  ;;  %vm4240_vm13 = vweird.f32 %v7426_v30  ;;  %vm4320_vm15 = vweird.f32 %v7430_v21 }
 0x5ef   :  { %v4372_v58 = vadd.f32 %v7342_v45, %v4352_v33  ;;  %v4293_v14 = vsel %vm4292_vm3, %v5007_v19, %v4289_v36  ;;  %v4279_v17 = vmul.f32 %v5009_v56, %v4278_v4  ;;  %v4305_v42 = vmul.f32 %v5013_v12, %v7410_v5 }
 0x5f0   :  { %v4336_v55 = vmul.f32 %v4293_v14, %v7286_v26  ;;  %v4227_v28 = vmul.f32 0.5, %v4226_v15  ;;  %v4145_v60 = vmul.f32 %v4125_v43, %v7218_v2  ;;  %vm4311_vm8 = vweird.f32 %v5013_v12 }
 0x5f1   :  { %4388 = vst.msk [vmem:[#allocation7 + $0x40] sm:$0xff] %vm3980_vm0, %v4372_v58  ;;  %v4283_v20 = vsel %vm4282_vm5, %v5009_v56, %v4279_v17  ;;  %v4306_v8 = vmul.f32 %v5013_v12, %v4305_v42  ;;  %vm4312_vm11 = vmor %vm4310_vm10, %vm4311_vm8 }
 0x5f2   :  { %v4356_v23 = vmul.f32 %v7337_v31, %v4336_v55  ;;  %v4335_v51 = vmul.f32 %v4283_v20, %v7289_v16  ;;  %v4228_v46 = vsub.f32 1.5, %v4227_v28  ;;  %v4161_v27 = vadd.f32 1e-05, %v4145_v60  ;;  %v5015_v54 = vpop.eup %5014 }
 0x5f3   :  { %v4307_v62 = vmul.f32 0.5, %v4306_v8  ;;  %v4235_v2 = vmul.f32 %v5015_v54, %v7426_v30  ;;  %v5017_v1 = vpop.eup %5016  ;;  %vm4241_vm12 = vweird.f32 %v5015_v54 }
 0x5f4   :  { %v4376_v26 = vadd.f32 %v7342_v45, %v4356_v23  ;;  %v4355_v11 = vmul.f32 %v7337_v31, %v4335_v51  ;;  %v4229_v57 = vmul.f32 %v5011_v24, %v4228_v46  ;;  %5018 = vrsqrt.f32 %v4161_v27  ;;  %vm4242_vm1 = vmor %vm4240_vm13, %vm4241_vm12 }
 0x5f5   :  { %v4308_v13 = vsub.f32 1.5, %v4307_v62  ;;  %v4236_v19 = vmul.f32 %v5015_v54, %v4235_v2  ;;  %v4315_v18 = vmul.f32 %v5017_v1, %v7430_v21  ;;  %vm4321_vm14 = vweird.f32 %v5017_v1 }
 0x5f6   :  { %4392 = vst.msk [vmem:[#allocation7 + $0x60] sm:$0xff] %vm3980_vm0, %v4376_v26  ;;  %v4375_v16 = vadd.f32 %v7342_v45, %v4355_v11  ;;  %v4233_v29 = vsel %vm4232_vm9, %v5011_v24, %v4229_v57  ;;  %vm4322_vm2 = vmor %vm4320_vm15, %vm4321_vm14  ;;  %vm4300_vm4 = vweird.f32 %v4161_v27 }
 0x5f7   :  { %v4309_v40 = vmul.f32 %v5013_v12, %v4308_v13  ;;  %v4330_v49 = vmul.f32 %v4233_v29, %v7300_v9  ;;  %v4237_v35 = vmul.f32 0.5, %v4236_v19  ;;  %v4316_v7 = vmul.f32 %v5017_v1, %v4315_v18 }
 0x5f8   :  { %4391 = vst.msk [vmem:[#allocation7 + $0x58] sm:$0xff] %vm3980_vm0, %v4375_v16 }
 0x5f9   :  { %v4313_v0 = vsel %vm4312_vm11, %v5013_v12, %v4309_v40  ;;  %v4350_v56 = vmul.f32 %v7337_v31, %v4330_v49  ;;  %v4238_v41 = vsub.f32 1.5, %v4237_v35  ;;  %v4317_v5 = vmul.f32 0.5, %v4316_v7 }
 0x5fa   :  { %v4338_v44 = vmul.f32 %v4313_v0, %v7303_v6  ;;  %v5019_v38 = vpop.eup %5018 }
 0x5fb   :  { %v4370_v48 = vadd.f32 %v7342_v45, %v4350_v56  ;;  %v4239_v34 = vmul.f32 %v5015_v54, %v4238_v41  ;;  %v4318_v9 = vsub.f32 1.5, %v4317_v5  ;;  %v4295_v10 = vmul.f32 %v5019_v38, %v4161_v27 }
 0x5fc   :  { %v4358_v25 = vmul.f32 %v7337_v31, %v4338_v44  ;;  %vm4301_vm3 = vweird.f32 %v5019_v38 }
 0x5fd   :  { %4386 = vst.msk [vmem:[#allocation7 + $0x30] sm:$0xff] %vm3980_vm0, %v4370_v48  ;;  %v4243_v6 = vsel %vm4242_vm1, %v5015_v54, %v4239_v34  ;;  %v4319_v22 = vmul.f32 %v5017_v1, %v4318_v9  ;;  %v4296_v53 = vmul.f32 %v5019_v38, %v4295_v10  ;;  %vm4302_vm5 = vmor %vm4300_vm4, %vm4301_vm3 }
 0x5fe   :  { %v4378_v61 = vadd.f32 %v7342_v45, %v4358_v25  ;;  %v4331_v50 = vmul.f32 %v4243_v6, %v7315_v3 }
 0x5ff   :  { %v4323_v63 = vsel %vm4322_vm2, %v5017_v1, %v4319_v22  ;;  %v4297_v37 = vmul.f32 0.5, %v4296_v53 }
 0x600   :  { %4394 = vst.msk [vmem:[#allocation7 + $0x70] sm:$0xff] %vm3980_vm0, %v4378_v61  ;;  %v4351_v47 = vmul.f32 %v7337_v31, %v4331_v50  ;;  %v4339_v59 = vmul.f32 %v4323_v63, %v7318_v52 }
 0x601   :  { %v4298_v30 = vsub.f32 1.5, %v4297_v37 }
 0x602   :  { %v4371_v24 = vadd.f32 %v7342_v45, %v4351_v47  ;;  %v4359_v33 = vmul.f32 %v7337_v31, %v4339_v59 }
 0x603   :  { %v4299_v36 = vmul.f32 %v5019_v38, %v4298_v30 }
 0x604   :  { %4387 = vst.msk [vmem:[#allocation7 + $0x38] sm:$0xff] %vm3980_vm0, %v4371_v24  ;;  %v4379_v21 = vadd.f32 %v7342_v45, %v4359_v33 }
 0x605   :  { %v4303_v3 = vsel %vm4302_vm5, %v5019_v38, %v4299_v36 }
 0x606   :  { %4395 = vst.msk [vmem:[#allocation7 + $0x78] sm:$0xff] %vm3980_vm0, %v4379_v21  ;;  %v4337_v4 = vmul.f32 %v4303_v3, %v7325_v32 }
 0x608   :  { %v4357_v52 = vmul.f32 %v7337_v31, %v4337_v4 }
 0x60a   :  { %v4377_v39 = vadd.f32 %v7342_v45, %v4357_v52 }
 0x60c   :  { %4393 = vst.msk [vmem:[#allocation7 + $0x68] sm:$0xff] %vm3980_vm0, %v4377_v39 }
 0x60d   :  { %4408 = dma.vmem_to_hbm [thread:$0]  %s4401_s3, 2048, %s4403_s13, [#allocation4], %s5115_s23, %s5115_s23, %s5116_s24  }
 0x60e   :  { %5112 = dma.done.wait [#allocation4], 2048  }
 0x60f   :  { %5113 = vsyncadd [#allocation4], 4294965248 }
 0x610   :  { %4413 = vsyncpa [#allocation3], 1 }
 0x611   :  { %4414 = vsyncpa [#allocation6], 1 }
 0x612   :  { %4415 = vsyncpa [#allocation4], 1 }

</bundles_post_ra>
